<compile_context>
chip_gen: v5e
topology: v5e:2x2
jax: 0.10.0
libtpu: 0.0.40
codegen_flags: <defaults>
</compile_context>

<pallas_src>
import jax
import jax.numpy as jnp
from jax.experimental import pallas as pl
from jax.experimental.pallas import tpu as pltpu


def _round_up(x, m):
    return ((x + m - 1) // m) * m


def ffn_kernel(x_ref, w1_ref, b1_ref, w2_ref, b2_ref, o_ref, acc_ref):
    # x_ref:   (TM, Cp) bf16  -- resident across the H-reduction axis
    # w1_ref:  (Cp, TH) bf16  -- streamed along H
    # b1_ref:  (1, TH)  f32
    # w2_ref:  (TH, Cp) bf16  -- streamed along H
    # b2_ref:  (1, Cp)  f32
    # o_ref:   (TM, Cp) f32
    # acc_ref: (TM, Cp) f32 scratch accumulator
    k = pl.program_id(1)

    @pl.when(k == 0)
    def _():
        acc_ref[...] = jnp.zeros_like(acc_ref)

    # First matmul on the MXU (bf16 in, f32 accumulate); bias + ReLU in f32.
    h = jnp.dot(x_ref[...], w1_ref[...], preferred_element_type=jnp.float32)
    h = jnp.maximum(h + b1_ref[...], 0.0)

    # Second matmul: cast activation to bf16 only right before hitting the MXU.
    acc_ref[...] += jnp.dot(h.astype(jnp.bfloat16), w2_ref[...],
                            preferred_element_type=jnp.float32)

    @pl.when(k == pl.num_programs(1) - 1)
    def _():
        # TODO(synk): training-mode dropout (p=0.1) would use pltpu.prng_seed +
        # pltpu.prng_random_bits on this (TM, Cp) tile; eval mode is identity.
        o_ref[...] = (acc_ref[...] + b2_ref[...]).astype(o_ref.dtype)


def feed_forward(x, w1, b1, w2, b2, *, tm=256, th=1024):
    """T5-style FFN. x: (B, T, C) float32 -> (B, T, C) float32."""
    B, T, C = x.shape
    H = w1.shape[1]
    M = B * T

    # ---- tile / padding choices (lane-dense, MXU-friendly) ------------------
    c_pad = _round_up(C, 128)                 # lane-dense output stores
    tm = min(tm, _round_up(M, 16))            # M tile (mult of 16 for bf16 sublanes)
    m_pad = _round_up(M, tm)
    th = min(th, _round_up(H, 128))           # H (reduction) tile
    h_pad = _round_up(H, th)

    x2d = jnp.pad(x.reshape(M, C), ((0, m_pad - M), (0, c_pad - C)))
    w1p = jnp.pad(w1, ((0, c_pad - C), (0, h_pad - H)))
    b1p = jnp.pad(b1.reshape(1, H), ((0, 0), (0, h_pad - H)))
    w2p = jnp.pad(w2, ((0, h_pad - H), (0, c_pad - C)))
    b2p = jnp.pad(b2.reshape(1, C), ((0, 0), (0, c_pad - C)))

    # bf16 MXU inputs (full-rate on v5e/v6e/v7x); accumulation stays f32.
    x_bf = x2d.astype(jnp.bfloat16)
    w1_bf = w1p.astype(jnp.bfloat16)
    w2_bf = w2p.astype(jnp.bfloat16)

    grid = (m_pad // tm, h_pad // th)         # M parallel, H reduction (last)

    cost = pl.CostEstimate(
        flops=4 * m_pad * c_pad * h_pad,      # two matmuls: 2*M*C*H each
        transcendentals=0,
        bytes_accessed=(x_bf.size * 2 + w1_bf.size * 2 + w2_bf.size * 2
                        + b1p.size * 4 + b2p.size * 4 + m_pad * c_pad * 4),
    )

    out = pl.pallas_call(
        ffn_kernel,
        out_shape=jax.ShapeDtypeStruct((m_pad, c_pad), jnp.float32),
        grid_spec=pltpu.PrefetchScalarGridSpec(
            num_scalar_prefetch=0,
            grid=grid,
            in_specs=[
                pl.BlockSpec((tm, c_pad), lambda i, k: (i, 0)),   # x (resident over k)
                pl.BlockSpec((c_pad, th), lambda i, k: (0, k)),   # w1 (streamed over H)
                pl.BlockSpec((1, th), lambda i, k: (0, k)),       # b1
                pl.BlockSpec((th, c_pad), lambda i, k: (k, 0)),   # w2 (streamed over H)
                pl.BlockSpec((1, c_pad), lambda i, k: (0, 0)),    # b2
            ],
            out_specs=pl.BlockSpec((tm, c_pad), lambda i, k: (i, 0)),
            scratch_shapes=[pltpu.VMEM((tm, c_pad), jnp.float32)],
        ),
        compiler_params=pltpu.CompilerParams(
            dimension_semantics=("parallel", "arbitrary"),
            vmem_limit_bytes=64 * 1024 * 1024,
        ),
        cost_estimate=cost,
    )(x_bf, w1_bf, b1p, w2_bf, b2p)

    return out[:M, :C].reshape(B, T, C)


if __name__ == "__main__":
    # Small demo consistent with ModelConfig: n_embd=768, hidden=4*768=3072, short sequence.
    B, T, C = 2, 8, 768
    H = 4 * C

    key = jax.random.PRNGKey(0)
    kx, k1, k2, k3, k4 = jax.random.split(key, 5)

    bound1 = 1.0 / jnp.sqrt(C)
    bound2 = 1.0 / jnp.sqrt(H)
    x = jax.random.normal(kx, (B, T, C), dtype=jnp.float32)
    w1 = jax.random.uniform(k1, (C, H), minval=-bound1, maxval=bound1, dtype=jnp.float32)
    b1 = jax.random.uniform(k2, (H,), minval=-bound1, maxval=bound1, dtype=jnp.float32)
    w2 = jax.random.uniform(k3, (H, C), minval=-bound2, maxval=bound2, dtype=jnp.float32)
    b2 = jax.random.uniform(k4, (C,), minval=-bound2, maxval=bound2, dtype=jnp.float32)

    y = feed_forward(x, w1, b1, w2, b2)
    jax.block_until_ready(y)

    # Reference following the same bf16-matmul / f32-accumulate numerics.
    x2d = x.reshape(-1, C)
    h_ref = jnp.maximum(
        jnp.dot(x2d.astype(jnp.bfloat16), w1.astype(jnp.bfloat16),
                preferred_element_type=jnp.float32) + b1, 0.0)
    ref = jnp.dot(h_ref.astype(jnp.bfloat16), w2.astype(jnp.bfloat16),
                  preferred_element_type=jnp.float32) + b2
    assert jnp.allclose(y.reshape(-1, C), ref, atol=5e-3, rtol=5e-3), \
        float(jnp.max(jnp.abs(y.reshape(-1, C) - ref)))

    # Loose sanity check against pure-f32 math (bf16 input rounding tolerance).
    ref32 = jnp.maximum(x2d @ w1 + b1, 0.0) @ w2 + b2
    assert jnp.allclose(y.reshape(-1, C), ref32, atol=5e-2, rtol=5e-2)

    print("KERNEL_OK")
</pallas_src>

<mosaic_0001>
module attributes {stable_mosaic.version = 11 : i64} {
  func.func @ffn_kernel(%arg0: i32, %arg1: i32, %arg2: memref<16x768xbf16, #tpu.memory_space<vmem>>, %arg3: memref<768x1024xbf16, #tpu.memory_space<vmem>>, %arg4: memref<1x1024xf32, #tpu.memory_space<vmem>>, %arg5: memref<1024x768xbf16, #tpu.memory_space<vmem>>, %arg6: memref<1x768xf32, #tpu.memory_space<vmem>>, %arg7: memref<16x768xf32, #tpu.memory_space<vmem>>, %arg8: memref<16x768xf32, #tpu.memory_space<vmem>>) attributes {dimension_semantics = [#tpu.dimension_semantics<parallel>, #tpu.dimension_semantics<arbitrary>], iteration_bounds = array<i64: 1, 3>, scalar_prefetch = 0 : i64, scratch_operands = 1 : i64, tpu.core_type = #tpu.core_type<tc>, window_params = [{transform_indices = @transform_0, window_bounds = array<i64: 16, 768>}, {transform_indices = @transform_1, window_bounds = array<i64: 768, 1024>}, {transform_indices = @transform_2, window_bounds = array<i64: 1, 1024>}, {transform_indices = @transform_3, window_bounds = array<i64: 1024, 768>}, {pipeline_mode = #tpu.pipeline_mode<synchronous>, transform_indices = @transform_4, window_bounds = array<i64: 1, 768>}, {transform_indices = @transform_5, window_bounds = array<i64: 16, 768>}]} {
    %c0_i32 = arith.constant 0 : i32
    %0 = arith.cmpi eq, %arg1, %c0_i32 : i32
    %1 = arith.extui %0 : i1 to i32
    %c0_i32_0 = arith.constant 0 : i32
    %2 = arith.cmpi ne, %1, %c0_i32_0 : i32
    scf.if %2 {
      %cst_15 = arith.constant 0.000000e+00 : f32
      %20 = vector.broadcast %cst_15 : f32 to vector<16x768xf32>
      %c0_16 = arith.constant 0 : index
      %c0_17 = arith.constant 0 : index
      %21 = vector.load %arg8[%c0_16, %c0_17] : memref<16x768xf32, #tpu.memory_space<vmem>>, vector<16x768xf32>
      tpu.vector_store %arg8[%c0_16, %c0_17], %20 {strides = array<i32>} : memref<16x768xf32, #tpu.memory_space<vmem>>, vector<16x768xf32>,
    } else {
    }
    %c0 = arith.constant 0 : index
    %c0_1 = arith.constant 0 : index
    %3 = vector.load %arg2[%c0, %c0_1] : memref<16x768xbf16, #tpu.memory_space<vmem>>, vector<16x768xbf16>
    %c0_2 = arith.constant 0 : index
    %c0_3 = arith.constant 0 : index
    %4 = vector.load %arg3[%c0_2, %c0_3] : memref<768x1024xbf16, #tpu.memory_space<vmem>>, vector<768x1024xbf16>
    %cst = arith.constant dense<0.000000e+00> : vector<16x1024xf32>
    %5 = tpu.matmul %3, %4, %cst {dimension_numbers = #tpu.dot_dimension_numbers<[1], [0], [0], [1], [0, 0, 1, 1], [], []>} : vector<16x768xbf16>, vector<768x1024xbf16>, vector<16x1024xf32> -> vector<16x1024xf32>
    %c0_4 = arith.constant 0 : index
    %c0_5 = arith.constant 0 : index
    %6 = vector.load %arg4[%c0_4, %c0_5] : memref<1x1024xf32, #tpu.memory_space<vmem>>, vector<1x1024xf32>
    %7 = vector.broadcast %6 : vector<1x1024xf32> to vector<16x1024xf32>
    %8 = arith.addf %5, %7 : vector<16x1024xf32>
    %cst_6 = arith.constant 0.000000e+00 : f32
    %9 = vector.broadcast %cst_6 : f32 to vector<16x1024xf32>
    %10 = arith.maximumf %8, %9 : vector<16x1024xf32>
    %c0_7 = arith.constant 0 : index
    %c0_8 = arith.constant 0 : index
    %11 = vector.load %arg8[%c0_7, %c0_8] : memref<16x768xf32, #tpu.memory_space<vmem>>, vector<16x768xf32>
    %12 = arith.truncf %10 : vector<16x1024xf32> to vector<16x1024xbf16>
    %c0_9 = arith.constant 0 : index
    %c0_10 = arith.constant 0 : index
    %13 = vector.load %arg5[%c0_9, %c0_10] : memref<1024x768xbf16, #tpu.memory_space<vmem>>, vector<1024x768xbf16>
    %cst_11 = arith.constant dense<0.000000e+00> : vector<16x768xf32>
    %14 = tpu.matmul %12, %13, %cst_11 {dimension_numbers = #tpu.dot_dimension_numbers<[1], [0], [0], [1], [0, 0, 1, 1], [], []>} : vector<16x1024xbf16>, vector<1024x768xbf16>, vector<16x768xf32> -> vector<16x768xf32>
    %15 = arith.addf %11, %14 : vector<16x768xf32>
    %c0_12 = arith.constant 0 : index
    %c0_13 = arith.constant 0 : index
    %16 = vector.load %arg8[%c0_12, %c0_13] : memref<16x768xf32, #tpu.memory_space<vmem>>, vector<16x768xf32>
    tpu.vector_store %arg8[%c0_12, %c0_13], %15 {strides = array<i32>} : memref<16x768xf32, #tpu.memory_space<vmem>>, vector<16x768xf32>,
    %c2_i32 = arith.constant 2 : i32
    %17 = arith.cmpi eq, %arg1, %c2_i32 : i32
    %18 = arith.extui %17 : i1 to i32
    %c0_i32_14 = arith.constant 0 : i32
    %19 = arith.cmpi ne, %18, %c0_i32_14 : i32
    scf.if %19 {
      %c0_15 = arith.constant 0 : index
      %c0_16 = arith.constant 0 : index
      %20 = vector.load %arg8[%c0_15, %c0_16] : memref<16x768xf32, #tpu.memory_space<vmem>>, vector<16x768xf32>
      %c0_17 = arith.constant 0 : index
      %c0_18 = arith.constant 0 : index
      %21 = vector.load %arg6[%c0_17, %c0_18] : memref<1x768xf32, #tpu.memory_space<vmem>>, vector<1x768xf32>
      %22 = vector.broadcast %21 : vector<1x768xf32> to vector<16x768xf32>
      %23 = arith.addf %20, %22 : vector<16x768xf32>
      %c0_19 = arith.constant 0 : index
      %c0_20 = arith.constant 0 : index
      %24 = vector.load %arg7[%c0_19, %c0_20] : memref<16x768xf32, #tpu.memory_space<vmem>>, vector<16x768xf32>
      tpu.vector_store %arg7[%c0_19, %c0_20], %23 {strides = array<i32>} : memref<16x768xf32, #tpu.memory_space<vmem>>, vector<16x768xf32>,
    } else {
    }
    return
  }
  func.func @transform_0(%arg0: i32, %arg1: i32) -> (i32, i32) {
    %c0_i32 = arith.constant 0 : i32
    %c0_i32_0 = arith.constant 0 : i32
    return %arg0, %c0_i32 : i32, i32
  }
  func.func @transform_1(%arg0: i32, %arg1: i32) -> (i32, i32) {
    %c0_i32 = arith.constant 0 : i32
    %c0_i32_0 = arith.constant 0 : i32
    return %c0_i32, %arg1 : i32, i32
  }
  func.func @transform_2(%arg0: i32, %arg1: i32) -> (i32, i32) {
    %c0_i32 = arith.constant 0 : i32
    %c0_i32_0 = arith.constant 0 : i32
    return %c0_i32, %arg1 : i32, i32
  }
  func.func @transform_3(%arg0: i32, %arg1: i32) -> (i32, i32) {
    %c0_i32 = arith.constant 0 : i32
    %c0_i32_0 = arith.constant 0 : i32
    return %arg1, %c0_i32 : i32, i32
  }
  func.func @transform_4(%arg0: i32, %arg1: i32) -> (i32, i32) {
    %c0_i32 = arith.constant 0 : i32
    %c0_i32_0 = arith.constant 0 : i32
    %c0_i32_1 = arith.constant 0 : i32
    return %c0_i32, %c0_i32_0 : i32, i32
  }
  func.func @transform_5(%arg0: i32, %arg1: i32) -> (i32, i32) {
    %c0_i32 = arith.constant 0 : i32
    %c0_i32_0 = arith.constant 0 : i32
    return %arg0, %c0_i32 : i32, i32
  }
}

</mosaic_0001>

<bundles_post_ra>
// kernel: tpu_custom_call.1
= control target key start
LH: loop header
LB: loop body
LE: loop exit
PB: predicated region body
PF: predicated region fallthrough
CT: control target
= control target key end

     0   :  { %s12968_s0 = inlined_call_operand.hbm [shape: bf16[16,768], index: 0, kind: input, shape index: {}]   ;;  %s12969_s1 = inlined_call_operand.hbm [shape: bf16[768,3072], index: 1, kind: input, shape index: {}]   ;;  %s12970_s2 = inlined_call_operand.hbm [shape: f32[1,3072], index: 2, kind: input, shape index: {}]   ;;  %s12971_s3 = inlined_call_operand.hbm [shape: bf16[3072,768], index: 3, kind: input, shape index: {}]   ;;  %s12972_s4 = inlined_call_operand.hbm [shape: f32[1,768], index: 4, kind: input, shape index: {}]   ;;  %s12973_s5 = inlined_call_operand.hbm [shape: f32[16,768], index: 5, kind: output, shape index: {}]  }
   0x1   :  { %12978 = sst [smem:[#allocation26_spill]] %s12969_s1 }
   0x2   :  { %12979 = sst [smem:[#allocation27_spill]] %s12972_s4 }
   0x3   :  { %12980 = sst [smem:[#allocation28_spill]] %s12973_s5 }
   0x4   :  { %10 = vsyncpa [#allocation4], 0 }
   0x5   :  { %11 = vsyncpa [#allocation7], 0 }
   0x6   :  { %13 = vsyncpa [#allocation7 + $0x1], 0 }
   0x7   :  { %14 = vsyncpa [#allocation10], 0 }
   0x8   :  { %16 = vsyncpa [#allocation10 + $0x1], 0 }
   0x9   :  { %17 = vsyncpa [#allocation5], 0  ;;  %s10939_s18 = smov 0   ;;  %s10941_s19 = smov 0  }
   0xa   :  { %s10943_s20 = smov 0   ;;  %s10945_s21 = smov 0  }
   0xb   :  { %s10947_s22 = smov 0   ;;  %s10949_s23 = smov 0  }
   0xc LB: > { %s10968_s24 = sadd.s32 4294967295, %s10896_s23   ;;  %s68_s25 = sadd.s32 1, %s10884_s20  ;;  %s10896_s23 = sphi %s10949_s23, %s23_s23   ;;  %s10892_s22 = sphi %s10947_s22, %s13012_s22   ;;  %s10888_s21 = sphi %s10945_s21, %s13011_s21   ;;  %s10884_s20 = sphi %s10943_s20, %s13010_s20   ;;  %s10880_s19 = sphi %s10941_s19, %s13009_s19   ;;  %s10876_s18 = sphi %s10939_s18, %s13008_s18  }
   0xd   : > { %p75_p0 = scmp.ne.s32.totalorder %s10884_s20, %s10880_s19  ;;  %p76_p1 = scmp.eq.s32.totalorder %s10896_s23, 0 }
   0xe   : > { %p81_p2 = scmp.ne.s32.totalorder %s10880_s19, %s10876_s18  ;;  %p82_p3 = scmp.eq.s32.totalorder %s10968_s24, 0 }
   0xf   : > { %p10976_p4 = por %p76_p1, %p75_p0  ;;  %p6653_p5 = scmp.ge.s32.totalorder %s10896_s23, 1 }
  0x10   : > { %p10983_p6 = por %p82_p3, %p81_p2  ;;  %p191_p7 = scmp.lt.s32.totalorder %s10896_s23, 4 }
  0x11   : > { %s12983_s4 = sld [smem:[#allocation27_spill]]  ;;  %s10898_s7 = smov [#allocation11]  }
  0x12   : > { %p10991_p8 = pnand %p6653_p5, %p191_p7  ;;  %s223_s8 = sshll.u32 %s10898_s7, 4  ;;  %s224_s8 = int_to_ptr.vmem [resolvable:$true] %s223_s8 }
  0x13   : > { %p10586_p10 = scmp.lt.s32.totalorder %s10896_s23, 3  ;;  %s32_s11 = sadd.s32 1, %s10892_s22 }
  0x14   : > { %p10567_p9 = pneg %p10991_p8  ;;  %p33_p13 = scmp.ge.s32.totalorder %s32_s11, 3 }
  0x15   : > { %p11006_p12 = pnand %p10586_p10, %p10976_p4  ;;  %s12975_s12 = sand.u32 1, %s10896_s23  }
  0x16   : > { %p11000_p11 = pnand %p10567_p9, %p82_p3  ;;  %s236_s13 = sand.u32 1, %s10884_s20  }
  0x17   : > { %s221_s30 = sshll.u32 %s12983_s4, 4  ;;  %s13014_s11 = smov (%p33_p13, %s32_s11), 0  ;;  %s222_s30 = int_to_ptr.hbm [resolvable:$true] %s221_s30 }
  0x18   : > { %10573 = dma.hbm_to_vmem [thread:$0]  (!%p11000_p11), %s222_s30, 96, %s224_s8, [#allocation10]  }
  0x19   : > { %12987 = sst [smem:[#allocation18_spill]] %s13014_s11  ;;  %s11017_s14 = smul.u32 3072, %s236_s13 }
  0x1a   : > { %s65_s15 = ssub.s32 %s10892_s22, %s13014_s11  ;;  %s9770_s16 = sshll.u32 %s10892_s22, 5 }
  0x1b   : > { %p66_p0 = scmp.eq.s32.totalorder %s65_s15, 0  ;;  %s12988_s1 = sld [smem:[#allocation26_spill]] }
  0x1c   : > { %s238_s28 = scalar_lea.vmem [#allocation6], %s11017_s14  ;;  %s235_s8 = scalar_lea.sflag [#allocation7], %s12975_s12 }
  0x1d   : > { %s246_s29 = sshll.u32 %s238_s28, 4  ;;  %s10899_s4 = smov 1536   ;;  %s247_s29 = int_to_ptr.vmem [resolvable:$true] %s246_s29 }
  0x1e   : > { %s11029_s30 = scalar_select %p66_p0, %s10884_s20, %s68_s25  }
  0x1f   : > { %s10900_s11 = smov 512   ;;  %s10901_s5 = smov 32  }
  0x20   : > { %12989 = sst [smem:[#allocation19_spill]] %s11029_s30  ;;  %s10902_s25 = smov [#allocation3]  }
  0x21   : > { %s243_s26 = scalar_lea.hbm %s12988_s1, %s9770_s16  ;;  %s206_s16 = sshll.u32 %s12968_s0, 4  ;;  %s207_s16 = int_to_ptr.hbm [resolvable:$true] %s206_s16 }
  0x22   : > { %s244_s7 = sshll.u32 %s243_s26, 4  ;;  %s208_s18 = sshll.u32 %s10902_s25, 4  ;;  %s245_s7 = int_to_ptr.hbm [resolvable:$true] %s244_s7  ;;  %s209_s18 = int_to_ptr.vmem [resolvable:$true] %s208_s18 }
  0x23   : > { %10577 = dma.hbm_to_vmem [thread:$0]  (!%p11006_p12), %s245_s7, 49152, %s247_s29, %s235_s8, %s10899_s4, %s10900_s11, %s10901_s5  }
  0x24   : > { %s6659_s26 = sshll.u32 %s236_s13, 3  ;;  %s10903_s28 = smov 384  }
  0x25   : > { %s10904_s1 = smov 24   ;;  %s6660_s12 = sshll.u32 %s10892_s22, 3 }
  0x26   : > { %10570 = dma.hbm_to_vmem [thread:$0]  (!%p11000_p11), %s207_s16, 768, %s209_s18, [#allocation4], %s10903_s28, %s10903_s28, %s10904_s1  }
  0x27   : > { %s264_s5 = scalar_lea.hbm %s12970_s2, %s6660_s12  ;;  %s260_s11 = scalar_lea.vmem [#allocation8], %s6659_s26 }
  0x28   : > { %s268_s29 = sshll.u32 %s260_s11, 4  ;;  %s266_s7 = sshll.u32 %s264_s5, 4  ;;  %s269_s29 = int_to_ptr.vmem [resolvable:$true] %s268_s29  ;;  %s267_s7 = int_to_ptr.hbm [resolvable:$true] %s266_s7 }
  0x29   : > { %10580 = dma.hbm_to_vmem [thread:$0]  (!%p11006_p12), %s267_s7, 128, %s269_s29, %s235_s8  }
  0x2a   : > { %s10547_s15 = smul.u32 3072, %s10892_s22  ;;  %s279_s13 = scalar_lea.vmem [#allocation9], %s11017_s14 }
  0x2b   : > { %s288_s17 = sshll.u32 %s279_s13, 4  ;;  %s12990_s30 = sand.u32 1, %s10896_s23   ;;  %s289_s17 = int_to_ptr.vmem [resolvable:$true] %s288_s17 }
  0x2c   : > { %s285_s16 = scalar_lea.hbm %s12971_s3, %s10547_s15  ;;  %s276_s4 = scalar_lea.sflag [#allocation10], %s12990_s30 }
  0x2d   : > { %s286_s18 = sshll.u32 %s285_s16, 4  ;;  %300 = sbr.rel (%p10991_p8) target bundleno = 1175 (0x497), region = 40  ;;  %s287_s18 = int_to_ptr.hbm [resolvable:$true] %s286_s18 }
  0x2e   : > { %10583 = dma.hbm_to_vmem [thread:$0]  (!%p11006_p12), %s287_s18, 49152, %s289_s17, %s276_s4, %s10903_s28, %s10903_s28, %s10904_s1  }
  0x32   : > { %10855 = dma.done.wait (%p82_p3), [#allocation4], 768  }
  0x33   : > { %10857 = vsyncadd (%p82_p3), [#allocation4], 4294966528  ;;  %s307_s12 = sand.u32 1, %s10968_s24   ;;  %s309_s14 = sand.u32 1, %s10880_s19  }
  0x34   : > { %s10548_s8 = smul.u32 3072, %s309_s14  ;;  %s308_s26 = scalar_lea.sflag [#allocation7], %s307_s12 }
  0x36   : > { %s11063_s5 = scalar_lea.vmem [#allocation6], %s10548_s8 }
  0x37   : > { %10859 = dma.done.wait (%p10983_p6), %s308_s26, 49280  }
  0x38   : > { %10861 = vsyncadd (%p10983_p6), %s308_s26, 4294918016  ;;  %s6666_s1 = sshll.u32 %s309_s14, 3  ;;  %s328_s10 = scalar_lea.sflag [#allocation10], %s307_s12 }
  0x39   : > { %s11069_s6 = scalar_lea.vmem [#allocation8], %s6666_s1  ;;  %s11071_s28 = scalar_lea.vmem [#allocation9], %s10548_s8 }
  0x3a   : > { %10863 = dma.done.wait (%p10983_p6), %s328_s10, 49152  }
  0x3b   : > { %10865 = vsyncadd (%p10983_p6), %s328_s10, 4294918144 }
  0x3c   : > { %10867 = dma.done.wait (%p82_p3), [#allocation10], 96  }
  0x3d   : > { %10869 = vsyncadd (%p82_p3), [#allocation10], 4294967200  ;;  %p6668_p1 = scmp.ne.s32.totalorder %s10888_s21, 0 }
  0x3f   : > { %377 = sbr.rel (%p6668_p1) target bundleno = 81 (0x51), region = 64 }
  0x44   : > { %v10905_v0 = vmov 0.0  }
  0x45   : > { %378 = vst [vmem:[#allocation2 + $0x30] sm:$0xff] %v10905_v0 }
  0x46   : > { %379 = vst [vmem:[#allocation2] sm:$0xff] %v10905_v0 }
  0x47   : > { %380 = vst [vmem:[#allocation2 + $0x58] sm:$0xff] %v10905_v0 }
  0x48   : > { %381 = vst [vmem:[#allocation2 + $0x18] sm:$0xff] %v10905_v0 }
  0x49   : > { %382 = vst [vmem:[#allocation2 + $0x50] sm:$0xff] %v10905_v0 }
  0x4a   : > { %383 = vst [vmem:[#allocation2 + $0x20] sm:$0xff] %v10905_v0 }
  0x4b   : > { %384 = vst [vmem:[#allocation2 + $0x8] sm:$0xff] %v10905_v0 }
  0x4c   : > { %385 = vst [vmem:[#allocation2 + $0x38] sm:$0xff] %v10905_v0 }
  0x4d   : > { %386 = vst [vmem:[#allocation2 + $0x28] sm:$0xff] %v10905_v0 }
  0x4e   : > { %387 = vst [vmem:[#allocation2 + $0x48] sm:$0xff] %v10905_v0 }
  0x4f   : > { %388 = vst [vmem:[#allocation2 + $0x10] sm:$0xff] %v10905_v0 }
  0x50   : > { %389 = vst [vmem:[#allocation2 + $0x40] sm:$0xff] %v10905_v0 }
  0x51 PF: > { %v6919_v1 = vld [vmem:[%s11063_s5 + $0x1c0] sm:$0xf]  ;;  %p9765_p2 = scmp.ne.s32.totalorder %s10888_s21, 2 }
  0x52   : > { %v9837_v2 = vld [vmem:[%s11063_s5 + $0x1dc] sm:$0xf0] }
  0x53   : > { %v7175_v3 = vld [vmem:[%s11063_s5 + $0x3c0] sm:$0xf]  ;;  %v6920_v4 = vor.u32 %v9837_v2, %v6919_v1 }
  0x54   : > { %v9901_v5 = vld [vmem:[%s11063_s5 + $0x3dc] sm:$0xf0] }
  0x55   : > { %v7431_v6 = vld [vmem:[%s11063_s5 + $0x5c0] sm:$0xf]  ;;  %v7176_v8 = vor.u32 %v9901_v5, %v7175_v3  ;;  %2748 = vmatpush.bf16.msra.mxu0 %v6920_v4 }
  0x56   : > { %v9965_v7 = vld [vmem:[%s11063_s5 + $0x5dc] sm:$0xf0] }
  0x57   : > { %v7432_v9 = vor.u32 %v9965_v7, %v7431_v6  ;;  %v7687_v10 = vld [vmem:[%s11063_s5 + $0x7c0] sm:$0xf]  ;;  %2762 = vmatpush.bf16.msra.mxu1 %v7176_v8 }
  0x58   : > { %v10029_v11 = vld [vmem:[%s11063_s5 + $0x7dc] sm:$0xf0] }
  0x59   : > { %v6887_v12 = vld [vmem:[%s11063_s5 + $0x180] sm:$0xf]  ;;  %v7688_v13 = vor.u32 %v10029_v11, %v7687_v10  ;;  %2776 = vmatpush.bf16.msra.mxu2 %v7432_v9 }
  0x5a   : > { %v9829_v14 = vld [vmem:[%s11063_s5 + $0x19c] sm:$0xf0] }
  0x5b   : > { %v7143_v15 = vld [vmem:[%s11063_s5 + $0x380] sm:$0xf]  ;;  %v6888_v17 = vor.u32 %v9829_v14, %v6887_v12  ;;  %2790 = vmatpush.bf16.msra.mxu3 %v7688_v13 }
  0x5c   : > { %v9893_v16 = vld [vmem:[%s11063_s5 + $0x39c] sm:$0xf0] }
  0x5d   : > { %v7144_v18 = vor.u32 %v9893_v16, %v7143_v15  ;;  %v7399_v19 = vld [vmem:[%s11063_s5 + $0x580] sm:$0xf]  ;;  %2749 = vmatpush.bf16.msra.mxu0 %v6888_v17 }
  0x5e   : > { %v9957_v20 = vld [vmem:[%s11063_s5 + $0x59c] sm:$0xf0] }
  0x5f   : > { %v7655_v21 = vld [vmem:[%s11063_s5 + $0x780] sm:$0xf]  ;;  %v7400_v22 = vor.u32 %v9957_v20, %v7399_v19  ;;  %2763 = vmatpush.bf16.msra.mxu1 %v7144_v18 }
  0x60   : > { %v10021_v23 = vld [vmem:[%s11063_s5 + $0x79c] sm:$0xf0] }
  0x61   : > { %v6855_v24 = vld [vmem:[%s11063_s5 + $0x140] sm:$0xf]  ;;  %v7656_v26 = vor.u32 %v10021_v23, %v7655_v21  ;;  %2777 = vmatpush.bf16.msra.mxu2 %v7400_v22 }
  0x62   : > { %v9821_v25 = vld [vmem:[%s11063_s5 + $0x15c] sm:$0xf0] }
  0x63   : > { %v7111_v27 = vld [vmem:[%s11063_s5 + $0x340] sm:$0xf]  ;;  %v6856_v30 = vor.u32 %v9821_v25, %v6855_v24  ;;  %2791 = vmatpush.bf16.msra.mxu3 %v7656_v26 }
  0x64   : > { %v9885_v28 = vld [vmem:[%s11063_s5 + $0x35c] sm:$0xf0] }
  0x65   : > { %v7367_v29 = vld [vmem:[%s11063_s5 + $0x540] sm:$0xf]  ;;  %v7112_v34 = vor.u32 %v9885_v28, %v7111_v27  ;;  %2750 = vmatpush.bf16.msra.mxu0 %v6856_v30 }
  0x66   : > { %v9949_v31 = vld [vmem:[%s11063_s5 + $0x55c] sm:$0xf0] }
  0x67   : > { %v7623_v32 = vld [vmem:[%s11063_s5 + $0x740] sm:$0xf]  ;;  %v7368_v35 = vor.u32 %v9949_v31, %v7367_v29  ;;  %2764 = vmatpush.bf16.msra.mxu1 %v7112_v34  ;;  %v9833_v34 = vld [vmem:[%s11063_s5 + $0x1c4] sm:$0xf] }
  0x68   : > { %v10013_v33 = vld [vmem:[%s11063_s5 + $0x75c] sm:$0xf0] }
  0x69   : > { %v6823_v36 = vld [vmem:[%s11063_s5 + $0x100] sm:$0xf]  ;;  %v7624_v39 = vor.u32 %v10013_v33, %v7623_v32  ;;  %2778 = vmatpush.bf16.msra.mxu2 %v7368_v35  ;;  %v6921_v35 = vld [vmem:[%s11063_s5 + $0x1e0] sm:$0xf0] }
  0x6a   : > { %v9813_v37 = vld [vmem:[%s11063_s5 + $0x11c] sm:$0xf0] }
  0x6b   : > { %v7079_v38 = vld [vmem:[%s11063_s5 + $0x300] sm:$0xf]  ;;  %v6824_v45 = vor.u32 %v9813_v37, %v6823_v36  ;;  %2792 = vmatpush.bf16.msra.mxu3 %v7624_v39  ;;  %v7177_v39 = vld [vmem:[%s11063_s5 + $0x3e0] sm:$0xf0] }
  0x6c   : > { %v9877_v40 = vld [vmem:[%s11063_s5 + $0x31c] sm:$0xf0] }
  0x6d   : > { %v7335_v41 = vld [vmem:[%s11063_s5 + $0x500] sm:$0xf]  ;;  %v7080_v46 = vor.u32 %v9877_v40, %v7079_v38  ;;  %2751 = vmatpush.bf16.msra.mxu0 %v6824_v45  ;;  %v9897_v38 = vld [vmem:[%s11063_s5 + $0x3c4] sm:$0xf] }
  0x6e   : > { %v9941_v42 = vld [vmem:[%s11063_s5 + $0x51c] sm:$0xf0] }
  0x6f   : > { %v7591_v43 = vld [vmem:[%s11063_s5 + $0x700] sm:$0xf]  ;;  %v7336_v47 = vor.u32 %v9941_v42, %v7335_v41  ;;  %2765 = vmatpush.bf16.msra.mxu1 %v7080_v46 }
  0x70   : > { %v10005_v44 = vld [vmem:[%s11063_s5 + $0x71c] sm:$0xf0] }
  0x71   : > { %v6791_v48 = vld [vmem:[%s11063_s5 + $0xc0] sm:$0xf]  ;;  %v7592_v51 = vor.u32 %v10005_v44, %v7591_v43  ;;  %2779 = vmatpush.bf16.msra.mxu2 %v7336_v47  ;;  %v6924_v44 = vor.u32 %v9833_v34, %v6921_v35  ;;  %v6793_v34 = vld [vmem:[%s11063_s5 + $0xe0] sm:$0xf0] }
  0x72   : > { %v9805_v49 = vld [vmem:[%s11063_s5 + $0xdc] sm:$0xf0]  ;;  %v9865_v35 = vld [vmem:[%s11063_s5 + $0x2c4] sm:$0xf] }
  0x73   : > { %v7047_v50 = vld [vmem:[%s11063_s5 + $0x2c0] sm:$0xf]  ;;  %v6792_v57 = vor.u32 %v9805_v49, %v6791_v48  ;;  %2793 = vmatpush.bf16.msra.mxu3 %v7592_v51  ;;  %v7180_v48 = vor.u32 %v9897_v38, %v7177_v39  ;;  %v9825_v49 = vld [vmem:[%s11063_s5 + $0x184] sm:$0xf] }
  0x74   : > { %v9869_v52 = vld [vmem:[%s11063_s5 + $0x2dc] sm:$0xf0]  ;;  %v9889_v51 = vld [vmem:[%s11063_s5 + $0x384] sm:$0xf] }
  0x75   : > { %v7303_v53 = vld [vmem:[%s11063_s5 + $0x4c0] sm:$0xf]  ;;  %v7048_v58 = vor.u32 %v9869_v52, %v7047_v50  ;;  %2752 = vmatpush.bf16.msra.mxu0 %v6792_v57  ;;  %v6889_v50 = vld [vmem:[%s11063_s5 + $0x1a0] sm:$0xf0] }
  0x76   : > { %v9933_v54 = vld [vmem:[%s11063_s5 + $0x4dc] sm:$0xf0]  ;;  %v7145_v52 = vld [vmem:[%s11063_s5 + $0x3a0] sm:$0xf0] }
  0x77   : > { %v7559_v55 = vld [vmem:[%s11063_s5 + $0x6c0] sm:$0xf]  ;;  %v7304_v59 = vor.u32 %v9933_v54, %v7303_v53  ;;  %2766 = vmatpush.bf16.msra.mxu1 %v7048_v58  ;;  %v6671_v53 = vld [vmem:[#allocation3] sm:$0xf]  ;;  %v9774_v54 = vld [vmem:[#allocation3 + $0x14] sm:$0xf0] }
  0x78   : > { %v9997_v56 = vld [vmem:[%s11063_s5 + $0x6dc] sm:$0xf0]  ;;  %v11164_v58 = vor.u32 %v9774_v54, %v6671_v53 }
  0x79   : > { %v6759_v60 = vld [vmem:[%s11063_s5 + $0x80] sm:$0xf]  ;;  %v7560_v63 = vor.u32 %v9997_v56, %v7559_v55  ;;  %2780 = vmatpush.bf16.msra.mxu2 %v7304_v59 }
  0x7a   : > { %v9797_v61 = vld [vmem:[%s11063_s5 + $0x9c] sm:$0xf0] }
  0x7b   : > { %v7015_v62 = vld [vmem:[%s11063_s5 + $0x280] sm:$0xf]  ;;  %v6760_v5 = vor.u32 %v9797_v61, %v6759_v60  ;;  %2794 = vmatpush.bf16.msra.mxu3 %v7560_v63  ;;  %v6892_v60 = vor.u32 %v9825_v49, %v6889_v50  ;;  %v9817_v63 = vld [vmem:[%s11063_s5 + $0x144] sm:$0xf] }
  0x7c   : > { %v9861_v0 = vld [vmem:[%s11063_s5 + $0x29c] sm:$0xf0] }
  0x7d   : > { %v7271_v1 = vld [vmem:[%s11063_s5 + $0x480] sm:$0xf]  ;;  %v7016_v6 = vor.u32 %v9861_v0, %v7015_v62  ;;  %2753 = vmatpush.bf16.msra.mxu0 %v6760_v5  ;;  %v7148_v0 = vor.u32 %v9889_v51, %v7145_v52  ;;  %v7113_v5 = vld [vmem:[%s11063_s5 + $0x360] sm:$0xf0] }
  0x7e   : > { %v9925_v2 = vld [vmem:[%s11063_s5 + $0x49c] sm:$0xf0] }
  0x7f   : > { %v7527_v3 = vld [vmem:[%s11063_s5 + $0x680] sm:$0xf]  ;;  %v7272_v7 = vor.u32 %v9925_v2, %v7271_v1  ;;  %2767 = vmatpush.bf16.msra.mxu1 %v7016_v6  ;;  %v6857_v1 = vld [vmem:[%s11063_s5 + $0x160] sm:$0xf0]  ;;  %v9771_v2 = vld [vmem:[#allocation3 + $0x4] sm:$0xf] }
  0x80   : > { %v9989_v4 = vld [vmem:[%s11063_s5 + $0x69c] sm:$0xf0] }
  0x81   : > { %v6727_v8 = vld [vmem:[%s11063_s5 + $0x40] sm:$0xf]  ;;  %v7528_v11 = vor.u32 %v9989_v4, %v7527_v3  ;;  %2781 = vmatpush.bf16.msra.mxu2 %v7272_v7  ;;  %v6673_v3 = vld [vmem:[#allocation3 + $0x18] sm:$0xf0]  ;;  %v9881_v4 = vld [vmem:[%s11063_s5 + $0x344] sm:$0xf] }
  0x82   : > { %v9789_v9 = vld [vmem:[%s11063_s5 + $0x5c] sm:$0xf0]  ;;  %v11174_v7 = vor.u32 %v9771_v2, %v6673_v3 }
  0x83   : > { %v6983_v10 = vld [vmem:[%s11063_s5 + $0x240] sm:$0xf]  ;;  %v6728_v17 = vor.u32 %v9789_v9, %v6727_v8  ;;  %2795 = vmatpush.bf16.msra.mxu3 %v7528_v11 }
  0x84   : > { %v9853_v12 = vld [vmem:[%s11063_s5 + $0x25c] sm:$0xf0] }
  0x85   : > { %v7239_v13 = vld [vmem:[%s11063_s5 + $0x440] sm:$0xf]  ;;  %v6984_v20 = vor.u32 %v9853_v12, %v6983_v10  ;;  %2754 = vmatpush.bf16.msra.mxu0 %v6728_v17  ;;  %v7116_v17 = vor.u32 %v9881_v4, %v7113_v5  ;;  %v9777_v5 = vld [vmem:[%s11063_s5 + $0x4] sm:$0xf] }
  0x86   : > { %v9917_v14 = vld [vmem:[%s11063_s5 + $0x45c] sm:$0xf0] }
  0x87   : > { %v7495_v15 = vld [vmem:[%s11063_s5 + $0x640] sm:$0xf]  ;;  %v7240_v21 = vor.u32 %v9917_v14, %v7239_v13  ;;  %2768 = vmatpush.bf16.msra.mxu1 %v6984_v20  ;;  %v6860_v13 = vor.u32 %v9817_v63, %v6857_v1  ;;  %v9809_v14 = vld [vmem:[%s11063_s5 + $0x104] sm:$0xf]  ;;  %v6681_v20 = vld [vmem:[#allocation3 + $0x20] sm:$0xf0] }
  0x88   : > { %v9981_v16 = vld [vmem:[%s11063_s5 + $0x65c] sm:$0xf0] }
  0x89   : > { %v6695_v18 = vld [vmem:[%s11063_s5] sm:$0xf]  ;;  %v7496_v25 = vor.u32 %v9981_v16, %v7495_v15  ;;  %2782 = vmatpush.bf16.msra.mxu2 %v7240_v21  ;;  %v6825_v15 = vld [vmem:[%s11063_s5 + $0x120] sm:$0xf0]  ;;  %v6679_v16 = vld [vmem:[#allocation3 + $0x8] sm:$0xf] }
  0x8a   : > { %v9781_v19 = vld [vmem:[%s11063_s5 + $0x1c] sm:$0xf0]  ;;  %v9873_v21 = vld [vmem:[%s11063_s5 + $0x304] sm:$0xf] }
  0x8b   : > { %v6951_v22 = vld [vmem:[%s11063_s5 + $0x200] sm:$0xf]  ;;  %v6696_v32 = vor.u32 %v9781_v19, %v6695_v18  ;;  %2796 = vmatpush.bf16.msra.mxu3 %v7496_v25  ;;  %v9775_v18 = vld [vmem:[#allocation3 + $0x1c] sm:$0xf0]  ;;  %v9772_v19 = vld [vmem:[#allocation3 + $0xc] sm:$0xf] }
  0x8c   : > { %v9845_v23 = vld [vmem:[%s11063_s5 + $0x21c] sm:$0xf0] }
  0x8d   : > { %v7207_v24 = vld [vmem:[%s11063_s5 + $0x400] sm:$0xf]  ;;  %v6952_v36 = vor.u32 %v9845_v23, %v6951_v22  ;;  %2755 = vmatpush.bf16.msra.mxu0 %v6696_v32  ;;  %v7081_v22 = vld [vmem:[%s11063_s5 + $0x320] sm:$0xf0]  ;;  %v11184_v23 = vor.u32 %v9775_v18, %v6679_v16 }
  0x8e   : > { %v9909_v26 = vld [vmem:[%s11063_s5 + $0x41c] sm:$0xf0]  ;;  %v10089_v16 = vld [vmem:[%s11063_s5 + $0x9c4] sm:$0xf] }
  0x8f   : > { %v7463_v27 = vld [vmem:[%s11063_s5 + $0x600] sm:$0xf]  ;;  %v7208_v37 = vor.u32 %v9909_v26, %v7207_v24  ;;  %2769 = vmatpush.bf16.msra.mxu1 %v6952_v36  ;;  %v11186_v24 = vor.u32 %v9772_v19, %v6681_v20  ;;  %v7049_v36 = vld [vmem:[%s11063_s5 + $0x2e0] sm:$0xf0] }
  0x90   : > { %v9973_v28 = vld [vmem:[%s11063_s5 + $0x61c] sm:$0xf0]  ;;  %2756 = vmatmul.bf16.vlgmr.msra.gmra.mxu0 %v11164_v58  ;;  %v10153_v18 = vld [vmem:[%s11063_s5 + $0xbc4] sm:$0xf] }
  0x91   : > { %v7943_v29 = vld [vmem:[%s11063_s5 + $0x9c0] sm:$0xf]  ;;  %v7464_v40 = vor.u32 %v9973_v28, %v7463_v27  ;;  %2783 = vmatpush.bf16.msra.mxu2 %v7208_v37  ;;  %v6828_v27 = vor.u32 %v9809_v14, %v6825_v15  ;;  %v7689_v14 = vld [vmem:[%s11063_s5 + $0x7e0] sm:$0xf0] }
  0x92   : > { %v10093_v30 = vld [vmem:[%s11063_s5 + $0x9dc] sm:$0xf0]  ;;  %2770 = vmatmul.bf16.vlgmr.msra.gmra.mxu1 %v11174_v7 }
  0x93   : > { %v8199_v31 = vld [vmem:[%s11063_s5 + $0xbc0] sm:$0xf]  ;;  %v7944_v41 = vor.u32 %v10093_v30, %v7943_v29  ;;  %2797 = vmatpush.bf16.msra.mxu3 %v7464_v40 }
  0x94   : > { %v10157_v33 = vld [vmem:[%s11063_s5 + $0xbdc] sm:$0xf0]  ;;  %2784 = vmatmul.bf16.vlgmr.msra.gmra.mxu2 %v11184_v23 }
  0x95   : > { %v7911_v42 = vld [vmem:[%s11063_s5 + $0x980] sm:$0xf]  ;;  %v8200_v43 = vor.u32 %v10157_v33, %v8199_v31  ;;  %2804 = vmatpush.bf16.msrb.mxu0 %v7944_v41  ;;  %2832 = vmatpush.bf16.msrb.mxu2 %v6924_v44  ;;  %v7084_v31 = vor.u32 %v9873_v21, %v7081_v22  ;;  %v9801_v33 = vld [vmem:[%s11063_s5 + $0xc4] sm:$0xf] }
  0x96   : > { %v10085_v45 = vld [vmem:[%s11063_s5 + $0x99c] sm:$0xf0]  ;;  %2798 = vmatmul.bf16.vlgmr.msra.gmra.mxu3 %v11186_v24  ;;  %v6796_v39 = vor.u32 %v9801_v33, %v6793_v34  ;;  %v8201_v21 = vld [vmem:[%s11063_s5 + $0xbe0] sm:$0xf0] }
  0x97   : > { %v8167_v46 = vld [vmem:[%s11063_s5 + $0xb80] sm:$0xf]  ;;  %v7912_v55 = vor.u32 %v10085_v45, %v7911_v42  ;;  %2818 = vmatpush.bf16.msrb.mxu1 %v8200_v43  ;;  %2846 = vmatpush.bf16.msrb.mxu3 %v7180_v48  ;;  %v7052_v43 = vor.u32 %v9865_v35, %v7049_v36  ;;  %v9793_v45 = vld [vmem:[%s11063_s5 + $0x84] sm:$0xf]  ;;  %v8204_v35 = vor.u32 %v10153_v18, %v8201_v21 }
  0x98   : > { %v10149_v47 = vld [vmem:[%s11063_s5 + $0xb9c] sm:$0xf0]  ;;  %v7017_v48 = vld [vmem:[%s11063_s5 + $0x2a0] sm:$0xf0] }
  0x99   : > { %v7879_v56 = vld [vmem:[%s11063_s5 + $0x940] sm:$0xf]  ;;  %v8168_v59 = vor.u32 %v10149_v47, %v8167_v46  ;;  %2805 = vmatpush.bf16.msrb.mxu0 %v7912_v55  ;;  %2833 = vmatpush.bf16.msrb.mxu2 %v6892_v60  ;;  %v6761_v46 = vld [vmem:[%s11063_s5 + $0xa0] sm:$0xf0] }
  0x9a   : > { %v10077_v57 = vld [vmem:[%s11063_s5 + $0x95c] sm:$0xf0]  ;;  %v9857_v47 = vld [vmem:[%s11063_s5 + $0x284] sm:$0xf]  ;;  %v6764_v51 = vor.u32 %v9793_v45, %v6761_v46 }
  0x9b   : > { %v8135_v61 = vld [vmem:[%s11063_s5 + $0xb40] sm:$0xf]  ;;  %v7880_v8 = vor.u32 %v10077_v57, %v7879_v56  ;;  %2819 = vmatpush.bf16.msrb.mxu1 %v8168_v59  ;;  %2847 = vmatpush.bf16.msrb.mxu3 %v7148_v0  ;;  %v7020_v55 = vor.u32 %v9857_v47, %v7017_v48  ;;  %v9785_v57 = vld [vmem:[%s11063_s5 + $0x44] sm:$0xf] }
  0x9c   : > { %v10141_v62 = vld [vmem:[%s11063_s5 + $0xb5c] sm:$0xf0]  ;;  %v6729_v59 = vld [vmem:[%s11063_s5 + $0x60] sm:$0xf0] }
  0x9d   : > { %v7847_v6 = vld [vmem:[%s11063_s5 + $0x900] sm:$0xf]  ;;  %v8136_v12 = vor.u32 %v10141_v62, %v8135_v61  ;;  %2806 = vmatpush.bf16.msrb.mxu0 %v7880_v8  ;;  %2834 = vmatpush.bf16.msrb.mxu2 %v6860_v13  ;;  %v9849_v60 = vld [vmem:[%s11063_s5 + $0x244] sm:$0xf]  ;;  %v6732_v3 = vor.u32 %v9785_v57, %v6729_v59 }
  0x9e   : > { %v10069_v9 = vld [vmem:[%s11063_s5 + $0x91c] sm:$0xf0]  ;;  %v6985_v61 = vld [vmem:[%s11063_s5 + $0x260] sm:$0xf0] }
  0x9f   : > { %v8103_v10 = vld [vmem:[%s11063_s5 + $0xb00] sm:$0xf]  ;;  %v7848_v25 = vor.u32 %v10069_v9, %v7847_v6  ;;  %2820 = vmatpush.bf16.msrb.mxu1 %v8136_v12  ;;  %2848 = vmatpush.bf16.msrb.mxu3 %v7116_v17  ;;  %v6697_v6 = vld [vmem:[%s11063_s5 + $0x20] sm:$0xf0]  ;;  %v6988_v8 = vor.u32 %v9849_v60, %v6985_v61 }
  0xa0   : > { %v10133_v11 = vld [vmem:[%s11063_s5 + $0xb1c] sm:$0xf0]  ;;  %v9841_v9 = vld [vmem:[%s11063_s5 + $0x204] sm:$0xf]  ;;  %v6700_v20 = vor.u32 %v9777_v5, %v6697_v6 }
  0xa1   : > { %v8104_v26 = vor.u32 %v10133_v11, %v8103_v10  ;;  %v7815_v28 = vld [vmem:[%s11063_s5 + $0x8c0] sm:$0xf]  ;;  %2807 = vmatpush.bf16.msrb.mxu0 %v7848_v25  ;;  %2835 = vmatpush.bf16.msrb.mxu2 %v6828_v27  ;;  %v6953_v10 = vld [vmem:[%s11063_s5 + $0x220] sm:$0xf0]  ;;  %v9776_v25 = vld [vmem:[#allocation3 + $0x24] sm:$0xf0] }
  0xa2   : > { %v10061_v29 = vld [vmem:[%s11063_s5 + $0x8dc] sm:$0xf0]  ;;  %v9961_v11 = vld [vmem:[%s11063_s5 + $0x5c4] sm:$0xf] }
  0xa3   : > { %v8071_v30 = vld [vmem:[%s11063_s5 + $0xac0] sm:$0xf]  ;;  %v7816_v37 = vor.u32 %v10061_v29, %v7815_v28  ;;  %2821 = vmatpush.bf16.msrb.mxu1 %v8104_v26  ;;  %2849 = vmatpush.bf16.msrb.mxu3 %v7084_v31  ;;  %v7433_v12 = vld [vmem:[%s11063_s5 + $0x5e0] sm:$0xf0]  ;;  %v6956_v26 = vor.u32 %v9841_v9, %v6953_v10  ;;  %v6689_v29 = vld [vmem:[#allocation3 + $0x28] sm:$0xf0] }
  0xa4   : > { %v10125_v32 = vld [vmem:[%s11063_s5 + $0xadc] sm:$0xf0]  ;;  %v10025_v13 = vld [vmem:[%s11063_s5 + $0x7c4] sm:$0xf]  ;;  %v7436_v27 = vor.u32 %v9961_v11, %v7433_v12 }
  0xa5   : > { %v8072_v38 = vor.u32 %v10125_v32, %v8071_v30  ;;  %v7783_v40 = vld [vmem:[%s11063_s5 + $0x880] sm:$0xf]  ;;  %2808 = vmatpush.bf16.msrb.mxu0 %v7816_v37  ;;  %2836 = vmatpush.bf16.msrb.mxu2 %v6796_v39  ;;  %v7945_v17 = vld [vmem:[%s11063_s5 + $0x9e0] sm:$0xf0]  ;;  %v7692_v30 = vor.u32 %v10025_v13, %v7689_v14 }
  0xa6   : > { %v10053_v41 = vld [vmem:[%s11063_s5 + $0x89c] sm:$0xf0]  ;;  %v9773_v28 = vld [vmem:[#allocation3 + $0x14] sm:$0xf]  ;;  %v7948_v31 = vor.u32 %v10089_v16, %v7945_v17 }
  0xa7   : > { %v8039_v42 = vld [vmem:[%s11063_s5 + $0xa80] sm:$0xf]  ;;  %v7784_v49 = vor.u32 %v10053_v41, %v7783_v40  ;;  %2822 = vmatpush.bf16.msrb.mxu1 %v8072_v38  ;;  %2850 = vmatpush.bf16.msrb.mxu3 %v7052_v43  ;;  %v9953_v32 = vld [vmem:[%s11063_s5 + $0x584] sm:$0xf]  ;;  %v11238_v40 = vor.u32 %v9773_v28, %v6689_v29 }
  0xa8   : > { %v10117_v44 = vld [vmem:[%s11063_s5 + $0xa9c] sm:$0xf0]  ;;  %v7401_v33 = vld [vmem:[%s11063_s5 + $0x5a0] sm:$0xf0] }
  0xa9   : > { %v8040_v50 = vor.u32 %v10117_v44, %v8039_v42  ;;  %v7751_v52 = vld [vmem:[%s11063_s5 + $0x840] sm:$0xf]  ;;  %2809 = vmatpush.bf16.msrb.mxu0 %v7784_v49  ;;  %2837 = vmatpush.bf16.msrb.mxu2 %v6764_v51  ;;  %v10017_v34 = vld [vmem:[%s11063_s5 + $0x784] sm:$0xf]  ;;  %v7404_v43 = vor.u32 %v9953_v32, %v7401_v33 }
  0xaa   : > { %v10045_v53 = vld [vmem:[%s11063_s5 + $0x85c] sm:$0xf0]  ;;  %v7657_v37 = vld [vmem:[%s11063_s5 + $0x7a0] sm:$0xf0] }
  0xab   : > { %v8007_v54 = vld [vmem:[%s11063_s5 + $0xa40] sm:$0xf]  ;;  %v7752_v62 = vor.u32 %v10045_v53, %v7751_v52  ;;  %2823 = vmatpush.bf16.msrb.mxu1 %v8040_v50  ;;  %2851 = vmatpush.bf16.msrb.mxu3 %v7020_v55  ;;  %v10081_v38 = vld [vmem:[%s11063_s5 + $0x984] sm:$0xf]  ;;  %v7660_v44 = vor.u32 %v10017_v34, %v7657_v37 }
  0xac   : > { %v10109_v56 = vld [vmem:[%s11063_s5 + $0xa5c] sm:$0xf0]  ;;  %v7913_v39 = vld [vmem:[%s11063_s5 + $0x9a0] sm:$0xf0] }
  0xad   : > { %v7719_v63 = vld [vmem:[%s11063_s5 + $0x800] sm:$0xf]  ;;  %v8008_v2 = vor.u32 %v10109_v56, %v8007_v54  ;;  %2810 = vmatpush.bf16.msrb.mxu0 %v7752_v62  ;;  %2838 = vmatpush.bf16.msrb.mxu2 %v6732_v3  ;;  %v10145_v41 = vld [vmem:[%s11063_s5 + $0xb84] sm:$0xf]  ;;  %v7916_v45 = vor.u32 %v10081_v38, %v7913_v39 }
  0xae   : > { %v10037_v0 = vld [vmem:[%s11063_s5 + $0x81c] sm:$0xf0]  ;;  %v8169_v42 = vld [vmem:[%s11063_s5 + $0xba0] sm:$0xf0] }
  0xaf   : > { %v7975_v1 = vld [vmem:[%s11063_s5 + $0xa00] sm:$0xf]  ;;  %v7720_v15 = vor.u32 %v10037_v0, %v7719_v63  ;;  %2824 = vmatpush.bf16.msrb.mxu1 %v8008_v2  ;;  %2852 = vmatpush.bf16.msrb.mxu3 %v6988_v8  ;;  %v9945_v46 = vld [vmem:[%s11063_s5 + $0x544] sm:$0xf]  ;;  %v8172_v49 = vor.u32 %v10145_v41, %v8169_v42 }
  0xb0   : > { %v10101_v4 = vld [vmem:[%s11063_s5 + $0xa1c] sm:$0xf0]  ;;  %v7369_v47 = vld [vmem:[%s11063_s5 + $0x560] sm:$0xf0] }
  0xb1   : > { %v7976_v19 = vor.u32 %v10101_v4, %v7975_v1  ;;  %v6687_v22 = vld [vmem:[#allocation3 + $0x10] sm:$0xf]  ;;  %2811 = vmatpush.bf16.msrb.mxu0 %v7720_v15  ;;  %2839 = vmatpush.bf16.msrb.mxu2 %v6700_v20  ;;  %v10009_v48 = vld [vmem:[%s11063_s5 + $0x744] sm:$0xf]  ;;  %v7372_v55 = vor.u32 %v9945_v46, %v7369_v47 }
  0xb2   : > { %v11233_v36 = vor.u32 %v9776_v25, %v6687_v22  ;;  %v7625_v50 = vld [vmem:[%s11063_s5 + $0x760] sm:$0xf0] }
  0xb3   : > { %2825 = vmatpush.bf16.msrb.mxu1 %v7976_v19  ;;  %2853 = vmatpush.bf16.msrb.mxu3 %v6956_v26  ;;  %v10073_v51 = vld [vmem:[%s11063_s5 + $0x944] sm:$0xf]  ;;  %v7628_v56 = vor.u32 %v10009_v48, %v7625_v50 }
  0xb4   : > { %2812 = vmatmul.bf16.vlgmr.msrb.gmra.mxu0 %v11233_v36  ;;  %v7881_v52 = vld [vmem:[%s11063_s5 + $0x960] sm:$0xf0]  ;;  %2840 = vmatmul.bf16.vlgmr.msrb.gmra.mxu2 %v11164_v58 }
  0xb5   : > { %2860 = vmatpush.bf16.msra.mxu0 %v7436_v27  ;;  %2888 = vmatpush.bf16.msra.mxu2 %v7948_v31  ;;  %v10137_v53 = vld [vmem:[%s11063_s5 + $0xb44] sm:$0xf]  ;;  %v7884_v57 = vor.u32 %v10073_v51, %v7881_v52 }
  0xb6   : > { %2826 = vmatmul.bf16.vlgmr.msrb.gmra.mxu1 %v11238_v40  ;;  %v8137_v54 = vld [vmem:[%s11063_s5 + $0xb60] sm:$0xf0]  ;;  %2854 = vmatmul.bf16.vlgmr.msrb.gmra.mxu3 %v11174_v7 }
  0xb7   : > { %2874 = vmatpush.bf16.msra.mxu1 %v7692_v30  ;;  %2902 = vmatpush.bf16.msra.mxu3 %v8204_v35  ;;  %v9937_v59 = vld [vmem:[%s11063_s5 + $0x504] sm:$0xf]  ;;  %v8140_v62 = vor.u32 %v10137_v53, %v8137_v54 }
  0xb8   : > { %v7337_v60 = vld [vmem:[%s11063_s5 + $0x520] sm:$0xf0] }
  0xb9   : > { %2861 = vmatpush.bf16.msra.mxu0 %v7404_v43  ;;  %2889 = vmatpush.bf16.msra.mxu2 %v7916_v45  ;;  %v10001_v61 = vld [vmem:[%s11063_s5 + $0x704] sm:$0xf]  ;;  %v7340_v4 = vor.u32 %v9937_v59, %v7337_v60  ;;  %v9838_v59 = vld [vmem:[%s11063_s5 + $0x1e4] sm:$0xf0] }
  0xba   : > { %v7593_v63 = vld [vmem:[%s11063_s5 + $0x720] sm:$0xf0]  ;;  %v7183_v60 = vld [vmem:[%s11063_s5 + $0x3c8] sm:$0xf] }
  0xbb   : > { %2875 = vmatpush.bf16.msra.mxu1 %v7660_v44  ;;  %2903 = vmatpush.bf16.msra.mxu3 %v8172_v49  ;;  %v10065_v0 = vld [vmem:[%s11063_s5 + $0x904] sm:$0xf]  ;;  %v7596_v5 = vor.u32 %v10001_v61, %v7593_v63  ;;  %v7439_v63 = vld [vmem:[%s11063_s5 + $0x5c8] sm:$0xf] }
  0xbc   : > { %v7849_v1 = vld [vmem:[%s11063_s5 + $0x920] sm:$0xf0] }
  0xbd   : > { %v10129_v2 = vld [vmem:[%s11063_s5 + $0xb04] sm:$0xf]  ;;  %2862 = vmatpush.bf16.msra.mxu0 %v7372_v55  ;;  %2890 = vmatpush.bf16.msra.mxu2 %v7884_v57  ;;  %v7852_v6 = vor.u32 %v10065_v0, %v7849_v1  ;;  %v6927_v57 = vld [vmem:[%s11063_s5 + $0x1c8] sm:$0xf] }
  0xbe   : > { %v8105_v3 = vld [vmem:[%s11063_s5 + $0xb20] sm:$0xf0]  ;;  %v9966_v0 = vld [vmem:[%s11063_s5 + $0x5e4] sm:$0xf0] }
  0xbf   : > { %2876 = vmatpush.bf16.msra.mxu1 %v7628_v56  ;;  %v9929_v8 = vld [vmem:[%s11063_s5 + $0x4c4] sm:$0xf]  ;;  %2904 = vmatpush.bf16.msra.mxu3 %v8140_v62  ;;  %v8108_v11 = vor.u32 %v10129_v2, %v8105_v3  ;;  %v9902_v62 = vld [vmem:[%s11063_s5 + $0x3e4] sm:$0xf0] }
  0xc0   : > { %v7305_v9 = vld [vmem:[%s11063_s5 + $0x4e0] sm:$0xf0]  ;;  %v7695_v3 = vld [vmem:[%s11063_s5 + $0x7c8] sm:$0xf] }
  0xc1   : > { %v9993_v10 = vld [vmem:[%s11063_s5 + $0x6c4] sm:$0xf]  ;;  %2863 = vmatpush.bf16.msra.mxu0 %v7340_v4  ;;  %v7308_v17 = vor.u32 %v9929_v8, %v7305_v9  ;;  %2891 = vmatpush.bf16.msra.mxu2 %v7852_v6  ;;  %v10030_v4 = vld [vmem:[%s11063_s5 + $0x7e4] sm:$0xf0]  ;;  %v6928_v6 = vor.u32 %v9838_v59, %v6927_v57  ;;  %v7184_v8 = vor.u32 %v9902_v62, %v7183_v60 }
  0xc2   : > { %v7561_v12 = vld [vmem:[%s11063_s5 + $0x6e0] sm:$0xf0]  ;;  %v7440_v9 = vor.u32 %v9966_v0, %v7439_v63  ;;  %v7567_v57 = vld [vmem:[%s11063_s5 + $0x6c8] sm:$0xf] }
  0xc3   : > { %v10057_v13 = vld [vmem:[%s11063_s5 + $0x8c4] sm:$0xf]  ;;  %2877 = vmatpush.bf16.msra.mxu1 %v7596_v5  ;;  %v7564_v18 = vor.u32 %v9993_v10, %v7561_v12  ;;  %2905 = vmatpush.bf16.msra.mxu3 %v8108_v11  ;;  %v6895_v10 = vld [vmem:[%s11063_s5 + $0x188] sm:$0xf] }
  0xc4   : > { %v7817_v14 = vld [vmem:[%s11063_s5 + $0x8e0] sm:$0xf0]  ;;  %v9830_v11 = vld [vmem:[%s11063_s5 + $0x1a4] sm:$0xf0] }
  0xc5   : > { %v10121_v15 = vld [vmem:[%s11063_s5 + $0xac4] sm:$0xf]  ;;  %v7820_v19 = vor.u32 %v10057_v13, %v7817_v14  ;;  %2864 = vmatpush.bf16.msra.mxu0 %v7308_v17  ;;  %v7151_v12 = vld [vmem:[%s11063_s5 + $0x388] sm:$0xf]  ;;  %v7696_v13 = vor.u32 %v10030_v4, %v7695_v3 }
  0xc6   : > { %v8073_v16 = vld [vmem:[%s11063_s5 + $0xae0] sm:$0xf0]  ;;  %v9894_v14 = vld [vmem:[%s11063_s5 + $0x3a4] sm:$0xf0] }
  0xc7   : > { %v9921_v20 = vld [vmem:[%s11063_s5 + $0x484] sm:$0xf]  ;;  %v8076_v25 = vor.u32 %v10121_v15, %v8073_v16  ;;  %2878 = vmatpush.bf16.msra.mxu1 %v7564_v18  ;;  %2892 = vmatpush.bf16.msra.mxu2 %v7820_v19  ;;  %v7407_v15 = vld [vmem:[%s11063_s5 + $0x588] sm:$0xf]  ;;  %v6896_v19 = vor.u32 %v9830_v11, %v6895_v10 }
  0xc8   : > { %v7273_v21 = vld [vmem:[%s11063_s5 + $0x4a0] sm:$0xf0]  ;;  %v9958_v16 = vld [vmem:[%s11063_s5 + $0x5a4] sm:$0xf0] }
  0xc9   : > { %v9985_v22 = vld [vmem:[%s11063_s5 + $0x684] sm:$0xf]  ;;  %v7276_v31 = vor.u32 %v9921_v20, %v7273_v21  ;;  %2906 = vmatpush.bf16.msra.mxu3 %v8076_v25  ;;  %v7663_v17 = vld [vmem:[%s11063_s5 + $0x788] sm:$0xf]  ;;  %v7152_v20 = vor.u32 %v9894_v14, %v7151_v12  ;;  %v7408_v21 = vor.u32 %v9958_v16, %v7407_v15 }
  0xca   : > { %v7529_v26 = vld [vmem:[%s11063_s5 + $0x6a0] sm:$0xf0]  ;;  %v10022_v18 = vld [vmem:[%s11063_s5 + $0x7a4] sm:$0xf0] }
  0xcb   : > { %v10049_v27 = vld [vmem:[%s11063_s5 + $0x884] sm:$0xf]  ;;  %v7532_v32 = vor.u32 %v9985_v22, %v7529_v26  ;;  %2865 = vmatpush.bf16.msra.mxu0 %v7276_v31  ;;  %v6863_v22 = vld [vmem:[%s11063_s5 + $0x148] sm:$0xf] }
  0xcc   : > { %v7785_v28 = vld [vmem:[%s11063_s5 + $0x8a0] sm:$0xf0]  ;;  %v9822_v25 = vld [vmem:[%s11063_s5 + $0x164] sm:$0xf0] }
  0xcd   : > { %v10113_v29 = vld [vmem:[%s11063_s5 + $0xa84] sm:$0xf]  ;;  %v7788_v33 = vor.u32 %v10049_v27, %v7785_v28  ;;  %2879 = vmatpush.bf16.msra.mxu1 %v7532_v32  ;;  %v7119_v26 = vld [vmem:[%s11063_s5 + $0x348] sm:$0xf]  ;;  %v7664_v27 = vor.u32 %v10022_v18, %v7663_v17 }
  0xce   : > { %v8041_v30 = vld [vmem:[%s11063_s5 + $0xaa0] sm:$0xf0]  ;;  %v9886_v28 = vld [vmem:[%s11063_s5 + $0x364] sm:$0xf0] }
  0xcf   : > { %v9913_v34 = vld [vmem:[%s11063_s5 + $0x444] sm:$0xf]  ;;  %v8044_v38 = vor.u32 %v10113_v29, %v8041_v30  ;;  %2893 = vmatpush.bf16.msra.mxu2 %v7788_v33  ;;  %v7375_v29 = vld [vmem:[%s11063_s5 + $0x548] sm:$0xf]  ;;  %v6864_v33 = vor.u32 %v9822_v25, %v6863_v22 }
  0xd0   : > { %v7241_v35 = vld [vmem:[%s11063_s5 + $0x460] sm:$0xf0]  ;;  %v9950_v30 = vld [vmem:[%s11063_s5 + $0x564] sm:$0xf0] }
  0xd1   : > { %v9977_v37 = vld [vmem:[%s11063_s5 + $0x644] sm:$0xf]  ;;  %v7244_v45 = vor.u32 %v9913_v34, %v7241_v35  ;;  %2907 = vmatpush.bf16.msra.mxu3 %v8044_v38  ;;  %v7631_v31 = vld [vmem:[%s11063_s5 + $0x748] sm:$0xf]  ;;  %v7120_v34 = vor.u32 %v9886_v28, %v7119_v26  ;;  %v7376_v35 = vor.u32 %v9950_v30, %v7375_v29 }
  0xd2   : > { %v7497_v39 = vld [vmem:[%s11063_s5 + $0x660] sm:$0xf0]  ;;  %v10014_v32 = vld [vmem:[%s11063_s5 + $0x764] sm:$0xf0] }
  0xd3   : > { %v10041_v41 = vld [vmem:[%s11063_s5 + $0x844] sm:$0xf]  ;;  %v7500_v48 = vor.u32 %v9977_v37, %v7497_v39  ;;  %2866 = vmatpush.bf16.msra.mxu0 %v7244_v45  ;;  %v6831_v37 = vld [vmem:[%s11063_s5 + $0x108] sm:$0xf] }
  0xd4   : > { %v7753_v42 = vld [vmem:[%s11063_s5 + $0x860] sm:$0xf0]  ;;  %v9814_v38 = vld [vmem:[%s11063_s5 + $0x124] sm:$0xf0] }
  0xd5   : > { %v10105_v43 = vld [vmem:[%s11063_s5 + $0xa44] sm:$0xf]  ;;  %v7756_v49 = vor.u32 %v10041_v41, %v7753_v42  ;;  %2880 = vmatpush.bf16.msra.mxu1 %v7500_v48  ;;  %v7087_v39 = vld [vmem:[%s11063_s5 + $0x308] sm:$0xf]  ;;  %v7632_v41 = vor.u32 %v10014_v32, %v7631_v31 }
  0xd6   : > { %v8009_v44 = vld [vmem:[%s11063_s5 + $0xa60] sm:$0xf0]  ;;  %v9878_v42 = vld [vmem:[%s11063_s5 + $0x324] sm:$0xf0] }
  0xd7   : > { %v9905_v46 = vld [vmem:[%s11063_s5 + $0x404] sm:$0xf]  ;;  %v8012_v53 = vor.u32 %v10105_v43, %v8009_v44  ;;  %2894 = vmatpush.bf16.msra.mxu2 %v7756_v49  ;;  %v7343_v43 = vld [vmem:[%s11063_s5 + $0x508] sm:$0xf]  ;;  %v7088_v48 = vor.u32 %v9878_v42, %v7087_v39  ;;  %v9834_v42 = vld [vmem:[%s11063_s5 + $0x1cc] sm:$0xf] }
  0xd8   : > { %v7209_v47 = vld [vmem:[%s11063_s5 + $0x420] sm:$0xf0]  ;;  %v9942_v44 = vld [vmem:[%s11063_s5 + $0x524] sm:$0xf0] }
  0xd9   : > { %v9969_v50 = vld [vmem:[%s11063_s5 + $0x604] sm:$0xf]  ;;  %v7212_v61 = vor.u32 %v9905_v46, %v7209_v47  ;;  %2908 = vmatpush.bf16.msra.mxu3 %v8012_v53  ;;  %v7599_v45 = vld [vmem:[%s11063_s5 + $0x708] sm:$0xf]  ;;  %v6832_v47 = vor.u32 %v9814_v38, %v6831_v37  ;;  %v7344_v49 = vor.u32 %v9942_v44, %v7343_v43  ;;  %v6929_v43 = vld [vmem:[%s11063_s5 + $0x1e8] sm:$0xf0] }
  0xda   : > { %v7465_v51 = vld [vmem:[%s11063_s5 + $0x620] sm:$0xf0]  ;;  %v10006_v46 = vld [vmem:[%s11063_s5 + $0x724] sm:$0xf0] }
  0xdb   : > { %v10033_v52 = vld [vmem:[%s11063_s5 + $0x804] sm:$0xf]  ;;  %v7468_v1 = vor.u32 %v9969_v50, %v7465_v51  ;;  %2867 = vmatpush.bf16.msra.mxu0 %v7212_v61  ;;  %v6799_v50 = vld [vmem:[%s11063_s5 + $0xc8] sm:$0xf]  ;;  %v7600_v53 = vor.u32 %v10006_v46, %v7599_v45  ;;  %v9898_v46 = vld [vmem:[%s11063_s5 + $0x3cc] sm:$0xf] }
  0xdc   : > { %v7721_v54 = vld [vmem:[%s11063_s5 + $0x820] sm:$0xf0]  ;;  %v9806_v51 = vld [vmem:[%s11063_s5 + $0xe4] sm:$0xf0] }
  0xdd   : > { %v10097_v55 = vld [vmem:[%s11063_s5 + $0xa04] sm:$0xf]  ;;  %v7724_v2 = vor.u32 %v10033_v52, %v7721_v54  ;;  %2881 = vmatpush.bf16.msra.mxu1 %v7468_v1  ;;  %v7055_v52 = vld [vmem:[%s11063_s5 + $0x2c8] sm:$0xf]  ;;  %v6800_v60 = vor.u32 %v9806_v51, %v6799_v50  ;;  %v6932_v51 = vor.u32 %v9834_v42, %v6929_v43 }
  0xde   : > { %v7977_v56 = vld [vmem:[%s11063_s5 + $0xa20] sm:$0xf0]  ;;  %2868 = vmatmul.bf16.vlgmr.msra.gmra.mxu0 %v11184_v23  ;;  %v9870_v54 = vld [vmem:[%s11063_s5 + $0x2e4] sm:$0xf0] }
  0xdf   : > { %v7980_v5 = vor.u32 %v10097_v55, %v7977_v56  ;;  %2895 = vmatpush.bf16.msra.mxu2 %v7724_v2  ;;  %2916 = vmatpush.bf16.msrb.mxu0 %v6928_v6  ;;  %v7311_v55 = vld [vmem:[%s11063_s5 + $0x4c8] sm:$0xf]  ;;  %v7056_v61 = vor.u32 %v9870_v54, %v7055_v52 }
  0xe0   : > { %2882 = vmatmul.bf16.vlgmr.msra.gmra.mxu1 %v11186_v24  ;;  %v9934_v56 = vld [vmem:[%s11063_s5 + $0x4e4] sm:$0xf0] }
  0xe1   : > { %2909 = vmatpush.bf16.msra.mxu3 %v7980_v5  ;;  %2930 = vmatpush.bf16.msrb.mxu1 %v7184_v8  ;;  %v9998_v59 = vld [vmem:[%s11063_s5 + $0x6e4] sm:$0xf0]  ;;  %v7312_v62 = vor.u32 %v9934_v56, %v7311_v55 }
  0xe2   : > { %2896 = vmatmul.bf16.vlgmr.msra.gmra.mxu2 %v11233_v36  ;;  %v6767_v63 = vld [vmem:[%s11063_s5 + $0x88] sm:$0xf]  ;;  %v7568_v2 = vor.u32 %v9998_v59, %v7567_v57  ;;  %v9826_v57 = vld [vmem:[%s11063_s5 + $0x18c] sm:$0xf] }
  0xe3   : > { %2944 = vmatpush.bf16.msrb.mxu2 %v7440_v9  ;;  %2917 = vmatpush.bf16.msrb.mxu0 %v6896_v19  ;;  %v9798_v0 = vld [vmem:[%s11063_s5 + $0xa4] sm:$0xf0]  ;;  %v6897_v59 = vld [vmem:[%s11063_s5 + $0x1a8] sm:$0xf0] }
  0xe4   : > { %2910 = vmatmul.bf16.vlgmr.msra.gmra.mxu3 %v11238_v40  ;;  %v7023_v1 = vld [vmem:[%s11063_s5 + $0x288] sm:$0xf]  ;;  %v6768_v9 = vor.u32 %v9798_v0, %v6767_v63  ;;  %v6900_v0 = vor.u32 %v9826_v57, %v6897_v59 }
  0xe5   : > { %2958 = vmatpush.bf16.msrb.mxu3 %v7696_v13  ;;  %2931 = vmatpush.bf16.msrb.mxu1 %v7152_v20  ;;  %v9862_v3 = vld [vmem:[%s11063_s5 + $0x2a4] sm:$0xf0] }
  0xe6   : > { %v7279_v4 = vld [vmem:[%s11063_s5 + $0x488] sm:$0xf]  ;;  %v7024_v10 = vor.u32 %v9862_v3, %v7023_v1 }
  0xe7   : > { %2945 = vmatpush.bf16.msrb.mxu2 %v7408_v21  ;;  %2918 = vmatpush.bf16.msrb.mxu0 %v6864_v33  ;;  %v9926_v5 = vld [vmem:[%s11063_s5 + $0x4a4] sm:$0xf0] }
  0xe8   : > { %v7535_v6 = vld [vmem:[%s11063_s5 + $0x688] sm:$0xf]  ;;  %v7280_v11 = vor.u32 %v9926_v5, %v7279_v4 }
  0xe9   : > { %2959 = vmatpush.bf16.msrb.mxu3 %v7664_v27  ;;  %2932 = vmatpush.bf16.msrb.mxu1 %v7120_v34  ;;  %v9990_v8 = vld [vmem:[%s11063_s5 + $0x6a4] sm:$0xf0] }
  0xea   : > { %v6735_v12 = vld [vmem:[%s11063_s5 + $0x48] sm:$0xf]  ;;  %v7536_v15 = vor.u32 %v9990_v8, %v7535_v6  ;;  %v9818_v6 = vld [vmem:[%s11063_s5 + $0x14c] sm:$0xf] }
  0xeb   : > { %2946 = vmatpush.bf16.msrb.mxu2 %v7376_v35  ;;  %2919 = vmatpush.bf16.msrb.mxu0 %v6832_v47  ;;  %v9790_v13 = vld [vmem:[%s11063_s5 + $0x64] sm:$0xf0]  ;;  %v7185_v47 = vld [vmem:[%s11063_s5 + $0x3e8] sm:$0xf0] }
  0xec   : > { %v6991_v14 = vld [vmem:[%s11063_s5 + $0x248] sm:$0xf]  ;;  %v6736_v21 = vor.u32 %v9790_v13, %v6735_v12  ;;  %v7188_v55 = vor.u32 %v9898_v46, %v7185_v47  ;;  %v6865_v8 = vld [vmem:[%s11063_s5 + $0x168] sm:$0xf0] }
  0xed   : > { %2960 = vmatpush.bf16.msrb.mxu3 %v7632_v41  ;;  %2933 = vmatpush.bf16.msrb.mxu1 %v7088_v48  ;;  %v9854_v16 = vld [vmem:[%s11063_s5 + $0x264] sm:$0xf0]  ;;  %v6868_v13 = vor.u32 %v9818_v6, %v6865_v8  ;;  %v9794_v47 = vld [vmem:[%s11063_s5 + $0x8c] sm:$0xf] }
  0xee   : > { %v7247_v17 = vld [vmem:[%s11063_s5 + $0x448] sm:$0xf]  ;;  %v6992_v26 = vor.u32 %v9854_v16, %v6991_v14  ;;  %v9778_v8 = vld [vmem:[%s11063_s5 + $0xc] sm:$0xf] }
  0xef   : > { %2947 = vmatpush.bf16.msrb.mxu2 %v7344_v49  ;;  %2920 = vmatpush.bf16.msrb.mxu0 %v6800_v60  ;;  %v9918_v18 = vld [vmem:[%s11063_s5 + $0x464] sm:$0xf0]  ;;  %v9890_v60 = vld [vmem:[%s11063_s5 + $0x38c] sm:$0xf] }
  0xf0   : > { %v7503_v19 = vld [vmem:[%s11063_s5 + $0x648] sm:$0xf]  ;;  %v7248_v27 = vor.u32 %v9918_v18, %v7247_v17 }
  0xf1   : > { %2961 = vmatpush.bf16.msrb.mxu3 %v7600_v53  ;;  %2934 = vmatpush.bf16.msrb.mxu1 %v7056_v61  ;;  %v9982_v20 = vld [vmem:[%s11063_s5 + $0x664] sm:$0xf0]  ;;  %v7153_v61 = vld [vmem:[%s11063_s5 + $0x3a8] sm:$0xf0] }
  0xf2   : > { %v6703_v22 = vld [vmem:[%s11063_s5 + $0x8] sm:$0xf]  ;;  %v7504_v31 = vor.u32 %v9982_v20, %v7503_v19  ;;  %v7156_v4 = vor.u32 %v9890_v60, %v7153_v61  ;;  %v9810_v19 = vld [vmem:[%s11063_s5 + $0x10c] sm:$0xf] }
  0xf3   : > { %2948 = vmatpush.bf16.msrb.mxu2 %v7312_v62  ;;  %2921 = vmatpush.bf16.msrb.mxu0 %v6768_v9  ;;  %v9782_v25 = vld [vmem:[%s11063_s5 + $0x24] sm:$0xf0]  ;;  %v9882_v9 = vld [vmem:[%s11063_s5 + $0x34c] sm:$0xf] }
  0xf4   : > { %v6959_v28 = vld [vmem:[%s11063_s5 + $0x208] sm:$0xf]  ;;  %v6704_v39 = vor.u32 %v9782_v25, %v6703_v22  ;;  %v6833_v20 = vld [vmem:[%s11063_s5 + $0x128] sm:$0xf0] }
  0xf5   : > { %2962 = vmatpush.bf16.msrb.mxu3 %v7568_v2  ;;  %2935 = vmatpush.bf16.msrb.mxu1 %v7024_v10  ;;  %v9846_v29 = vld [vmem:[%s11063_s5 + $0x224] sm:$0xf0]  ;;  %v7121_v10 = vld [vmem:[%s11063_s5 + $0x368] sm:$0xf0] }
  0xf6   : > { %v7215_v30 = vld [vmem:[%s11063_s5 + $0x408] sm:$0xf]  ;;  %v6960_v44 = vor.u32 %v9846_v29, %v6959_v28  ;;  %v7124_v17 = vor.u32 %v9882_v9, %v7121_v10  ;;  %v7089_v22 = vld [vmem:[%s11063_s5 + $0x328] sm:$0xf0] }
  0xf7   : > { %2949 = vmatpush.bf16.msrb.mxu2 %v7280_v11  ;;  %v9910_v32 = vld [vmem:[%s11063_s5 + $0x424] sm:$0xf0]  ;;  %2922 = vmatpush.bf16.msrb.mxu0 %v6736_v21  ;;  %v9874_v21 = vld [vmem:[%s11063_s5 + $0x30c] sm:$0xf] }
  0xf8   : > { %v7471_v33 = vld [vmem:[%s11063_s5 + $0x608] sm:$0xf]  ;;  %v7216_v45 = vor.u32 %v9910_v32, %v7215_v30  ;;  %v9786_v60 = vld [vmem:[%s11063_s5 + $0x4c] sm:$0xf] }
  0xf9   : > { %2963 = vmatpush.bf16.msrb.mxu3 %v7536_v15  ;;  %v9974_v34 = vld [vmem:[%s11063_s5 + $0x624] sm:$0xf0]  ;;  %2936 = vmatpush.bf16.msrb.mxu1 %v6992_v26  ;;  %v6737_v61 = vld [vmem:[%s11063_s5 + $0x68] sm:$0xf0] }
  0xfa   : > { %v7951_v35 = vld [vmem:[%s11063_s5 + $0x9c8] sm:$0xf]  ;;  %v7472_v48 = vor.u32 %v9974_v34, %v7471_v33  ;;  %v9802_v33 = vld [vmem:[%s11063_s5 + $0xcc] sm:$0xf] }
  0xfb   : > { %v10094_v37 = vld [vmem:[%s11063_s5 + $0x9e4] sm:$0xf0]  ;;  %2950 = vmatpush.bf16.msrb.mxu2 %v7248_v27  ;;  %2923 = vmatpush.bf16.msrb.mxu0 %v6704_v39  ;;  %v6836_v27 = vor.u32 %v9810_v19, %v6833_v20  ;;  %v6801_v34 = vld [vmem:[%s11063_s5 + $0xe8] sm:$0xf0] }
  0xfc   : > { %v8207_v38 = vld [vmem:[%s11063_s5 + $0xbc8] sm:$0xf]  ;;  %v7952_v49 = vor.u32 %v10094_v37, %v7951_v35  ;;  %v9866_v35 = vld [vmem:[%s11063_s5 + $0x2cc] sm:$0xf] }
  0xfd   : > { %v10158_v41 = vld [vmem:[%s11063_s5 + $0xbe4] sm:$0xf0]  ;;  %2964 = vmatpush.bf16.msrb.mxu3 %v7504_v31  ;;  %2937 = vmatpush.bf16.msrb.mxu1 %v6960_v44  ;;  %v7092_v31 = vor.u32 %v9874_v21, %v7089_v22  ;;  %v7057_v37 = vld [vmem:[%s11063_s5 + $0x2e8] sm:$0xf0] }
  0xfe   : > { %v8208_v50 = vor.u32 %v10158_v41, %v8207_v38  ;;  %v7919_v52 = vld [vmem:[%s11063_s5 + $0x988] sm:$0xf]  ;;  %2924 = vmatmul.bf16.vlgmr.msrb.gmra.mxu0 %v11164_v58  ;;  %v6804_v41 = vor.u32 %v9802_v33, %v6801_v34  ;;  %v6705_v10 = vld [vmem:[%s11063_s5 + $0x28] sm:$0xf0] }
  0xff   : > { %v10086_v53 = vld [vmem:[%s11063_s5 + $0x9a4] sm:$0xf0]  ;;  %2951 = vmatpush.bf16.msrb.mxu2 %v7216_v45  ;;  %2972 = vmatpush.bf16.msra.mxu0 %v7952_v49  ;;  %v7060_v45 = vor.u32 %v9866_v35, %v7057_v37  ;;  %v9858_v49 = vld [vmem:[%s11063_s5 + $0x28c] sm:$0xf]  ;;  %v6708_v21 = vor.u32 %v9778_v8, %v6705_v10 }
 0x100   : > { %v8175_v54 = vld [vmem:[%s11063_s5 + $0xb88] sm:$0xf]  ;;  %v7920_v62 = vor.u32 %v10086_v53, %v7919_v52  ;;  %2938 = vmatmul.bf16.vlgmr.msrb.gmra.mxu1 %v11174_v7  ;;  %v7953_v19 = vld [vmem:[%s11063_s5 + $0x9e8] sm:$0xf0] }
 0x101   : > { %v10150_v56 = vld [vmem:[%s11063_s5 + $0xba4] sm:$0xf0]  ;;  %2965 = vmatpush.bf16.msrb.mxu3 %v7472_v48  ;;  %2986 = vmatpush.bf16.msra.mxu1 %v8208_v50  ;;  %v6769_v48 = vld [vmem:[%s11063_s5 + $0xa8] sm:$0xf0] }
 0x102   : > { %v8176_v63 = vor.u32 %v10150_v56, %v8175_v54  ;;  %v7887_v1 = vld [vmem:[%s11063_s5 + $0x948] sm:$0xf]  ;;  %2952 = vmatmul.bf16.vlgmr.msrb.gmra.mxu2 %v11184_v23  ;;  %v7025_v50 = vld [vmem:[%s11063_s5 + $0x2a8] sm:$0xf0]  ;;  %v6772_v53 = vor.u32 %v9794_v47, %v6769_v48 }
 0x103   : > { %3000 = vmatpush.bf16.msra.mxu2 %v6932_v51  ;;  %v10078_v2 = vld [vmem:[%s11063_s5 + $0x964] sm:$0xf0]  ;;  %2973 = vmatpush.bf16.msra.mxu0 %v7920_v62  ;;  %v7028_v57 = vor.u32 %v9858_v49, %v7025_v50  ;;  %v9850_v62 = vld [vmem:[%s11063_s5 + $0x24c] sm:$0xf] }
 0x104   : > { %v8143_v3 = vld [vmem:[%s11063_s5 + $0xb48] sm:$0xf]  ;;  %v7888_v11 = vor.u32 %v10078_v2, %v7887_v1  ;;  %2966 = vmatmul.bf16.vlgmr.msrb.gmra.mxu3 %v11186_v24  ;;  %v10154_v22 = vld [vmem:[%s11063_s5 + $0xbcc] sm:$0xf] }
 0x105   : > { %3014 = vmatpush.bf16.msra.mxu3 %v7188_v55  ;;  %v10142_v5 = vld [vmem:[%s11063_s5 + $0xb64] sm:$0xf0]  ;;  %2987 = vmatpush.bf16.msra.mxu1 %v8176_v63  ;;  %v6993_v63 = vld [vmem:[%s11063_s5 + $0x268] sm:$0xf0] }
 0x106   : > { %v8144_v12 = vor.u32 %v10142_v5, %v8143_v3  ;;  %v7855_v14 = vld [vmem:[%s11063_s5 + $0x908] sm:$0xf]  ;;  %v6996_v9 = vor.u32 %v9850_v62, %v6993_v63  ;;  %v7665_v34 = vld [vmem:[%s11063_s5 + $0x7a8] sm:$0xf0] }
 0x107   : > { %3001 = vmatpush.bf16.msra.mxu2 %v6900_v0  ;;  %v10070_v15 = vld [vmem:[%s11063_s5 + $0x924] sm:$0xf0]  ;;  %2974 = vmatpush.bf16.msra.mxu0 %v7888_v11  ;;  %v9842_v11 = vld [vmem:[%s11063_s5 + $0x20c] sm:$0xf] }
 0x108   : > { %v8111_v16 = vld [vmem:[%s11063_s5 + $0xb08] sm:$0xf]  ;;  %v7856_v25 = vor.u32 %v10070_v15, %v7855_v14  ;;  %v7441_v14 = vld [vmem:[%s11063_s5 + $0x5e8] sm:$0xf0] }
 0x109   : > { %3015 = vmatpush.bf16.msra.mxu3 %v7156_v4  ;;  %v10134_v18 = vld [vmem:[%s11063_s5 + $0xb24] sm:$0xf0]  ;;  %2988 = vmatpush.bf16.msra.mxu1 %v8144_v12  ;;  %v6740_v4 = vor.u32 %v9786_v60, %v6737_v61  ;;  %v6961_v12 = vld [vmem:[%s11063_s5 + $0x228] sm:$0xf0] }
 0x10a   : > { %v8112_v26 = vor.u32 %v10134_v18, %v8111_v16  ;;  %v7823_v28 = vld [vmem:[%s11063_s5 + $0x8c8] sm:$0xf]  ;;  %v10026_v15 = vld [vmem:[%s11063_s5 + $0x7cc] sm:$0xf] }
 0x10b   : > { %3002 = vmatpush.bf16.msra.mxu2 %v6868_v13  ;;  %v10062_v29 = vld [vmem:[%s11063_s5 + $0x8e4] sm:$0xf0]  ;;  %2975 = vmatpush.bf16.msra.mxu0 %v7856_v25  ;;  %v9962_v13 = vld [vmem:[%s11063_s5 + $0x5cc] sm:$0xf] }
 0x10c   : > { %v8079_v30 = vld [vmem:[%s11063_s5 + $0xac8] sm:$0xf]  ;;  %v7824_v38 = vor.u32 %v10062_v29, %v7823_v28  ;;  %v10090_v18 = vld [vmem:[%s11063_s5 + $0x9cc] sm:$0xf] }
 0x10d   : > { %3016 = vmatpush.bf16.msra.mxu3 %v7124_v17  ;;  %v10126_v32 = vld [vmem:[%s11063_s5 + $0xae4] sm:$0xf0]  ;;  %2989 = vmatpush.bf16.msra.mxu1 %v8112_v26  ;;  %v7697_v17 = vld [vmem:[%s11063_s5 + $0x7e8] sm:$0xf0]  ;;  %v6964_v26 = vor.u32 %v9842_v11, %v6961_v12  ;;  %v7956_v29 = vor.u32 %v10090_v18, %v7953_v19 }
 0x10e   : > { %v8080_v39 = vor.u32 %v10126_v32, %v8079_v30  ;;  %v7791_v42 = vld [vmem:[%s11063_s5 + $0x888] sm:$0xf]  ;;  %v8209_v25 = vld [vmem:[%s11063_s5 + $0xbe8] sm:$0xf0]  ;;  %v7700_v28 = vor.u32 %v10026_v15, %v7697_v17 }
 0x10f   : > { %3003 = vmatpush.bf16.msra.mxu2 %v6836_v27  ;;  %v10054_v43 = vld [vmem:[%s11063_s5 + $0x8a4] sm:$0xf0]  ;;  %2976 = vmatpush.bf16.msra.mxu0 %v7824_v38  ;;  %v7444_v27 = vor.u32 %v9962_v13, %v7441_v14  ;;  %v9954_v30 = vld [vmem:[%s11063_s5 + $0x58c] sm:$0xf]  ;;  %v8212_v33 = vor.u32 %v10154_v22, %v8209_v25  ;;  %v2771_v19 = vpop.f32.mrf.mxu1 }
 0x110   : > { %v8047_v44 = vld [vmem:[%s11063_s5 + $0xa88] sm:$0xf]  ;;  %v7792_v51 = vor.u32 %v10054_v43, %v7791_v42  ;;  %v10018_v32 = vld [vmem:[%s11063_s5 + $0x78c] sm:$0xf] }
 0x111   : > { %3017 = vmatpush.bf16.msra.mxu3 %v7092_v31  ;;  %v10118_v46 = vld [vmem:[%s11063_s5 + $0xaa4] sm:$0xf0]  ;;  %2990 = vmatpush.bf16.msra.mxu1 %v8080_v39  ;;  %v7409_v31 = vld [vmem:[%s11063_s5 + $0x5a8] sm:$0xf0]  ;;  %v7668_v43 = vor.u32 %v10018_v32, %v7665_v34 }
 0x112   : > { %v8048_v52 = vor.u32 %v10118_v46, %v8047_v44  ;;  %v7759_v54 = vld [vmem:[%s11063_s5 + $0x848] sm:$0xf]  ;;  %v10082_v35 = vld [vmem:[%s11063_s5 + $0x98c] sm:$0xf] }
 0x113   : > { %3004 = vmatpush.bf16.msra.mxu2 %v6804_v41  ;;  %v10046_v55 = vld [vmem:[%s11063_s5 + $0x864] sm:$0xf0]  ;;  %2977 = vmatpush.bf16.msra.mxu0 %v7792_v51  ;;  %v7921_v37 = vld [vmem:[%s11063_s5 + $0x9a8] sm:$0xf0]  ;;  %v7412_v41 = vor.u32 %v9954_v30, %v7409_v31 }
 0x114   : > { %v8015_v56 = vld [vmem:[%s11063_s5 + $0xa48] sm:$0xf]  ;;  %v7760_v0 = vor.u32 %v10046_v55, %v7759_v54  ;;  %v10146_v38 = vld [vmem:[%s11063_s5 + $0xb8c] sm:$0xf]  ;;  %v7924_v44 = vor.u32 %v10082_v35, %v7921_v37 }
 0x115   : > { %3018 = vmatpush.bf16.msra.mxu3 %v7060_v45  ;;  %v10110_v59 = vld [vmem:[%s11063_s5 + $0xa64] sm:$0xf0]  ;;  %2991 = vmatpush.bf16.msra.mxu1 %v8048_v52  ;;  %v8177_v39 = vld [vmem:[%s11063_s5 + $0xba8] sm:$0xf0] }
 0x116   : > { %v7727_v1 = vld [vmem:[%s11063_s5 + $0x808] sm:$0xf]  ;;  %v8016_v3 = vor.u32 %v10110_v59, %v8015_v56  ;;  %v9946_v42 = vld [vmem:[%s11063_s5 + $0x54c] sm:$0xf]  ;;  %v8180_v48 = vor.u32 %v10146_v38, %v8177_v39 }
 0x117   : > { %v10038_v2 = vld [vmem:[%s11063_s5 + $0x824] sm:$0xf0]  ;;  %3005 = vmatpush.bf16.msra.mxu2 %v6772_v53  ;;  %2978 = vmatpush.bf16.msra.mxu0 %v7760_v0  ;;  %v7377_v45 = vld [vmem:[%s11063_s5 + $0x568] sm:$0xf0] }
 0x118   : > { %v7983_v5 = vld [vmem:[%s11063_s5 + $0xa08] sm:$0xf]  ;;  %v7728_v16 = vor.u32 %v10038_v2, %v7727_v1  ;;  %v10010_v46 = vld [vmem:[%s11063_s5 + $0x74c] sm:$0xf]  ;;  %v7380_v54 = vor.u32 %v9946_v42, %v7377_v45 }
 0x119   : > { %v10102_v6 = vld [vmem:[%s11063_s5 + $0xa24] sm:$0xf0]  ;;  %3019 = vmatpush.bf16.msra.mxu3 %v7028_v57  ;;  %2992 = vmatpush.bf16.msra.mxu1 %v8016_v3  ;;  %v7633_v49 = vld [vmem:[%s11063_s5 + $0x768] sm:$0xf0] }
 0x11a   : > { %v7984_v20 = vor.u32 %v10102_v6, %v7983_v5  ;;  %v11450_v47 = vld [vmem:[%s11069_s6] sm:$0xff]  ;;  %v7636_v56 = vor.u32 %v10010_v46, %v7633_v49 }
 0x11b   : > { %3006 = vmatpush.bf16.msra.mxu2 %v6740_v4  ;;  %2979 = vmatpush.bf16.msra.mxu0 %v7728_v16  ;;  %v10074_v50 = vld [vmem:[%s11063_s5 + $0x94c] sm:$0xf]  ;;  %v12977_v55 = vperm.slane %v11450_v47, 0  ;;  %v2757_v4 = vpop.f32.mrf.mxu0 }
 0x11c   : > { %v7889_v51 = vld [vmem:[%s11063_s5 + $0x968] sm:$0xf0] }
 0x11d   : > { %3020 = vmatpush.bf16.msra.mxu3 %v6996_v9  ;;  %2993 = vmatpush.bf16.msra.mxu1 %v7984_v20  ;;  %v10138_v52 = vld [vmem:[%s11063_s5 + $0xb4c] sm:$0xf]  ;;  %v7892_v57 = vor.u32 %v10074_v50, %v7889_v51  ;;  %v2758_v6 = vadd.f32 %v2757_v4, %v12977_v55  ;;  %v7191_v4 = vld [vmem:[%s11063_s5 + $0x3d0] sm:$0xf]  ;;  %v10350_v55 = vld [vmem:[%s11071_s28 + $0x5e4] sm:$0xf0] }
 0x11e   : > { %2980 = vmatmul.bf16.vlgmr.msra.gmra.mxu0 %v11233_v36  ;;  %v8145_v53 = vld [vmem:[%s11063_s5 + $0xb68] sm:$0xf0] }
 0x11f   : > { %3007 = vmatpush.bf16.msra.mxu2 %v6708_v21  ;;  %3028 = vmatpush.bf16.msrb.mxu0 %v7444_v27  ;;  %v9938_v59 = vld [vmem:[%s11063_s5 + $0x50c] sm:$0xf]  ;;  %v8148_v62 = vor.u32 %v10138_v52, %v8145_v53  ;;  %v2772_v21 = vadd.f32 %v2771_v19, %v2758_v6 }
 0x120   : > { %2994 = vmatmul.bf16.vlgmr.msra.gmra.mxu1 %v11238_v40  ;;  %v7345_v60 = vld [vmem:[%s11063_s5 + $0x528] sm:$0xf0] }
 0x121   : > { %3021 = vmatpush.bf16.msra.mxu3 %v6964_v26  ;;  %3042 = vmatpush.bf16.msrb.mxu1 %v7700_v28  ;;  %v10002_v61 = vld [vmem:[%s11063_s5 + $0x70c] sm:$0xf]  ;;  %v7348_v5 = vor.u32 %v9938_v59, %v7345_v60  ;;  %v2785_v60 = vpop.f32.mrf.mxu2 }
 0x122   : > { %3008 = vmatmul.bf16.vlgmr.msra.gmra.mxu2 %v11164_v58  ;;  %v7601_v63 = vld [vmem:[%s11063_s5 + $0x728] sm:$0xf0] }
 0x123   : > { %3056 = vmatpush.bf16.msrb.mxu2 %v7956_v29  ;;  %3029 = vmatpush.bf16.msrb.mxu0 %v7412_v41  ;;  %v10066_v0 = vld [vmem:[%s11063_s5 + $0x90c] sm:$0xf]  ;;  %v7604_v8 = vor.u32 %v10002_v61, %v7601_v63 }
 0x124   : > { %3022 = vmatmul.bf16.vlgmr.msra.gmra.mxu3 %v11174_v7  ;;  %v7857_v1 = vld [vmem:[%s11063_s5 + $0x928] sm:$0xf0] }
 0x125   : > { %3070 = vmatpush.bf16.msrb.mxu3 %v8212_v33  ;;  %3043 = vmatpush.bf16.msrb.mxu1 %v7668_v43  ;;  %v10130_v2 = vld [vmem:[%s11063_s5 + $0xb0c] sm:$0xf]  ;;  %v7860_v9 = vor.u32 %v10066_v0, %v7857_v1  ;;  %v2786_v1 = vadd.f32 %v2785_v60, %v2772_v21  ;;  %v6903_v21 = vld [vmem:[%s11063_s5 + $0x190] sm:$0xf] }
 0x126   : > { %v8113_v3 = vld [vmem:[%s11063_s5 + $0xb28] sm:$0xf0] }
 0x127   : > { %3057 = vmatpush.bf16.msrb.mxu2 %v7924_v44  ;;  %3030 = vmatpush.bf16.msrb.mxu0 %v7380_v54  ;;  %v9930_v10 = vld [vmem:[%s11063_s5 + $0x4cc] sm:$0xf]  ;;  %v8116_v13 = vor.u32 %v10130_v2, %v8113_v3  ;;  %v6935_v2 = vld [vmem:[%s11063_s5 + $0x1d0] sm:$0xf] }
 0x128   : > { %v7313_v11 = vld [vmem:[%s11063_s5 + $0x4e8] sm:$0xf0]  ;;  %v9839_v3 = vld [vmem:[%s11063_s5 + $0x1ec] sm:$0xf0] }
 0x129   : > { %3071 = vmatpush.bf16.msrb.mxu3 %v8180_v48  ;;  %3044 = vmatpush.bf16.msrb.mxu1 %v7636_v56  ;;  %v9994_v12 = vld [vmem:[%s11063_s5 + $0x6cc] sm:$0xf]  ;;  %v7316_v20 = vor.u32 %v9930_v10, %v7313_v11  ;;  %v9967_v10 = vld [vmem:[%s11063_s5 + $0x5ec] sm:$0xf0]  ;;  %v11544_v60 = vpop.f32.mrf.mxu2 }
 0x12a   : > { %v7569_v14 = vld [vmem:[%s11063_s5 + $0x6e8] sm:$0xf0] }
 0x12b   : > { %3058 = vmatpush.bf16.msrb.mxu2 %v7892_v57  ;;  %v10058_v15 = vld [vmem:[%s11063_s5 + $0x8cc] sm:$0xf]  ;;  %3031 = vmatpush.bf16.msrb.mxu0 %v7348_v5  ;;  %v7572_v22 = vor.u32 %v9994_v12, %v7569_v14  ;;  %v2799_v5 = vpop.f32.mrf.mxu3  ;;  %v7703_v14 = vld [vmem:[%s11063_s5 + $0x7d0] sm:$0xf] }
 0x12c   : > { %v7825_v16 = vld [vmem:[%s11063_s5 + $0x8e8] sm:$0xf0]  ;;  %v11510_v11 = vadd.f32 %v2799_v5, %v2786_v1 }
 0x12d   : > { %3072 = vmatpush.bf16.msrb.mxu3 %v8148_v62  ;;  %v10122_v17 = vld [vmem:[%s11063_s5 + $0xacc] sm:$0xf]  ;;  %3045 = vmatpush.bf16.msrb.mxu1 %v7604_v8  ;;  %v7828_v25 = vor.u32 %v10058_v15, %v7825_v16  ;;  %v9903_v8 = vld [vmem:[%s11063_s5 + $0x3ec] sm:$0xf0] }
 0x12e   : > { %v8081_v18 = vld [vmem:[%s11063_s5 + $0xae8] sm:$0xf0]  ;;  %v10031_v15 = vld [vmem:[%s11063_s5 + $0x7ec] sm:$0xf0] }
 0x12f   : > { %3059 = vmatpush.bf16.msrb.mxu2 %v7860_v9  ;;  %v9922_v26 = vld [vmem:[%s11063_s5 + $0x48c] sm:$0xf]  ;;  %v8084_v29 = vor.u32 %v10122_v17, %v8081_v18  ;;  %3032 = vmatpush.bf16.msrb.mxu0 %v7316_v20  ;;  %v7447_v9 = vld [vmem:[%s11063_s5 + $0x5d0] sm:$0xf]  ;;  %v6936_v17 = vor.u32 %v9839_v3, %v6935_v2  ;;  %v7192_v18 = vor.u32 %v9903_v8, %v7191_v4  ;;  %v11514_v20 = vpop.f32.mrf.mxu0 }
 0x130   : > { %v7281_v27 = vld [vmem:[%s11063_s5 + $0x4a8] sm:$0xf0]  ;;  %v7448_v19 = vor.u32 %v9967_v10, %v7447_v9  ;;  %v9807_v8 = vld [vmem:[%s11063_s5 + $0xec] sm:$0xf0] }
 0x131   : > { %v9986_v28 = vld [vmem:[%s11063_s5 + $0x68c] sm:$0xf]  ;;  %3073 = vmatpush.bf16.msrb.mxu3 %v8116_v13  ;;  %v7284_v35 = vor.u32 %v9922_v26, %v7281_v27  ;;  %3046 = vmatpush.bf16.msrb.mxu1 %v7572_v22  ;;  %v9831_v22 = vld [vmem:[%s11063_s5 + $0x1ac] sm:$0xf0]  ;;  %v7704_v26 = vor.u32 %v10031_v15, %v7703_v14 }
 0x132   : > { %v7537_v30 = vld [vmem:[%s11063_s5 + $0x6a8] sm:$0xf0]  ;;  %v9895_v27 = vld [vmem:[%s11063_s5 + $0x3ac] sm:$0xf0] }
 0x133   : > { %v10050_v31 = vld [vmem:[%s11063_s5 + $0x88c] sm:$0xf]  ;;  %3060 = vmatpush.bf16.msrb.mxu2 %v7828_v25  ;;  %v7540_v37 = vor.u32 %v9986_v28, %v7537_v30  ;;  %3033 = vmatpush.bf16.msrb.mxu0 %v7284_v35  ;;  %v7159_v25 = vld [vmem:[%s11063_s5 + $0x390] sm:$0xf]  ;;  %v11549_v2 = vpop.f32.mrf.mxu3 }
 0x134   : > { %v7793_v32 = vld [vmem:[%s11063_s5 + $0x8a8] sm:$0xf0]  ;;  %v7415_v28 = vld [vmem:[%s11063_s5 + $0x590] sm:$0xf] }
 0x135   : > { %v10114_v33 = vld [vmem:[%s11063_s5 + $0xa8c] sm:$0xf]  ;;  %v7796_v38 = vor.u32 %v10050_v31, %v7793_v32  ;;  %3074 = vmatpush.bf16.msrb.mxu3 %v8084_v29  ;;  %3047 = vmatpush.bf16.msrb.mxu1 %v7540_v37  ;;  %v9959_v29 = vld [vmem:[%s11063_s5 + $0x5ac] sm:$0xf0]  ;;  %v11524_v32 = vpop.f32.mrf.mxu1 }
 0x136   : > { %v8049_v34 = vld [vmem:[%s11063_s5 + $0xaa8] sm:$0xf0]  ;;  %v7671_v30 = vld [vmem:[%s11063_s5 + $0x790] sm:$0xf]  ;;  %v7416_v35 = vor.u32 %v9959_v29, %v7415_v28 }
 0x137   : > { %v9914_v39 = vld [vmem:[%s11063_s5 + $0x44c] sm:$0xf]  ;;  %v8052_v43 = vor.u32 %v10114_v33, %v8049_v34  ;;  %3061 = vmatpush.bf16.msrb.mxu2 %v7796_v38  ;;  %v10023_v31 = vld [vmem:[%s11063_s5 + $0x7ac] sm:$0xf0]  ;;  %v6904_v33 = vor.u32 %v9831_v22, %v6903_v21  ;;  %v7160_v34 = vor.u32 %v9895_v27, %v7159_v25 }
 0x138   : > { %v7249_v41 = vld [vmem:[%s11063_s5 + $0x468] sm:$0xf0]  ;;  %v6871_v37 = vld [vmem:[%s11063_s5 + $0x150] sm:$0xf] }
 0x139   : > { %v9978_v42 = vld [vmem:[%s11063_s5 + $0x64c] sm:$0xf]  ;;  %v7252_v50 = vor.u32 %v9914_v39, %v7249_v41  ;;  %3075 = vmatpush.bf16.msrb.mxu3 %v8052_v43  ;;  %v9823_v38 = vld [vmem:[%s11063_s5 + $0x16c] sm:$0xf0]  ;;  %v7672_v41 = vor.u32 %v10023_v31, %v7671_v30  ;;  %v2841_v31 = vpop.f32.mrf.mxu2 }
 0x13a   : > { %v7505_v44 = vld [vmem:[%s11063_s5 + $0x668] sm:$0xf0]  ;;  %v7127_v39 = vld [vmem:[%s11063_s5 + $0x350] sm:$0xf] }
 0x13b   : > { %v10042_v45 = vld [vmem:[%s11063_s5 + $0x84c] sm:$0xf]  ;;  %v7508_v53 = vor.u32 %v9978_v42, %v7505_v44  ;;  %3034 = vmatpush.bf16.msrb.mxu0 %v7252_v50  ;;  %v9887_v42 = vld [vmem:[%s11063_s5 + $0x36c] sm:$0xf0] }
 0x13c   : > { %v7761_v46 = vld [vmem:[%s11063_s5 + $0x868] sm:$0xf0]  ;;  %v7383_v43 = vld [vmem:[%s11063_s5 + $0x550] sm:$0xf] }
 0x13d   : > { %v10106_v48 = vld [vmem:[%s11063_s5 + $0xa4c] sm:$0xf]  ;;  %v7764_v54 = vor.u32 %v10042_v45, %v7761_v46  ;;  %3048 = vmatpush.bf16.msrb.mxu1 %v7508_v53  ;;  %v9951_v44 = vld [vmem:[%s11063_s5 + $0x56c] sm:$0xf0]  ;;  %v2827_v5 = vpop.f32.mrf.mxu1 }
 0x13e   : > { %v8017_v49 = vld [vmem:[%s11063_s5 + $0xa68] sm:$0xf0]  ;;  %v7639_v45 = vld [vmem:[%s11063_s5 + $0x750] sm:$0xf]  ;;  %v7384_v50 = vor.u32 %v9951_v44, %v7383_v43 }
 0x13f   : > { %v9906_v51 = vld [vmem:[%s11063_s5 + $0x40c] sm:$0xf]  ;;  %v8020_v61 = vor.u32 %v10106_v48, %v8017_v49  ;;  %3062 = vmatpush.bf16.msrb.mxu2 %v7764_v54  ;;  %v10015_v46 = vld [vmem:[%s11063_s5 + $0x76c] sm:$0xf0]  ;;  %v6872_v48 = vor.u32 %v9823_v38, %v6871_v37  ;;  %v7128_v49 = vor.u32 %v9887_v42, %v7127_v39  ;;  %v2855_v38 = vpop.f32.mrf.mxu3 }
 0x140   : > { %v7217_v52 = vld [vmem:[%s11063_s5 + $0x428] sm:$0xf0]  ;;  %v7095_v53 = vld [vmem:[%s11063_s5 + $0x310] sm:$0xf]  ;;  %v7640_v54 = vor.u32 %v10015_v46, %v7639_v45 }
 0x141   : > { %v9970_v56 = vld [vmem:[%s11063_s5 + $0x60c] sm:$0xf]  ;;  %v7220_v6 = vor.u32 %v9906_v51, %v7217_v52  ;;  %3076 = vmatpush.bf16.msrb.mxu3 %v8020_v61  ;;  %v6839_v51 = vld [vmem:[%s11063_s5 + $0x110] sm:$0xf]  ;;  %v2813_v61 = vpop.f32.mrf.mxu0 }
 0x142   : > { %v7473_v57 = vld [vmem:[%s11063_s5 + $0x628] sm:$0xf0]  ;;  %v9815_v52 = vld [vmem:[%s11063_s5 + $0x12c] sm:$0xf0] }
 0x143   : > { %v10034_v59 = vld [vmem:[%s11063_s5 + $0x80c] sm:$0xf]  ;;  %v7476_v12 = vor.u32 %v9970_v56, %v7473_v57  ;;  %3035 = vmatpush.bf16.msrb.mxu0 %v7220_v6  ;;  %v9879_v56 = vld [vmem:[%s11063_s5 + $0x32c] sm:$0xf0]  ;;  %v6840_v1 = vor.u32 %v9815_v52, %v6839_v51 }
 0x144   : > { %v7729_v62 = vld [vmem:[%s11063_s5 + $0x828] sm:$0xf0]  ;;  %v7351_v57 = vld [vmem:[%s11063_s5 + $0x510] sm:$0xf]  ;;  %v7096_v3 = vor.u32 %v9879_v56, %v7095_v53 }
 0x145   : > { %v10098_v63 = vld [vmem:[%s11063_s5 + $0xa0c] sm:$0xf]  ;;  %v7732_v13 = vor.u32 %v10034_v59, %v7729_v62  ;;  %3049 = vmatpush.bf16.msrb.mxu1 %v7476_v12  ;;  %v9943_v59 = vld [vmem:[%s11063_s5 + $0x52c] sm:$0xf0] }
 0x146   : > { %v7985_v0 = vld [vmem:[%s11063_s5 + $0xa28] sm:$0xf0]  ;;  %3036 = vmatmul.bf16.vlgmr.msrb.gmra.mxu0 %v11184_v23  ;;  %v7607_v62 = vld [vmem:[%s11063_s5 + $0x710] sm:$0xf]  ;;  %v7352_v4 = vor.u32 %v9943_v59, %v7351_v57 }
 0x147   : > { %v7988_v16 = vor.u32 %v10098_v63, %v7985_v0  ;;  %3063 = vmatpush.bf16.msrb.mxu2 %v7732_v13  ;;  %3084 = vmatpush.bf16.msra.mxu0 %v6936_v17  ;;  %v10007_v63 = vld [vmem:[%s11063_s5 + $0x72c] sm:$0xf0]  ;;  %v2814_v0 = vadd.f32 %v2813_v61, %v11510_v11  ;;  %v12976_v17 = vperm.slane %v11450_v47, 1 }
 0x148   : > { %3050 = vmatmul.bf16.vlgmr.msrb.gmra.mxu1 %v11186_v24  ;;  %v6807_v6 = vld [vmem:[%s11063_s5 + $0xd0] sm:$0xf]  ;;  %v7608_v10 = vor.u32 %v10007_v63, %v7607_v62 }
 0x149   : > { %3077 = vmatpush.bf16.msrb.mxu3 %v7988_v16  ;;  %3098 = vmatpush.bf16.msra.mxu1 %v7192_v18  ;;  %v7063_v9 = vld [vmem:[%s11063_s5 + $0x2d0] sm:$0xf]  ;;  %v11554_v11 = vadd.f32 %v2827_v5, %v2814_v0  ;;  %v6808_v18 = vor.u32 %v9807_v8, %v6807_v6 }
 0x14a   : > { %3064 = vmatmul.bf16.vlgmr.msrb.gmra.mxu2 %v11233_v36  ;;  %v9871_v12 = vld [vmem:[%s11063_s5 + $0x2ec] sm:$0xf0] }
 0x14b   : > { %3112 = vmatpush.bf16.msra.mxu2 %v7448_v19  ;;  %3085 = vmatpush.bf16.msra.mxu0 %v6904_v33  ;;  %v7319_v13 = vld [vmem:[%s11063_s5 + $0x4d0] sm:$0xf]  ;;  %v7064_v19 = vor.u32 %v9871_v12, %v7063_v9  ;;  %v9835_v12 = vld [vmem:[%s11063_s5 + $0x1d4] sm:$0xf] }
 0x14c   : > { %3078 = vmatmul.bf16.vlgmr.msrb.gmra.mxu3 %v11238_v40  ;;  %v9935_v14 = vld [vmem:[%s11063_s5 + $0x4ec] sm:$0xf0] }
 0x14d   : > { %3126 = vmatpush.bf16.msra.mxu3 %v7704_v26  ;;  %3099 = vmatpush.bf16.msra.mxu1 %v7160_v34  ;;  %v7575_v15 = vld [vmem:[%s11063_s5 + $0x6d0] sm:$0xf]  ;;  %v7320_v21 = vor.u32 %v9935_v14, %v7319_v13  ;;  %v6937_v13 = vld [vmem:[%s11063_s5 + $0x1f0] sm:$0xf0] }
 0x14e   : > { %v9999_v16 = vld [vmem:[%s11063_s5 + $0x6ec] sm:$0xf0] }
 0x14f   : > { %3113 = vmatpush.bf16.msra.mxu2 %v7416_v35  ;;  %3086 = vmatpush.bf16.msra.mxu0 %v6872_v48  ;;  %v6775_v22 = vld [vmem:[%s11063_s5 + $0x90] sm:$0xf]  ;;  %v7576_v27 = vor.u32 %v9999_v16, %v7575_v15  ;;  %v2842_v35 = vadd.f32 %v2841_v31, %v12976_v17  ;;  %v9899_v16 = vld [vmem:[%s11063_s5 + $0x3d4] sm:$0xf]  ;;  %v10302_v17 = vld [vmem:[%s11071_s28 + $0x464] sm:$0xf0] }
 0x150   : > { %v9799_v25 = vld [vmem:[%s11063_s5 + $0xac] sm:$0xf0]  ;;  %v9827_v31 = vld [vmem:[%s11063_s5 + $0x194] sm:$0xf] }
 0x151   : > { %3127 = vmatpush.bf16.msra.mxu3 %v7672_v41  ;;  %3100 = vmatpush.bf16.msra.mxu1 %v7128_v49  ;;  %v7031_v26 = vld [vmem:[%s11063_s5 + $0x290] sm:$0xf]  ;;  %v6776_v37 = vor.u32 %v9799_v25, %v6775_v22  ;;  %v11575_v45 = vadd.f32 %v2855_v38, %v2842_v35  ;;  %v6940_v25 = vor.u32 %v9835_v12, %v6937_v13  ;;  %v9891_v35 = vld [vmem:[%s11063_s5 + $0x394] sm:$0xf] }
 0x152   : > { %v9863_v28 = vld [vmem:[%s11063_s5 + $0x2ac] sm:$0xf0] }
 0x153   : > { %3114 = vmatpush.bf16.msra.mxu2 %v7384_v50  ;;  %3087 = vmatpush.bf16.msra.mxu0 %v6840_v1  ;;  %v7287_v29 = vld [vmem:[%s11063_s5 + $0x490] sm:$0xf]  ;;  %v7032_v39 = vor.u32 %v9863_v28, %v7031_v26 }
 0x154   : > { %v9927_v30 = vld [vmem:[%s11063_s5 + $0x4ac] sm:$0xf0] }
 0x155   : > { %3128 = vmatpush.bf16.msra.mxu3 %v7640_v54  ;;  %3101 = vmatpush.bf16.msra.mxu1 %v7096_v3  ;;  %v7543_v33 = vld [vmem:[%s11063_s5 + $0x690] sm:$0xf]  ;;  %v7288_v41 = vor.u32 %v9927_v30, %v7287_v29 }
 0x156   : > { %v9991_v34 = vld [vmem:[%s11063_s5 + $0x6ac] sm:$0xf0] }
 0x157   : > { %3115 = vmatpush.bf16.msra.mxu2 %v7352_v4  ;;  %3088 = vmatpush.bf16.msra.mxu0 %v6808_v18  ;;  %v6743_v42 = vld [vmem:[%s11063_s5 + $0x50] sm:$0xf]  ;;  %v7544_v46 = vor.u32 %v9991_v34, %v7543_v33  ;;  %v7193_v18 = vld [vmem:[%s11063_s5 + $0x3f0] sm:$0xf0]  ;;  %v11604_v34 = vpop.f32.mrf.mxu0 }
 0x158   : > { %v9791_v43 = vld [vmem:[%s11063_s5 + $0x6c] sm:$0xf0]  ;;  %v7196_v29 = vor.u32 %v9899_v16, %v7193_v18  ;;  %v6905_v33 = vld [vmem:[%s11063_s5 + $0x1b0] sm:$0xf0] }
 0x159   : > { %3129 = vmatpush.bf16.msra.mxu3 %v7608_v10  ;;  %3102 = vmatpush.bf16.msra.mxu1 %v7064_v19  ;;  %v6999_v44 = vld [vmem:[%s11063_s5 + $0x250] sm:$0xf]  ;;  %v6744_v53 = vor.u32 %v9791_v43, %v6743_v42  ;;  %v6908_v42 = vor.u32 %v9827_v31, %v6905_v33 }
 0x15a   : > { %v9855_v48 = vld [vmem:[%s11063_s5 + $0x26c] sm:$0xf0] }
 0x15b   : > { %3116 = vmatpush.bf16.msra.mxu2 %v7320_v21  ;;  %v7255_v49 = vld [vmem:[%s11063_s5 + $0x450] sm:$0xf]  ;;  %3089 = vmatpush.bf16.msra.mxu0 %v6776_v37  ;;  %v7000_v57 = vor.u32 %v9855_v48, %v6999_v44  ;;  %v7161_v37 = vld [vmem:[%s11063_s5 + $0x3b0] sm:$0xf0] }
 0x15c   : > { %v9919_v50 = vld [vmem:[%s11063_s5 + $0x46c] sm:$0xf0]  ;;  %v7164_v48 = vor.u32 %v9891_v35, %v7161_v37 }
 0x15d   : > { %3130 = vmatpush.bf16.msra.mxu3 %v7576_v27  ;;  %v7511_v51 = vld [vmem:[%s11063_s5 + $0x650] sm:$0xf]  ;;  %3103 = vmatpush.bf16.msra.mxu1 %v7032_v39  ;;  %v7256_v59 = vor.u32 %v9919_v50, %v7255_v49  ;;  %v11608_v39 = vpop.f32.mrf.mxu1  ;;  %v9819_v50 = vld [vmem:[%s11063_s5 + $0x154] sm:$0xf] }
 0x15e   : > { %v9983_v52 = vld [vmem:[%s11063_s5 + $0x66c] sm:$0xf0] }
 0x15f   : > { %v6711_v54 = vld [vmem:[%s11063_s5 + $0x10] sm:$0xf]  ;;  %3117 = vmatpush.bf16.msra.mxu2 %v7288_v41  ;;  %v7512_v0 = vor.u32 %v9983_v52, %v7511_v51  ;;  %3090 = vmatpush.bf16.msra.mxu0 %v6744_v53  ;;  %v6873_v51 = vld [vmem:[%s11063_s5 + $0x170] sm:$0xf0] }
 0x160   : > { %v9783_v56 = vld [vmem:[%s11063_s5 + $0x2c] sm:$0xf0]  ;;  %v9883_v52 = vld [vmem:[%s11063_s5 + $0x354] sm:$0xf] }
 0x161   : > { %v6967_v61 = vld [vmem:[%s11063_s5 + $0x210] sm:$0xf]  ;;  %3131 = vmatpush.bf16.msra.mxu3 %v7544_v46  ;;  %v6712_v9 = vor.u32 %v9783_v56, %v6711_v54  ;;  %3104 = vmatpush.bf16.msra.mxu1 %v7000_v57  ;;  %v7129_v53 = vld [vmem:[%s11063_s5 + $0x370] sm:$0xf0]  ;;  %v11621_v56 = vpop.f32.mrf.mxu2 }
 0x162   : > { %v9847_v62 = vld [vmem:[%s11063_s5 + $0x22c] sm:$0xf0] }
 0x163   : > { %v7223_v63 = vld [vmem:[%s11063_s5 + $0x410] sm:$0xf]  ;;  %3118 = vmatpush.bf16.msra.mxu2 %v7256_v59  ;;  %v6968_v14 = vor.u32 %v9847_v62, %v6967_v61  ;;  %3091 = vmatpush.bf16.msra.mxu0 %v6712_v9  ;;  %v6876_v59 = vor.u32 %v9819_v50, %v6873_v51  ;;  %v7097_v9 = vld [vmem:[%s11063_s5 + $0x330] sm:$0xf0] }
 0x164   : > { %v9911_v1 = vld [vmem:[%s11063_s5 + $0x42c] sm:$0xf0] }
 0x165   : > { %v7479_v3 = vld [vmem:[%s11063_s5 + $0x610] sm:$0xf]  ;;  %v7224_v15 = vor.u32 %v9911_v1, %v7223_v63  ;;  %3132 = vmatpush.bf16.msra.mxu3 %v7512_v0  ;;  %3105 = vmatpush.bf16.msra.mxu1 %v6968_v14  ;;  %v7132_v0 = vor.u32 %v9883_v52, %v7129_v53  ;;  %v11627_v1 = vpop.f32.mrf.mxu3 }
 0x166   : > { %v9975_v4 = vld [vmem:[%s11063_s5 + $0x62c] sm:$0xf0]  ;;  %3092 = vmatmul.bf16.vlgmr.msra.gmra.mxu0 %v11164_v58 }
 0x167   : > { %v7959_v5 = vld [vmem:[%s11063_s5 + $0x9d0] sm:$0xf]  ;;  %v7480_v19 = vor.u32 %v9975_v4, %v7479_v3  ;;  %3119 = vmatpush.bf16.msra.mxu2 %v7224_v15  ;;  %v9811_v4 = vld [vmem:[%s11063_s5 + $0x114] sm:$0xf]  ;;  %v2883_v15 = vpop.f32.mrf.mxu1 }
 0x168   : > { %v10095_v6 = vld [vmem:[%s11063_s5 + $0x9ec] sm:$0xf0]  ;;  %3106 = vmatmul.bf16.vlgmr.msra.gmra.mxu1 %v11174_v7 }
 0x169   : > { %v8215_v8 = vld [vmem:[%s11063_s5 + $0xbd0] sm:$0xf]  ;;  %v7960_v21 = vor.u32 %v10095_v6, %v7959_v5  ;;  %3133 = vmatpush.bf16.msra.mxu3 %v7480_v19  ;;  %v6841_v5 = vld [vmem:[%s11063_s5 + $0x130] sm:$0xf0]  ;;  %v2869_v6 = vpop.f32.mrf.mxu0 }
 0x16a   : > { %v10159_v10 = vld [vmem:[%s11063_s5 + $0xbec] sm:$0xf0]  ;;  %3120 = vmatmul.bf16.vlgmr.msra.gmra.mxu2 %v11184_v23  ;;  %v6844_v14 = vor.u32 %v9811_v4, %v6841_v5  ;;  %v9851_v4 = vld [vmem:[%s11063_s5 + $0x254] sm:$0xf] }
 0x16b   : > { %v8216_v22 = vor.u32 %v10159_v10, %v8215_v8  ;;  %v7927_v26 = vld [vmem:[%s11063_s5 + $0x990] sm:$0xf]  ;;  %3140 = vmatpush.bf16.msrb.mxu0 %v7960_v21  ;;  %3168 = vmatpush.bf16.msrb.mxu2 %v6940_v25  ;;  %v9875_v8 = vld [vmem:[%s11063_s5 + $0x314] sm:$0xf]  ;;  %v2870_v10 = vadd.f32 %v2869_v6, %v11575_v45 }
 0x16c   : > { %v10087_v27 = vld [vmem:[%s11063_s5 + $0x9ac] sm:$0xf0]  ;;  %3134 = vmatmul.bf16.vlgmr.msra.gmra.mxu3 %v11186_v24  ;;  %v7100_v21 = vor.u32 %v9875_v8, %v7097_v9  ;;  %v6809_v45 = vld [vmem:[%s11063_s5 + $0xf0] sm:$0xf0] }
 0x16d   : > { %v8183_v28 = vld [vmem:[%s11063_s5 + $0xb90] sm:$0xf]  ;;  %v7928_v38 = vor.u32 %v10087_v27, %v7927_v26  ;;  %3154 = vmatpush.bf16.msrb.mxu1 %v8216_v22  ;;  %3182 = vmatpush.bf16.msrb.mxu3 %v7196_v29  ;;  %v2884_v22 = vadd.f32 %v2883_v15, %v2870_v10  ;;  %v9803_v26 = vld [vmem:[%s11063_s5 + $0xd4] sm:$0xf]  ;;  %v2911_v50 = vpop.f32.mrf.mxu3 }
 0x16e   : > { %v10151_v30 = vld [vmem:[%s11063_s5 + $0xbac] sm:$0xf0]  ;;  %v9867_v27 = vld [vmem:[%s11063_s5 + $0x2d4] sm:$0xf]  ;;  %v6812_v31 = vor.u32 %v9803_v26, %v6809_v45 }
 0x16f   : > { %v8184_v41 = vor.u32 %v10151_v30, %v8183_v28  ;;  %v7895_v43 = vld [vmem:[%s11063_s5 + $0x950] sm:$0xf]  ;;  %3141 = vmatpush.bf16.msrb.mxu0 %v7928_v38  ;;  %3169 = vmatpush.bf16.msrb.mxu2 %v6908_v42  ;;  %v7065_v28 = vld [vmem:[%s11063_s5 + $0x2f0] sm:$0xf0] }
 0x170   : > { %v10079_v44 = vld [vmem:[%s11063_s5 + $0x96c] sm:$0xf0]  ;;  %v7068_v38 = vor.u32 %v9867_v27, %v7065_v28  ;;  %v7001_v5 = vld [vmem:[%s11063_s5 + $0x270] sm:$0xf0] }
 0x171   : > { %v8151_v46 = vld [vmem:[%s11063_s5 + $0xb50] sm:$0xf]  ;;  %v7896_v54 = vor.u32 %v10079_v44, %v7895_v43  ;;  %3155 = vmatpush.bf16.msrb.mxu1 %v8184_v41  ;;  %3183 = vmatpush.bf16.msrb.mxu3 %v7164_v48  ;;  %v2897_v41 = vpop.f32.mrf.mxu2  ;;  %v9795_v43 = vld [vmem:[%s11063_s5 + $0x94] sm:$0xf] }
 0x172   : > { %v10143_v49 = vld [vmem:[%s11063_s5 + $0xb6c] sm:$0xf0]  ;;  %v6777_v44 = vld [vmem:[%s11063_s5 + $0xb0] sm:$0xf0] }
 0x173   : > { %v8152_v57 = vor.u32 %v10143_v49, %v8151_v46  ;;  %v7863_v61 = vld [vmem:[%s11063_s5 + $0x910] sm:$0xf]  ;;  %3142 = vmatpush.bf16.msrb.mxu0 %v7896_v54  ;;  %3170 = vmatpush.bf16.msrb.mxu2 %v6876_v59  ;;  %v2898_v46 = vadd.f32 %v2897_v41, %v2884_v22  ;;  %v9859_v48 = vld [vmem:[%s11063_s5 + $0x294] sm:$0xf]  ;;  %v6780_v54 = vor.u32 %v9795_v43, %v6777_v44 }
 0x174   : > { %v10071_v62 = vld [vmem:[%s11063_s5 + $0x92c] sm:$0xf0]  ;;  %v7033_v49 = vld [vmem:[%s11063_s5 + $0x2b0] sm:$0xf0] }
 0x175   : > { %v8119_v63 = vld [vmem:[%s11063_s5 + $0xb10] sm:$0xf]  ;;  %v7864_v12 = vor.u32 %v10071_v62, %v7863_v61  ;;  %3156 = vmatpush.bf16.msrb.mxu1 %v8152_v57  ;;  %3184 = vmatpush.bf16.msrb.mxu3 %v7132_v0  ;;  %v11651_v52 = vadd.f32 %v2911_v50, %v2898_v46  ;;  %v7036_v62 = vor.u32 %v9859_v48, %v7033_v49  ;;  %v9787_v0 = vld [vmem:[%s11063_s5 + $0x54] sm:$0xf] }
 0x176   : > { %v10135_v3 = vld [vmem:[%s11063_s5 + $0xb2c] sm:$0xf0]  ;;  %v9779_v15 = vld [vmem:[%s11063_s5 + $0x14] sm:$0xf] }
 0x177   : > { %v8120_v13 = vor.u32 %v10135_v3, %v8119_v63  ;;  %v7831_v16 = vld [vmem:[%s11063_s5 + $0x8d0] sm:$0xf]  ;;  %3143 = vmatpush.bf16.msrb.mxu0 %v7864_v12  ;;  %3171 = vmatpush.bf16.msrb.mxu2 %v6844_v14  ;;  %12991 = vst [vmem:[#allocation20_spill] sm:$0xff] %v11651_v52  ;;  %v6745_v3 = vld [vmem:[%s11063_s5 + $0x70] sm:$0xf0]  ;;  %v12002_v52 = vld [vmem:[%s11069_s6] sm:$0xff] }
 0x178   : > { %v10063_v18 = vld [vmem:[%s11063_s5 + $0x8ec] sm:$0xf0]  ;;  %v6748_v12 = vor.u32 %v9787_v0, %v6745_v3  ;;  %v9963_v22 = vld [vmem:[%s11063_s5 + $0x5d4] sm:$0xf] }
 0x179   : > { %v8087_v19 = vld [vmem:[%s11063_s5 + $0xad0] sm:$0xf]  ;;  %v7832_v29 = vor.u32 %v10063_v18, %v7831_v16  ;;  %3157 = vmatpush.bf16.msrb.mxu1 %v8120_v13  ;;  %3185 = vmatpush.bf16.msrb.mxu3 %v7100_v21  ;;  %v7004_v16 = vor.u32 %v9851_v4, %v7001_v5  ;;  %v6713_v18 = vld [vmem:[%s11063_s5 + $0x30] sm:$0xf0] }
 0x17a   : > { %v10127_v25 = vld [vmem:[%s11063_s5 + $0xaec] sm:$0xf0]  ;;  %v6969_v21 = vld [vmem:[%s11063_s5 + $0x230] sm:$0xf0] }
 0x17b   : > { %v8088_v30 = vor.u32 %v10127_v25, %v8087_v19  ;;  %v7799_v33 = vld [vmem:[%s11063_s5 + $0x890] sm:$0xf]  ;;  %3144 = vmatpush.bf16.msrb.mxu0 %v7832_v29  ;;  %3172 = vmatpush.bf16.msrb.mxu2 %v6812_v31  ;;  %v9843_v19 = vld [vmem:[%s11063_s5 + $0x214] sm:$0xf]  ;;  %v6716_v31 = vor.u32 %v9779_v15, %v6713_v18 }
 0x17c   : > { %v10055_v35 = vld [vmem:[%s11063_s5 + $0x8ac] sm:$0xf0]  ;;  %v7449_v25 = vld [vmem:[%s11063_s5 + $0x5f0] sm:$0xf0] }
 0x17d   : > { %v8055_v37 = vld [vmem:[%s11063_s5 + $0xa90] sm:$0xf]  ;;  %v7800_v51 = vor.u32 %v10055_v35, %v7799_v33  ;;  %3158 = vmatpush.bf16.msrb.mxu1 %v8088_v30  ;;  %3186 = vmatpush.bf16.msrb.mxu3 %v7068_v38  ;;  %v10027_v26 = vld [vmem:[%s11063_s5 + $0x7d4] sm:$0xf]  ;;  %v7452_v38 = vor.u32 %v9963_v22, %v7449_v25 }
 0x17e   : > { %v10119_v42 = vld [vmem:[%s11063_s5 + $0xaac] sm:$0xf0]  ;;  %v7705_v27 = vld [vmem:[%s11063_s5 + $0x7f0] sm:$0xf0] }
 0x17f   : > { %v8056_v53 = vor.u32 %v10119_v42, %v8055_v37  ;;  %v7767_v57 = vld [vmem:[%s11063_s5 + $0x850] sm:$0xf]  ;;  %3145 = vmatpush.bf16.msrb.mxu0 %v7800_v51  ;;  %3173 = vmatpush.bf16.msrb.mxu2 %v6780_v54  ;;  %v10091_v28 = vld [vmem:[%s11063_s5 + $0x9d4] sm:$0xf]  ;;  %v6972_v37 = vor.u32 %v9843_v19, %v6969_v21  ;;  %v7708_v41 = vor.u32 %v10027_v26, %v7705_v27 }
 0x180   : > { %v10047_v59 = vld [vmem:[%s11063_s5 + $0x86c] sm:$0xf0]  ;;  %v7961_v29 = vld [vmem:[%s11063_s5 + $0x9f0] sm:$0xf0] }
 0x181   : > { %v8023_v61 = vld [vmem:[%s11063_s5 + $0xa50] sm:$0xf]  ;;  %v7768_v6 = vor.u32 %v10047_v59, %v7767_v57  ;;  %3159 = vmatpush.bf16.msrb.mxu1 %v8056_v53  ;;  %3187 = vmatpush.bf16.msrb.mxu3 %v7036_v62  ;;  %v10155_v33 = vld [vmem:[%s11063_s5 + $0xbd4] sm:$0xf]  ;;  %v7964_v42 = vor.u32 %v10091_v28, %v7961_v29 }
 0x182   : > { %v10111_v63 = vld [vmem:[%s11063_s5 + $0xa6c] sm:$0xf0]  ;;  %v8217_v35 = vld [vmem:[%s11063_s5 + $0xbf0] sm:$0xf0] }
 0x183   : > { %v7735_v8 = vld [vmem:[%s11063_s5 + $0x810] sm:$0xf]  ;;  %v8024_v10 = vor.u32 %v10111_v63, %v8023_v61  ;;  %3146 = vmatpush.bf16.msrb.mxu0 %v7768_v6  ;;  %3174 = vmatpush.bf16.msrb.mxu2 %v6748_v12  ;;  %v9955_v43 = vld [vmem:[%s11063_s5 + $0x594] sm:$0xf]  ;;  %v8220_v48 = vor.u32 %v10155_v33, %v8217_v35 }
 0x184   : > { %v10039_v9 = vld [vmem:[%s11063_s5 + $0x82c] sm:$0xf0]  ;;  %v7417_v44 = vld [vmem:[%s11063_s5 + $0x5b0] sm:$0xf0] }
 0x185   : > { %v7991_v13 = vld [vmem:[%s11063_s5 + $0xa10] sm:$0xf]  ;;  %v7736_v45 = vor.u32 %v10039_v9, %v7735_v8  ;;  %3160 = vmatpush.bf16.msrb.mxu1 %v8024_v10  ;;  %3188 = vmatpush.bf16.msrb.mxu3 %v7004_v16  ;;  %v10019_v46 = vld [vmem:[%s11063_s5 + $0x794] sm:$0xf]  ;;  %v7420_v57 = vor.u32 %v9955_v43, %v7417_v44 }
 0x186   : > { %v10103_v14 = vld [vmem:[%s11063_s5 + $0xa2c] sm:$0xf0]  ;;  %v7673_v49 = vld [vmem:[%s11063_s5 + $0x7b0] sm:$0xf0] }
 0x187   : > { %v7992_v30 = vor.u32 %v10103_v14, %v7991_v13  ;;  %3147 = vmatpush.bf16.msrb.mxu0 %v7736_v45  ;;  %v10083_v50 = vld [vmem:[%s11063_s5 + $0x994] sm:$0xf]  ;;  %3175 = vmatpush.bf16.msrb.mxu2 %v6716_v31  ;;  %v7676_v59 = vor.u32 %v10019_v46, %v7673_v49 }
 0x188   : > { %v7929_v51 = vld [vmem:[%s11063_s5 + $0x9b0] sm:$0xf0] }
 0x189   : > { %3161 = vmatpush.bf16.msrb.mxu1 %v7992_v30  ;;  %v10147_v53 = vld [vmem:[%s11063_s5 + $0xb94] sm:$0xf]  ;;  %3189 = vmatpush.bf16.msrb.mxu3 %v6972_v37  ;;  %v7932_v61 = vor.u32 %v10083_v50, %v7929_v51 }
 0x18a   : > { %v8185_v54 = vld [vmem:[%s11063_s5 + $0xbb0] sm:$0xf0]  ;;  %3148 = vmatmul.bf16.vlgmr.msrb.gmra.mxu0 %v11233_v36  ;;  %3176 = vmatmul.bf16.vlgmr.msrb.gmra.mxu2 %v11164_v58 }
 0x18b   : > { %3196 = vmatpush.bf16.msra.mxu0 %v7452_v38  ;;  %3224 = vmatpush.bf16.msra.mxu2 %v7964_v42  ;;  %v9947_v62 = vld [vmem:[%s11063_s5 + $0x554] sm:$0xf]  ;;  %v8188_v3 = vor.u32 %v10147_v53, %v8185_v54 }
 0x18c   : > { %v7385_v63 = vld [vmem:[%s11063_s5 + $0x570] sm:$0xf0]  ;;  %3162 = vmatmul.bf16.vlgmr.msrb.gmra.mxu1 %v11238_v40  ;;  %3190 = vmatmul.bf16.vlgmr.msrb.gmra.mxu3 %v11174_v7 }
 0x18d   : > { %3210 = vmatpush.bf16.msra.mxu1 %v7708_v41  ;;  %v10011_v0 = vld [vmem:[%s11063_s5 + $0x754] sm:$0xf]  ;;  %3238 = vmatpush.bf16.msra.mxu3 %v8220_v48  ;;  %v7388_v10 = vor.u32 %v9947_v62, %v7385_v63 }
 0x18e   : > { %v7641_v4 = vld [vmem:[%s11063_s5 + $0x770] sm:$0xf0] }
 0x18f   : > { %v10075_v5 = vld [vmem:[%s11063_s5 + $0x954] sm:$0xf]  ;;  %3197 = vmatpush.bf16.msra.mxu0 %v7420_v57  ;;  %3225 = vmatpush.bf16.msra.mxu2 %v7932_v61  ;;  %v7644_v12 = vor.u32 %v10011_v0, %v7641_v4 }
 0x190   : > { %v7897_v6 = vld [vmem:[%s11063_s5 + $0x970] sm:$0xf0] }
 0x191   : > { %v10139_v8 = vld [vmem:[%s11063_s5 + $0xb54] sm:$0xf]  ;;  %3211 = vmatpush.bf16.msra.mxu1 %v7676_v59  ;;  %v7900_v13 = vor.u32 %v10075_v5, %v7897_v6  ;;  %3239 = vmatpush.bf16.msra.mxu3 %v8188_v3 }
 0x192   : > { %v8153_v9 = vld [vmem:[%s11063_s5 + $0xb70] sm:$0xf0] }
 0x193   : > { %v9939_v14 = vld [vmem:[%s11063_s5 + $0x514] sm:$0xf]  ;;  %v8156_v18 = vor.u32 %v10139_v8, %v8153_v9  ;;  %3198 = vmatpush.bf16.msra.mxu0 %v7388_v10  ;;  %3226 = vmatpush.bf16.msra.mxu2 %v7900_v13 }
 0x194   : > { %v7353_v15 = vld [vmem:[%s11063_s5 + $0x530] sm:$0xf0] }
 0x195   : > { %v10003_v16 = vld [vmem:[%s11063_s5 + $0x714] sm:$0xf]  ;;  %v7356_v45 = vor.u32 %v9939_v14, %v7353_v15  ;;  %3212 = vmatpush.bf16.msra.mxu1 %v7644_v12  ;;  %3240 = vmatpush.bf16.msra.mxu3 %v8156_v18 }
 0x196   : > { %v7609_v19 = vld [vmem:[%s11063_s5 + $0x730] sm:$0xf0] }
 0x197   : > { %v10067_v21 = vld [vmem:[%s11063_s5 + $0x914] sm:$0xf]  ;;  %v7612_v27 = vor.u32 %v10003_v16, %v7609_v19  ;;  %3199 = vmatpush.bf16.msra.mxu0 %v7356_v45 }
 0x198   : > { %v7865_v22 = vld [vmem:[%s11063_s5 + $0x930] sm:$0xf0] }
 0x199   : > { %v10131_v25 = vld [vmem:[%s11063_s5 + $0xb14] sm:$0xf]  ;;  %v7868_v28 = vor.u32 %v10067_v21, %v7865_v22  ;;  %3213 = vmatpush.bf16.msra.mxu1 %v7612_v27 }
 0x19a   : > { %v8121_v26 = vld [vmem:[%s11063_s5 + $0xb30] sm:$0xf0] }
 0x19b   : > { %v9931_v29 = vld [vmem:[%s11063_s5 + $0x4d4] sm:$0xf]  ;;  %v8124_v33 = vor.u32 %v10131_v25, %v8121_v26  ;;  %3227 = vmatpush.bf16.msra.mxu2 %v7868_v28 }
 0x19c   : > { %v7321_v30 = vld [vmem:[%s11063_s5 + $0x4f0] sm:$0xf0] }
 0x19d   : > { %v9995_v31 = vld [vmem:[%s11063_s5 + $0x6d4] sm:$0xf]  ;;  %v7324_v43 = vor.u32 %v9931_v29, %v7321_v30  ;;  %3241 = vmatpush.bf16.msra.mxu3 %v8124_v33  ;;  %v6943_v29 = vld [vmem:[%s11063_s5 + $0x1d8] sm:$0xf] }
 0x19e   : > { %v7577_v35 = vld [vmem:[%s11063_s5 + $0x6f0] sm:$0xf0]  ;;  %v9840_v30 = vld [vmem:[%s11063_s5 + $0x1f4] sm:$0xf0] }
 0x19f   : > { %v10059_v37 = vld [vmem:[%s11063_s5 + $0x8d4] sm:$0xf]  ;;  %v7580_v44 = vor.u32 %v9995_v31, %v7577_v35  ;;  %3200 = vmatpush.bf16.msra.mxu0 %v7324_v43  ;;  %v7199_v31 = vld [vmem:[%s11063_s5 + $0x3d8] sm:$0xf] }
 0x1a0   : > { %v7833_v38 = vld [vmem:[%s11063_s5 + $0x8f0] sm:$0xf0]  ;;  %v9904_v35 = vld [vmem:[%s11063_s5 + $0x3f4] sm:$0xf0] }
 0x1a1   : > { %v10123_v41 = vld [vmem:[%s11063_s5 + $0xad4] sm:$0xf]  ;;  %v7836_v46 = vor.u32 %v10059_v37, %v7833_v38  ;;  %3214 = vmatpush.bf16.msra.mxu1 %v7580_v44  ;;  %v7455_v37 = vld [vmem:[%s11063_s5 + $0x5d8] sm:$0xf] }
 0x1a2   : > { %v8089_v42 = vld [vmem:[%s11063_s5 + $0xaf0] sm:$0xf0]  ;;  %v9968_v38 = vld [vmem:[%s11063_s5 + $0x5f4] sm:$0xf0] }
 0x1a3   : > { %v9923_v48 = vld [vmem:[%s11063_s5 + $0x494] sm:$0xf]  ;;  %v8092_v51 = vor.u32 %v10123_v41, %v8089_v42  ;;  %3228 = vmatpush.bf16.msra.mxu2 %v7836_v46  ;;  %v7711_v43 = vld [vmem:[%s11063_s5 + $0x7d8] sm:$0xf] }
 0x1a4   : > { %v7289_v49 = vld [vmem:[%s11063_s5 + $0x4b0] sm:$0xf0]  ;;  %v10032_v44 = vld [vmem:[%s11063_s5 + $0x7f4] sm:$0xf0] }
 0x1a5   : > { %v9987_v50 = vld [vmem:[%s11063_s5 + $0x694] sm:$0xf]  ;;  %v7292_v62 = vor.u32 %v9923_v48, %v7289_v49  ;;  %3242 = vmatpush.bf16.msra.mxu3 %v8092_v51  ;;  %v6944_v48 = vor.u32 %v9840_v30, %v6943_v29  ;;  %v7200_v49 = vor.u32 %v9904_v35, %v7199_v31  ;;  %v6911_v51 = vld [vmem:[%s11063_s5 + $0x198] sm:$0xf] }
 0x1a6   : > { %v7545_v53 = vld [vmem:[%s11063_s5 + $0x6b0] sm:$0xf0]  ;;  %v9944_v29 = vld [vmem:[%s11063_s5 + $0x534] sm:$0xf0] }
 0x1a7   : > { %v10051_v54 = vld [vmem:[%s11063_s5 + $0x894] sm:$0xf]  ;;  %v7548_v63 = vor.u32 %v9987_v50, %v7545_v53  ;;  %3201 = vmatpush.bf16.msra.mxu0 %v7292_v62  ;;  %v7456_v50 = vor.u32 %v9968_v38, %v7455_v37  ;;  %v9832_v53 = vld [vmem:[%s11063_s5 + $0x1b4] sm:$0xf0] }
 0x1a8   : > { %v7801_v57 = vld [vmem:[%s11063_s5 + $0x8b0] sm:$0xf0]  ;;  %v9960_v62 = vld [vmem:[%s11063_s5 + $0x5b4] sm:$0xf0] }
 0x1a9   : > { %v10115_v59 = vld [vmem:[%s11063_s5 + $0xa94] sm:$0xf]  ;;  %v7804_v0 = vor.u32 %v10051_v54, %v7801_v57  ;;  %3215 = vmatpush.bf16.msra.mxu1 %v7548_v63  ;;  %v7167_v54 = vld [vmem:[%s11063_s5 + $0x398] sm:$0xf]  ;;  %v7712_v57 = vor.u32 %v10032_v44, %v7711_v43 }
 0x1aa   : > { %v8057_v61 = vld [vmem:[%s11063_s5 + $0xab0] sm:$0xf0]  ;;  %v7679_v63 = vld [vmem:[%s11063_s5 + $0x798] sm:$0xf] }
 0x1ab   : > { %v9915_v3 = vld [vmem:[%s11063_s5 + $0x454] sm:$0xf]  ;;  %v8060_v6 = vor.u32 %v10115_v59, %v8057_v61  ;;  %3229 = vmatpush.bf16.msra.mxu2 %v7804_v0  ;;  %v9896_v59 = vld [vmem:[%s11063_s5 + $0x3b4] sm:$0xf0] }
 0x1ac   : > { %v7257_v4 = vld [vmem:[%s11063_s5 + $0x470] sm:$0xf0]  ;;  %v7423_v61 = vld [vmem:[%s11063_s5 + $0x598] sm:$0xf] }
 0x1ad   : > { %v9979_v5 = vld [vmem:[%s11063_s5 + $0x654] sm:$0xf]  ;;  %v7260_v14 = vor.u32 %v9915_v3, %v7257_v4  ;;  %3243 = vmatpush.bf16.msra.mxu3 %v8060_v6  ;;  %v10024_v0 = vld [vmem:[%s11063_s5 + $0x7b4] sm:$0xf0]  ;;  %v6912_v3 = vor.u32 %v9832_v53, %v6911_v51  ;;  %v7168_v4 = vor.u32 %v9896_v59, %v7167_v54 }
 0x1ae   : > { %v7513_v8 = vld [vmem:[%s11063_s5 + $0x670] sm:$0xf0]  ;;  %v6879_v6 = vld [vmem:[%s11063_s5 + $0x158] sm:$0xf] }
 0x1af   : > { %v10043_v9 = vld [vmem:[%s11063_s5 + $0x854] sm:$0xf]  ;;  %v7516_v18 = vor.u32 %v9979_v5, %v7513_v8  ;;  %3202 = vmatpush.bf16.msra.mxu0 %v7260_v14  ;;  %v7424_v5 = vor.u32 %v9960_v62, %v7423_v61  ;;  %v9824_v8 = vld [vmem:[%s11063_s5 + $0x174] sm:$0xf0] }
 0x1b0   : > { %v7769_v10 = vld [vmem:[%s11063_s5 + $0x870] sm:$0xf0]  ;;  %v9952_v14 = vld [vmem:[%s11063_s5 + $0x574] sm:$0xf0] }
 0x1b1   : > { %v10107_v12 = vld [vmem:[%s11063_s5 + $0xa54] sm:$0xf]  ;;  %v7772_v19 = vor.u32 %v10043_v9, %v7769_v10  ;;  %3216 = vmatpush.bf16.msra.mxu1 %v7516_v18  ;;  %v7135_v9 = vld [vmem:[%s11063_s5 + $0x358] sm:$0xf]  ;;  %v7680_v10 = vor.u32 %v10024_v0, %v7679_v63  ;;  %v6880_v18 = vor.u32 %v9824_v8, %v6879_v6 }
 0x1b2   : > { %v8025_v13 = vld [vmem:[%s11063_s5 + $0xa70] sm:$0xf0]  ;;  %v7615_v30 = vld [vmem:[%s11063_s5 + $0x718] sm:$0xf] }
 0x1b3   : > { %v9907_v15 = vld [vmem:[%s11063_s5 + $0x414] sm:$0xf]  ;;  %v8028_v26 = vor.u32 %v10107_v12, %v8025_v13  ;;  %3230 = vmatpush.bf16.msra.mxu2 %v7772_v19  ;;  %v9888_v12 = vld [vmem:[%s11063_s5 + $0x374] sm:$0xf0] }
 0x1b4   : > { %v7225_v16 = vld [vmem:[%s11063_s5 + $0x430] sm:$0xf0]  ;;  %v7391_v13 = vld [vmem:[%s11063_s5 + $0x558] sm:$0xf]  ;;  %v7136_v19 = vor.u32 %v9888_v12, %v7135_v9 }
 0x1b5   : > { %v9971_v21 = vld [vmem:[%s11063_s5 + $0x614] sm:$0xf]  ;;  %v7228_v33 = vor.u32 %v9907_v15, %v7225_v16  ;;  %3244 = vmatpush.bf16.msra.mxu3 %v8028_v26  ;;  %v7647_v15 = vld [vmem:[%s11063_s5 + $0x758] sm:$0xf] }
 0x1b6   : > { %v7481_v22 = vld [vmem:[%s11063_s5 + $0x630] sm:$0xf0]  ;;  %v10016_v16 = vld [vmem:[%s11063_s5 + $0x774] sm:$0xf0] }
 0x1b7   : > { %v10035_v25 = vld [vmem:[%s11063_s5 + $0x814] sm:$0xf]  ;;  %v7484_v41 = vor.u32 %v9971_v21, %v7481_v22  ;;  %3203 = vmatpush.bf16.msra.mxu0 %v7228_v33  ;;  %v7392_v21 = vor.u32 %v9952_v14, %v7391_v13  ;;  %v6847_v22 = vld [vmem:[%s11063_s5 + $0x118] sm:$0xf] }
 0x1b8   : > { %v7737_v45 = vld [vmem:[%s11063_s5 + $0x830] sm:$0xf0]  ;;  %v7103_v26 = vld [vmem:[%s11063_s5 + $0x318] sm:$0xf] }
 0x1b9   : > { %v10099_v27 = vld [vmem:[%s11063_s5 + $0xa14] sm:$0xf]  ;;  %v7740_v42 = vor.u32 %v10035_v25, %v7737_v45  ;;  %3217 = vmatpush.bf16.msra.mxu1 %v7484_v41  ;;  %v9816_v25 = vld [vmem:[%s11063_s5 + $0x134] sm:$0xf0]  ;;  %v7648_v45 = vor.u32 %v10016_v16, %v7647_v15 }
 0x1ba   : > { %v7993_v28 = vld [vmem:[%s11063_s5 + $0xa30] sm:$0xf0]  ;;  %3204 = vmatmul.bf16.vlgmr.msra.gmra.mxu0 %v11184_v23  ;;  %v10008_v31 = vld [vmem:[%s11063_s5 + $0x734] sm:$0xf0]  ;;  %v6848_v33 = vor.u32 %v9816_v25, %v6847_v22 }
 0x1bb   : > { %v7996_v46 = vor.u32 %v10099_v27, %v7993_v28  ;;  %3231 = vmatpush.bf16.msra.mxu2 %v7740_v42  ;;  %3252 = vmatpush.bf16.msrb.mxu0 %v6944_v48  ;;  %v9880_v27 = vld [vmem:[%s11063_s5 + $0x334] sm:$0xf0]  ;;  %v7616_v43 = vor.u32 %v10008_v31, %v7615_v30 }
 0x1bc   : > { %3218 = vmatmul.bf16.vlgmr.msra.gmra.mxu1 %v11186_v24  ;;  %v7359_v28 = vld [vmem:[%s11063_s5 + $0x518] sm:$0xf]  ;;  %v7104_v35 = vor.u32 %v9880_v27, %v7103_v26 }
 0x1bd   : > { %3245 = vmatpush.bf16.msra.mxu3 %v7996_v46  ;;  %3266 = vmatpush.bf16.msrb.mxu1 %v7200_v49  ;;  %v7360_v37 = vor.u32 %v9944_v29, %v7359_v28  ;;  %v6815_v38 = vld [vmem:[%s11063_s5 + $0xd8] sm:$0xf] }
 0x1be   : > { %3232 = vmatmul.bf16.vlgmr.msra.gmra.mxu2 %v11233_v36  ;;  %v9808_v41 = vld [vmem:[%s11063_s5 + $0xf4] sm:$0xf0] }
 0x1bf   : > { %3280 = vmatpush.bf16.msrb.mxu2 %v7456_v50  ;;  %3253 = vmatpush.bf16.msrb.mxu0 %v6912_v3  ;;  %v7071_v42 = vld [vmem:[%s11063_s5 + $0x2d8] sm:$0xf]  ;;  %v6816_v51 = vor.u32 %v9808_v41, %v6815_v38 }
 0x1c0   : > { %3246 = vmatmul.bf16.vlgmr.msra.gmra.mxu3 %v11238_v40  ;;  %v9872_v44 = vld [vmem:[%s11063_s5 + $0x2f4] sm:$0xf0] }
 0x1c1   : > { %3294 = vmatpush.bf16.msrb.mxu3 %v7712_v57  ;;  %3267 = vmatpush.bf16.msrb.mxu1 %v7168_v4  ;;  %v7327_v46 = vld [vmem:[%s11063_s5 + $0x4d8] sm:$0xf]  ;;  %v7072_v53 = vor.u32 %v9872_v44, %v7071_v42 }
 0x1c2   : > { %v9936_v48 = vld [vmem:[%s11063_s5 + $0x4f4] sm:$0xf0] }
 0x1c3   : > { %3281 = vmatpush.bf16.msrb.mxu2 %v7424_v5  ;;  %3254 = vmatpush.bf16.msrb.mxu0 %v6880_v18  ;;  %v7583_v49 = vld [vmem:[%s11063_s5 + $0x6d8] sm:$0xf]  ;;  %v7328_v54 = vor.u32 %v9936_v48, %v7327_v46  ;;  %v9836_v46 = vld [vmem:[%s11063_s5 + $0x1dc] sm:$0xf] }
 0x1c4   : > { %v10000_v50 = vld [vmem:[%s11063_s5 + $0x6f4] sm:$0xf0]  ;;  %v6945_v48 = vld [vmem:[%s11063_s5 + $0x1f8] sm:$0xf0] }
 0x1c5   : > { %3295 = vmatpush.bf16.msrb.mxu3 %v7680_v10  ;;  %3268 = vmatpush.bf16.msrb.mxu1 %v7136_v19  ;;  %v6783_v57 = vld [vmem:[%s11063_s5 + $0x98] sm:$0xf]  ;;  %v7584_v62 = vor.u32 %v10000_v50, %v7583_v49  ;;  %v11811_v49 = vpop.f32.mrf.mxu0 }
 0x1c6   : > { %v9800_v59 = vld [vmem:[%s11063_s5 + $0xb4] sm:$0xf0] }
 0x1c7   : > { %3282 = vmatpush.bf16.msrb.mxu2 %v7392_v21  ;;  %3255 = vmatpush.bf16.msrb.mxu0 %v6848_v33  ;;  %v7039_v61 = vld [vmem:[%s11063_s5 + $0x298] sm:$0xf]  ;;  %v6784_v6 = vor.u32 %v9800_v59, %v6783_v57  ;;  %v11815_v57 = vpop.f32.mrf.mxu1 }
 0x1c8   : > { %v9864_v63 = vld [vmem:[%s11063_s5 + $0x2b4] sm:$0xf0] }
 0x1c9   : > { %3296 = vmatpush.bf16.msrb.mxu3 %v7648_v45  ;;  %3269 = vmatpush.bf16.msrb.mxu1 %v7104_v35  ;;  %v7295_v0 = vld [vmem:[%s11063_s5 + $0x498] sm:$0xf]  ;;  %v7040_v8 = vor.u32 %v9864_v63, %v7039_v61  ;;  %v6948_v63 = vor.u32 %v9836_v46, %v6945_v48  ;;  %v9812_v46 = vld [vmem:[%s11063_s5 + $0x11c] sm:$0xf] }
 0x1ca   : > { %v9928_v3 = vld [vmem:[%s11063_s5 + $0x4b4] sm:$0xf0]  ;;  %v6849_v48 = vld [vmem:[%s11063_s5 + $0x138] sm:$0xf0] }
 0x1cb   : > { %3283 = vmatpush.bf16.msrb.mxu2 %v7360_v37  ;;  %v7551_v4 = vld [vmem:[%s11063_s5 + $0x698] sm:$0xf]  ;;  %3256 = vmatpush.bf16.msrb.mxu0 %v6816_v51  ;;  %v7296_v9 = vor.u32 %v9928_v3, %v7295_v0 }
 0x1cc   : > { %v9992_v5 = vld [vmem:[%s11063_s5 + $0x6b4] sm:$0xf0] }
 0x1cd   : > { %3297 = vmatpush.bf16.msrb.mxu3 %v7616_v43  ;;  %3270 = vmatpush.bf16.msrb.mxu1 %v7072_v53  ;;  %v6751_v10 = vld [vmem:[%s11063_s5 + $0x58] sm:$0xf]  ;;  %v7552_v14 = vor.u32 %v9992_v5, %v7551_v4  ;;  %v9900_v53 = vld [vmem:[%s11063_s5 + $0x3dc] sm:$0xf] }
 0x1ce   : > { %v9792_v12 = vld [vmem:[%s11063_s5 + $0x74] sm:$0xf0] }
 0x1cf   : > { %3284 = vmatpush.bf16.msrb.mxu2 %v7328_v54  ;;  %v7007_v13 = vld [vmem:[%s11063_s5 + $0x258] sm:$0xf]  ;;  %3257 = vmatpush.bf16.msrb.mxu0 %v6784_v6  ;;  %v6752_v22 = vor.u32 %v9792_v12, %v6751_v10  ;;  %v7201_v54 = vld [vmem:[%s11063_s5 + $0x3f8] sm:$0xf0] }
 0x1d0   : > { %v9856_v15 = vld [vmem:[%s11063_s5 + $0x274] sm:$0xf0]  ;;  %v7204_v5 = vor.u32 %v9900_v53, %v7201_v54  ;;  %v9892_v10 = vld [vmem:[%s11063_s5 + $0x39c] sm:$0xf] }
 0x1d1   : > { %3298 = vmatpush.bf16.msrb.mxu3 %v7584_v62  ;;  %v7263_v16 = vld [vmem:[%s11063_s5 + $0x458] sm:$0xf]  ;;  %3271 = vmatpush.bf16.msrb.mxu1 %v7040_v8  ;;  %v7008_v45 = vor.u32 %v9856_v15, %v7007_v13  ;;  %v9828_v8 = vld [vmem:[%s11063_s5 + $0x19c] sm:$0xf] }
 0x1d2   : > { %v9920_v18 = vld [vmem:[%s11063_s5 + $0x474] sm:$0xf0]  ;;  %v7169_v12 = vld [vmem:[%s11063_s5 + $0x3b8] sm:$0xf0] }
 0x1d3   : > { %v7519_v19 = vld [vmem:[%s11063_s5 + $0x658] sm:$0xf]  ;;  %3285 = vmatpush.bf16.msrb.mxu2 %v7296_v9  ;;  %v7264_v27 = vor.u32 %v9920_v18, %v7263_v16  ;;  %3258 = vmatpush.bf16.msrb.mxu0 %v6752_v22  ;;  %v6913_v9 = vld [vmem:[%s11063_s5 + $0x1b8] sm:$0xf0]  ;;  %v7172_v22 = vor.u32 %v9892_v10, %v7169_v12 }
 0x1d4   : > { %v9984_v21 = vld [vmem:[%s11063_s5 + $0x674] sm:$0xf0]  ;;  %v6916_v15 = vor.u32 %v9828_v8, %v6913_v9  ;;  %v9868_v9 = vld [vmem:[%s11063_s5 + $0x2dc] sm:$0xf] }
 0x1d5   : > { %v6719_v25 = vld [vmem:[%s11063_s5 + $0x18] sm:$0xf]  ;;  %3299 = vmatpush.bf16.msrb.mxu3 %v7552_v14  ;;  %v7520_v31 = vor.u32 %v9984_v21, %v7519_v19  ;;  %3272 = vmatpush.bf16.msrb.mxu1 %v7008_v45  ;;  %v11828_v21 = vpop.f32.mrf.mxu2  ;;  %v6881_v45 = vld [vmem:[%s11063_s5 + $0x178] sm:$0xf0] }
 0x1d6   : > { %v9784_v26 = vld [vmem:[%s11063_s5 + $0x34] sm:$0xf0]  ;;  %v7073_v10 = vld [vmem:[%s11063_s5 + $0x2f8] sm:$0xf0] }
 0x1d7   : > { %v6975_v28 = vld [vmem:[%s11063_s5 + $0x218] sm:$0xf]  ;;  %v6720_v43 = vor.u32 %v9784_v26, %v6719_v25  ;;  %3286 = vmatpush.bf16.msrb.mxu2 %v7264_v27  ;;  %v9820_v26 = vld [vmem:[%s11063_s5 + $0x15c] sm:$0xf]  ;;  %v11834_v27 = vpop.f32.mrf.mxu3 }
 0x1d8   : > { %v9848_v29 = vld [vmem:[%s11063_s5 + $0x234] sm:$0xf0]  ;;  %12992 = vst [vmem:[#allocation21_spill] sm:$0xff] %v11834_v27  ;;  %v12997_v27 = vperm.slane %v11450_v47, 0 }
 0x1d9   : > { %v7231_v30 = vld [vmem:[%s11063_s5 + $0x418] sm:$0xf]  ;;  %v6976_v50 = vor.u32 %v9848_v29, %v6975_v28  ;;  %3300 = vmatpush.bf16.msrb.mxu3 %v7520_v31  ;;  %3259 = vmatpush.bf16.msrb.mxu0 %v6720_v43  ;;  %v11836_v28 = vpop.f32.mrf.mxu0  ;;  %v9884_v29 = vld [vmem:[%s11063_s5 + $0x35c] sm:$0xf]  ;;  %v11842_v31 = vpop.f32.mrf.mxu1 }
 0x1da   : > { %v9912_v33 = vld [vmem:[%s11063_s5 + $0x434] sm:$0xf0] }
 0x1db   : > { %v7487_v35 = vld [vmem:[%s11063_s5 + $0x618] sm:$0xf]  ;;  %v7232_v51 = vor.u32 %v9912_v33, %v7231_v30  ;;  %3273 = vmatpush.bf16.msrb.mxu1 %v6976_v50  ;;  %v7137_v30 = vld [vmem:[%s11063_s5 + $0x378] sm:$0xf0] }
 0x1dc   : > { %v9976_v37 = vld [vmem:[%s11063_s5 + $0x634] sm:$0xf0]  ;;  %3260 = vmatmul.bf16.vlgmr.msrb.gmra.mxu0 %v11164_v58  ;;  %v7140_v43 = vor.u32 %v9884_v29, %v7137_v30  ;;  %v9876_v50 = vld [vmem:[%s11063_s5 + $0x31c] sm:$0xf] }
 0x1dd   : > { %v7967_v38 = vld [vmem:[%s11063_s5 + $0x9d8] sm:$0xf]  ;;  %v7488_v59 = vor.u32 %v9976_v37, %v7487_v35  ;;  %3287 = vmatpush.bf16.msrb.mxu2 %v7232_v51  ;;  %v6884_v37 = vor.u32 %v9820_v26, %v6881_v45  ;;  %v7105_v51 = vld [vmem:[%s11063_s5 + $0x338] sm:$0xf0] }
 0x1de   : > { %v10096_v41 = vld [vmem:[%s11063_s5 + $0x9f4] sm:$0xf0]  ;;  %3274 = vmatmul.bf16.vlgmr.msrb.gmra.mxu1 %v11174_v7  ;;  %v9796_v45 = vld [vmem:[%s11063_s5 + $0x9c] sm:$0xf] }
 0x1df   : > { %v8223_v42 = vld [vmem:[%s11063_s5 + $0xbd8] sm:$0xf]  ;;  %v7968_v61 = vor.u32 %v10096_v41, %v7967_v38  ;;  %3301 = vmatpush.bf16.msrb.mxu3 %v7488_v59  ;;  %v6852_v59 = vor.u32 %v9812_v46, %v6849_v48  ;;  %v11861_v8 = vpop.f32.mrf.mxu3  ;;  %v6785_v29 = vld [vmem:[%s11063_s5 + $0xb8] sm:$0xf0] }
 0x1e0   : > { %v10160_v44 = vld [vmem:[%s11063_s5 + $0xbf4] sm:$0xf0]  ;;  %3288 = vmatmul.bf16.vlgmr.msrb.gmra.mxu2 %v11184_v23  ;;  %v9860_v30 = vld [vmem:[%s11063_s5 + $0x29c] sm:$0xf] }
 0x1e1   : > { %v8224_v62 = vor.u32 %v10160_v44, %v8223_v42  ;;  %v7935_v0 = vld [vmem:[%s11063_s5 + $0x998] sm:$0xf]  ;;  %3308 = vmatpush.bf16.msra.mxu0 %v7968_v61  ;;  %3336 = vmatpush.bf16.msra.mxu2 %v6948_v63  ;;  %v9788_v48 = vld [vmem:[%s11063_s5 + $0x5c] sm:$0xf] }
 0x1e2   : > { %v10088_v3 = vld [vmem:[%s11063_s5 + $0x9b4] sm:$0xf0]  ;;  %3302 = vmatmul.bf16.vlgmr.msrb.gmra.mxu3 %v11186_v24 }
 0x1e3   : > { %v8191_v4 = vld [vmem:[%s11063_s5 + $0xb98] sm:$0xf]  ;;  %v7936_v13 = vor.u32 %v10088_v3, %v7935_v0  ;;  %3322 = vmatpush.bf16.msra.mxu1 %v8224_v62  ;;  %3350 = vmatpush.bf16.msra.mxu3 %v7204_v5  ;;  %v11856_v0 = vpop.f32.mrf.mxu2  ;;  %v7108_v3 = vor.u32 %v9876_v50, %v7105_v51  ;;  %v9804_v5 = vld [vmem:[%s11063_s5 + $0xdc] sm:$0xf] }
 0x1e4   : > { %v10152_v6 = vld [vmem:[%s11063_s5 + $0xbb4] sm:$0xf0]  ;;  %v6753_v50 = vld [vmem:[%s11063_s5 + $0x78] sm:$0xf0] }
 0x1e5   : > { %v8192_v14 = vor.u32 %v10152_v6, %v8191_v4  ;;  %v7903_v16 = vld [vmem:[%s11063_s5 + $0x958] sm:$0xf]  ;;  %3309 = vmatpush.bf16.msra.mxu0 %v7936_v13  ;;  %3337 = vmatpush.bf16.msra.mxu2 %v6916_v15  ;;  %v6817_v6 = vld [vmem:[%s11063_s5 + $0xf8] sm:$0xf0]  ;;  %v11865_v13 = vpop.f32.mrf.mxu0 }
 0x1e6   : > { %v10080_v18 = vld [vmem:[%s11063_s5 + $0x974] sm:$0xf0]  ;;  %v6820_v15 = vor.u32 %v9804_v5, %v6817_v6  ;;  %v9852_v51 = vld [vmem:[%s11063_s5 + $0x25c] sm:$0xf] }
 0x1e7   : > { %v8159_v19 = vld [vmem:[%s11063_s5 + $0xb58] sm:$0xf]  ;;  %v7904_v33 = vor.u32 %v10080_v18, %v7903_v16  ;;  %3323 = vmatpush.bf16.msra.mxu1 %v8192_v14  ;;  %3351 = vmatpush.bf16.msra.mxu3 %v7172_v22  ;;  %v11870_v22 = vpop.f32.mrf.mxu1 }
 0x1e8   : > { %v10144_v25 = vld [vmem:[%s11063_s5 + $0xb74] sm:$0xf0] }
 0x1e9   : > { %v8160_v35 = vor.u32 %v10144_v25, %v8159_v19  ;;  %v7871_v38 = vld [vmem:[%s11063_s5 + $0x918] sm:$0xf]  ;;  %3310 = vmatpush.bf16.msra.mxu0 %v7904_v33  ;;  %3338 = vmatpush.bf16.msra.mxu2 %v6884_v37  ;;  %v7076_v25 = vor.u32 %v9868_v9, %v7073_v10  ;;  %v7041_v33 = vld [vmem:[%s11063_s5 + $0x2b8] sm:$0xf0] }
 0x1ea   : > { %v10072_v41 = vld [vmem:[%s11063_s5 + $0x934] sm:$0xf0]  ;;  %v9780_v9 = vld [vmem:[%s11063_s5 + $0x1c] sm:$0xf] }
 0x1eb   : > { %v8127_v42 = vld [vmem:[%s11063_s5 + $0xb18] sm:$0xf]  ;;  %v7872_v53 = vor.u32 %v10072_v41, %v7871_v38  ;;  %3324 = vmatpush.bf16.msra.mxu1 %v8160_v35  ;;  %3352 = vmatpush.bf16.msra.mxu3 %v7140_v43  ;;  %v6788_v38 = vor.u32 %v9796_v45, %v6785_v29  ;;  %v7713_v29 = vld [vmem:[%s11063_s5 + $0x7f8] sm:$0xf0] }
 0x1ec   : > { %v10136_v44 = vld [vmem:[%s11063_s5 + $0xb34] sm:$0xf0] }
 0x1ed   : > { %v8128_v54 = vor.u32 %v10136_v44, %v8127_v42  ;;  %v7839_v61 = vld [vmem:[%s11063_s5 + $0x8d8] sm:$0xf]  ;;  %3311 = vmatpush.bf16.msra.mxu0 %v7872_v53  ;;  %3339 = vmatpush.bf16.msra.mxu2 %v6852_v59  ;;  %v7044_v44 = vor.u32 %v9860_v30, %v7041_v33  ;;  %v7009_v53 = vld [vmem:[%s11063_s5 + $0x278] sm:$0xf0] }
 0x1ee   : > { %v10064_v62 = vld [vmem:[%s11063_s5 + $0x8f4] sm:$0xf0]  ;;  %v7012_v10 = vor.u32 %v9852_v51, %v7009_v53  ;;  %v10092_v30 = vld [vmem:[%s11063_s5 + $0x9dc] sm:$0xf] }
 0x1ef   : > { %v8095_v63 = vld [vmem:[%s11063_s5 + $0xad8] sm:$0xf]  ;;  %v7840_v12 = vor.u32 %v10064_v62, %v7839_v61  ;;  %3325 = vmatpush.bf16.msra.mxu1 %v8128_v54  ;;  %3353 = vmatpush.bf16.msra.mxu3 %v7108_v3  ;;  %v11885_v54 = vpop.f32.mrf.mxu2  ;;  %v7969_v33 = vld [vmem:[%s11063_s5 + $0x9f8] sm:$0xf0] }
 0x1f0   : > { %v10128_v4 = vld [vmem:[%s11063_s5 + $0xaf4] sm:$0xf0]  ;;  %v10020_v51 = vld [vmem:[%s11063_s5 + $0x79c] sm:$0xf] }
 0x1f1   : > { %v8096_v14 = vor.u32 %v10128_v4, %v8095_v63  ;;  %v7807_v16 = vld [vmem:[%s11063_s5 + $0x898] sm:$0xf]  ;;  %3312 = vmatpush.bf16.msra.mxu0 %v7840_v12  ;;  %3340 = vmatpush.bf16.msra.mxu2 %v6820_v15  ;;  %v11889_v63 = vpop.f32.mrf.mxu3  ;;  %v6756_v4 = vor.u32 %v9788_v48, %v6753_v50  ;;  %v6721_v12 = vld [vmem:[%s11063_s5 + $0x38] sm:$0xf0] }
 0x1f2   : > { %v10056_v18 = vld [vmem:[%s11063_s5 + $0x8b4] sm:$0xf0]  ;;  %v6977_v15 = vld [vmem:[%s11063_s5 + $0x238] sm:$0xf0] }
 0x1f3   : > { %v8063_v19 = vld [vmem:[%s11063_s5 + $0xa98] sm:$0xf]  ;;  %v7808_v35 = vor.u32 %v10056_v18, %v7807_v16  ;;  %3326 = vmatpush.bf16.msra.mxu1 %v8096_v14  ;;  %3354 = vmatpush.bf16.msra.mxu3 %v7076_v25  ;;  %v9844_v14 = vld [vmem:[%s11063_s5 + $0x21c] sm:$0xf]  ;;  %v11897_v16 = vpop.f32.mrf.mxu0 }
 0x1f4   : > { %v10120_v26 = vld [vmem:[%s11063_s5 + $0xab4] sm:$0xf0]  ;;  %v9964_v18 = vld [vmem:[%s11063_s5 + $0x5dc] sm:$0xf] }
 0x1f5   : > { %v8064_v37 = vor.u32 %v10120_v26, %v8063_v19  ;;  %v7775_v41 = vld [vmem:[%s11063_s5 + $0x858] sm:$0xf]  ;;  %3313 = vmatpush.bf16.msra.mxu0 %v7808_v35  ;;  %3341 = vmatpush.bf16.msra.mxu2 %v6788_v38  ;;  %v7457_v19 = vld [vmem:[%s11063_s5 + $0x5f8] sm:$0xf0]  ;;  %v11902_v26 = vpop.f32.mrf.mxu1 }
 0x1f6   : > { %v10048_v42 = vld [vmem:[%s11063_s5 + $0x874] sm:$0xf0]  ;;  %v10028_v25 = vld [vmem:[%s11063_s5 + $0x7dc] sm:$0xf]  ;;  %12993 = vst [vmem:[#allocation22_spill] sm:$0xff] %v11902_v26 }
 0x1f7   : > { %v8031_v43 = vld [vmem:[%s11063_s5 + $0xa58] sm:$0xf]  ;;  %v7776_v59 = vor.u32 %v10048_v42, %v7775_v41  ;;  %3327 = vmatpush.bf16.msra.mxu1 %v8064_v37  ;;  %3355 = vmatpush.bf16.msra.mxu3 %v7044_v44  ;;  %v6724_v37 = vor.u32 %v9780_v9, %v6721_v12  ;;  %v10156_v38 = vld [vmem:[%s11063_s5 + $0xbdc] sm:$0xf]  ;;  %v6980_v42 = vor.u32 %v9844_v14, %v6977_v15  ;;  %v11912_v53 = vpop.f32.mrf.mxu2  ;;  %v10296_v26 = vld [vmem:[%s11071_s28 + $0x434] sm:$0xf0] }
 0x1f8   : > { %v10112_v46 = vld [vmem:[%s11063_s5 + $0xa74] sm:$0xf0]  ;;  %v8225_v41 = vld [vmem:[%s11063_s5 + $0xbf8] sm:$0xf0]  ;;  %v7716_v44 = vor.u32 %v10028_v25, %v7713_v29 }
 0x1f9   : > { %v7743_v61 = vld [vmem:[%s11063_s5 + $0x818] sm:$0xf]  ;;  %v8032_v3 = vor.u32 %v10112_v46, %v8031_v43  ;;  %3314 = vmatpush.bf16.msra.mxu0 %v7776_v59  ;;  %3342 = vmatpush.bf16.msra.mxu2 %v6756_v4  ;;  %v7460_v43 = vor.u32 %v9964_v18, %v7457_v19  ;;  %v7972_v46 = vor.u32 %v10092_v30, %v7969_v33  ;;  %v9956_v48 = vld [vmem:[%s11063_s5 + $0x59c] sm:$0xf]  ;;  %v11917_v4 = vpop.f32.mrf.mxu3 }
 0x1fa   : > { %v10040_v62 = vld [vmem:[%s11063_s5 + $0x834] sm:$0xf0]  ;;  %v7425_v50 = vld [vmem:[%s11063_s5 + $0x5b8] sm:$0xf0]  ;;  %v8228_v59 = vor.u32 %v10156_v38, %v8225_v41 }
 0x1fb   : > { %v7999_v5 = vld [vmem:[%s11063_s5 + $0xa18] sm:$0xf]  ;;  %v7744_v45 = vor.u32 %v10040_v62, %v7743_v61  ;;  %3328 = vmatpush.bf16.msra.mxu1 %v8032_v3  ;;  %3356 = vmatpush.bf16.msra.mxu3 %v7012_v10  ;;  %v7681_v61 = vld [vmem:[%s11063_s5 + $0x7b8] sm:$0xf0]  ;;  %v7428_v9 = vor.u32 %v9956_v48, %v7425_v50  ;;  %v11928_v30 = vpop.f32.mrf.mxu0 }
 0x1fc   : > { %v10104_v6 = vld [vmem:[%s11063_s5 + $0xa34] sm:$0xf0]  ;;  %v10084_v62 = vld [vmem:[%s11063_s5 + $0x99c] sm:$0xf]  ;;  %v7684_v10 = vor.u32 %v10020_v51, %v7681_v61 }
 0x1fd   : > { %v8000_v35 = vor.u32 %v10104_v6, %v7999_v5  ;;  %3315 = vmatpush.bf16.msra.mxu0 %v7744_v45  ;;  %v7937_v3 = vld [vmem:[%s11063_s5 + $0x9b8] sm:$0xf0]  ;;  %3343 = vmatpush.bf16.msra.mxu2 %v6724_v37  ;;  %v11934_v37 = vpop.f32.mrf.mxu1 }
 0x1fe   : > { %v10148_v5 = vld [vmem:[%s11063_s5 + $0xb9c] sm:$0xf]  ;;  %v7940_v12 = vor.u32 %v10084_v62, %v7937_v3  ;;  %12994 = vst [vmem:[#allocation23_spill] sm:$0xff] %v11934_v37 }
 0x1ff   : > { %3329 = vmatpush.bf16.msra.mxu1 %v8000_v35  ;;  %v8193_v6 = vld [vmem:[%s11063_s5 + $0xbb8] sm:$0xf0]  ;;  %3357 = vmatpush.bf16.msra.mxu3 %v6980_v42 }
 0x200   : > { %v9948_v14 = vld [vmem:[%s11063_s5 + $0x55c] sm:$0xf]  ;;  %3316 = vmatmul.bf16.vlgmr.msra.gmra.mxu0 %v11233_v36  ;;  %v8196_v19 = vor.u32 %v10148_v5, %v8193_v6  ;;  %3344 = vmatmul.bf16.vlgmr.msra.gmra.mxu2 %v11164_v58 }
 0x201   : > { %3364 = vmatpush.bf16.msrb.mxu0 %v7460_v43  ;;  %3392 = vmatpush.bf16.msrb.mxu2 %v7972_v46  ;;  %v7393_v15 = vld [vmem:[%s11063_s5 + $0x578] sm:$0xf0]  ;;  %v11947_v3 = vpop.f32.mrf.mxu3 }
 0x202   : > { %v10012_v18 = vld [vmem:[%s11063_s5 + $0x75c] sm:$0xf]  ;;  %3330 = vmatmul.bf16.vlgmr.msra.gmra.mxu1 %v11238_v40  ;;  %v7396_v38 = vor.u32 %v9948_v14, %v7393_v15  ;;  %3358 = vmatmul.bf16.vlgmr.msra.gmra.mxu3 %v11174_v7  ;;  %v11945_v7 = vpop.f32.mrf.mxu2 }
 0x203   : > { %3378 = vmatpush.bf16.msrb.mxu1 %v7716_v44  ;;  %3406 = vmatpush.bf16.msrb.mxu3 %v8228_v59  ;;  %v7649_v25 = vld [vmem:[%s11063_s5 + $0x778] sm:$0xf0] }
 0x204   : > { %v10076_v45 = vld [vmem:[%s11063_s5 + $0x95c] sm:$0xf]  ;;  %v7652_v41 = vor.u32 %v10012_v18, %v7649_v25  ;;  %v11955_v25 = vpop.f32.mrf.mxu0 }
 0x205   : > { %v7905_v29 = vld [vmem:[%s11063_s5 + $0x978] sm:$0xf0]  ;;  %3365 = vmatpush.bf16.msrb.mxu0 %v7428_v9  ;;  %3393 = vmatpush.bf16.msrb.mxu2 %v7940_v12 }
 0x206   : > { %v10140_v33 = vld [vmem:[%s11063_s5 + $0xb5c] sm:$0xf]  ;;  %v7908_v42 = vor.u32 %v10076_v45, %v7905_v29 }
 0x207   : > { %v8161_v35 = vld [vmem:[%s11063_s5 + $0xb78] sm:$0xf0]  ;;  %3379 = vmatpush.bf16.msrb.mxu1 %v7684_v10  ;;  %3407 = vmatpush.bf16.msrb.mxu3 %v8196_v19 }
 0x208   : > { %v9940_v43 = vld [vmem:[%s11063_s5 + $0x51c] sm:$0xf]  ;;  %v8164_v46 = vor.u32 %v10140_v33, %v8161_v35  ;;  %v11959_v33 = vpop.f32.mrf.mxu1 }
 0x209   : > { %v7361_v44 = vld [vmem:[%s11063_s5 + $0x538] sm:$0xf0]  ;;  %3366 = vmatpush.bf16.msrb.mxu0 %v7396_v38  ;;  %3394 = vmatpush.bf16.msrb.mxu2 %v7908_v42 }
 0x20a   : > { %v10004_v58 = vld [vmem:[%s11063_s5 + $0x71c] sm:$0xf]  ;;  %v7364_v62 = vor.u32 %v9940_v43, %v7361_v44 }
 0x20b   : > { %v7617_v48 = vld [vmem:[%s11063_s5 + $0x738] sm:$0xf0]  ;;  %3380 = vmatpush.bf16.msrb.mxu1 %v7652_v41  ;;  %3408 = vmatpush.bf16.msrb.mxu3 %v8164_v46 }
 0x20c   : > { %v10068_v50 = vld [vmem:[%s11063_s5 + $0x91c] sm:$0xf]  ;;  %v7620_v5 = vor.u32 %v10004_v58, %v7617_v48 }
 0x20d   : > { %v7873_v51 = vld [vmem:[%s11063_s5 + $0x938] sm:$0xf0]  ;;  %3367 = vmatpush.bf16.msrb.mxu0 %v7364_v62 }
 0x20e   : > { %v10132_v59 = vld [vmem:[%s11063_s5 + $0xb1c] sm:$0xf]  ;;  %v7876_v6 = vor.u32 %v10068_v50, %v7873_v51 }
 0x20f   : > { %v8129_v61 = vld [vmem:[%s11063_s5 + $0xb38] sm:$0xf0]  ;;  %3381 = vmatpush.bf16.msrb.mxu1 %v7620_v5 }
 0x210   : > { %v9932_v9 = vld [vmem:[%s11063_s5 + $0x4dc] sm:$0xf]  ;;  %v8132_v14 = vor.u32 %v10132_v59, %v8129_v61  ;;  %3395 = vmatpush.bf16.msrb.mxu2 %v7876_v6 }
 0x211   : > { %v7329_v10 = vld [vmem:[%s11063_s5 + $0x4f8] sm:$0xf0] }
 0x212   : > { %v9996_v12 = vld [vmem:[%s11063_s5 + $0x6dc] sm:$0xf]  ;;  %v7332_v35 = vor.u32 %v9932_v9, %v7329_v10  ;;  %3409 = vmatpush.bf16.msrb.mxu3 %v8132_v14 }
 0x213   : > { %v7585_v15 = vld [vmem:[%s11063_s5 + $0x6f8] sm:$0xf0] }
 0x214   : > { %v10060_v18 = vld [vmem:[%s11063_s5 + $0x8dc] sm:$0xf]  ;;  %v7588_v38 = vor.u32 %v9996_v12, %v7585_v15  ;;  %3368 = vmatpush.bf16.msrb.mxu0 %v7332_v35  ;;  %v11972_v12 = vpop.f32.mrf.mxu2 }
 0x215   : > { %v7841_v19 = vld [vmem:[%s11063_s5 + $0x8f8] sm:$0xf0]  ;;  %12995 = vst [vmem:[#allocation24_spill] sm:$0xff] %v11972_v12  ;;  %v8759_v12 = vld [vmem:[%s11071_s28 + $0x420] sm:$0xf] }
 0x216   : > { %v10124_v45 = vld [vmem:[%s11063_s5 + $0xadc] sm:$0xf]  ;;  %v7844_v41 = vor.u32 %v10060_v18, %v7841_v19  ;;  %3382 = vmatpush.bf16.msrb.mxu1 %v7588_v38 }
 0x217   : > { %v8097_v29 = vld [vmem:[%s11063_s5 + $0xaf8] sm:$0xf0] }
 0x218   : > { %v9924_v42 = vld [vmem:[%s11063_s5 + $0x49c] sm:$0xf]  ;;  %v8100_v58 = vor.u32 %v10124_v45, %v8097_v29  ;;  %3396 = vmatpush.bf16.msrb.mxu2 %v7844_v41  ;;  %v11977_v45 = vpop.f32.mrf.mxu3 }
 0x219   : > { %v7297_v43 = vld [vmem:[%s11063_s5 + $0x4b8] sm:$0xf0]  ;;  %12996 = vst [vmem:[#allocation25_spill] sm:$0xff] %v11977_v45 }
 0x21a   : > { %v9988_v44 = vld [vmem:[%s11063_s5 + $0x69c] sm:$0xf]  ;;  %v7300_v61 = vor.u32 %v9924_v42, %v7297_v43  ;;  %3410 = vmatpush.bf16.msrb.mxu3 %v8100_v58  ;;  %v11983_v43 = vpop.f32.mrf.mxu0 }
 0x21b   : > { %v7553_v46 = vld [vmem:[%s11063_s5 + $0x6b8] sm:$0xf0] }
 0x21c   : > { %v10052_v48 = vld [vmem:[%s11063_s5 + $0x89c] sm:$0xf]  ;;  %v7556_v62 = vor.u32 %v9988_v44, %v7553_v46  ;;  %3369 = vmatpush.bf16.msrb.mxu0 %v7300_v61 }
 0x21d   : > { %v7809_v50 = vld [vmem:[%s11063_s5 + $0x8b8] sm:$0xf0] }
 0x21e   : > { %v10116_v51 = vld [vmem:[%s11063_s5 + $0xa9c] sm:$0xf]  ;;  %v7812_v5 = vor.u32 %v10052_v48, %v7809_v50  ;;  %3383 = vmatpush.bf16.msrb.mxu1 %v7556_v62  ;;  %v8399_v62 = vld [vmem:[%s11071_s28 + $0x150] sm:$0xf] }
 0x21f   : > { %v8065_v59 = vld [vmem:[%s11063_s5 + $0xab8] sm:$0xf0] }
 0x220   : > { %v9916_v6 = vld [vmem:[%s11063_s5 + $0x45c] sm:$0xf]  ;;  %v8068_v14 = vor.u32 %v10116_v51, %v8065_v59  ;;  %3397 = vmatpush.bf16.msrb.mxu2 %v7812_v5  ;;  %v11988_v51 = vpop.f32.mrf.mxu1  ;;  %v10206_v5 = vld [vmem:[%s11071_s28 + $0x164] sm:$0xf0] }
 0x221   : > { %v7265_v9 = vld [vmem:[%s11063_s5 + $0x478] sm:$0xf0] }
 0x222   : > { %v9980_v10 = vld [vmem:[%s11063_s5 + $0x65c] sm:$0xf]  ;;  %v7268_v38 = vor.u32 %v9916_v6, %v7265_v9  ;;  %3411 = vmatpush.bf16.msrb.mxu3 %v8068_v14 }
 0x223   : > { %v7521_v15 = vld [vmem:[%s11063_s5 + $0x678] sm:$0xf0] }
 0x224   : > { %v10044_v18 = vld [vmem:[%s11063_s5 + $0x85c] sm:$0xf]  ;;  %v7524_v44 = vor.u32 %v9980_v10, %v7521_v15  ;;  %v8591_v10 = vld [vmem:[%s11071_s28 + $0x2d0] sm:$0xf]  ;;  %3370 = vmatpush.bf16.msrb.mxu0 %v7268_v38  ;;  %v784_v38 = vperm.slane %v12002_v52, 2 }
 0x225   : > { %v7777_v19 = vld [vmem:[%s11063_s5 + $0x878] sm:$0xf0] }
 0x226   : > { %v10108_v29 = vld [vmem:[%s11063_s5 + $0xa5c] sm:$0xf]  ;;  %v7780_v58 = vor.u32 %v10044_v18, %v7777_v19  ;;  %v10254_v18 = vld [vmem:[%s11071_s28 + $0x2e4] sm:$0xf0]  ;;  %v8783_v19 = vld [vmem:[%s11071_s28 + $0x450] sm:$0xf]  ;;  %3384 = vmatpush.bf16.msrb.mxu1 %v7524_v44 }
 0x227   : > { %v8033_v35 = vld [vmem:[%s11063_s5 + $0xa78] sm:$0xf0]  ;;  %v8592_v45 = vor.u32 %v10254_v18, %v8591_v10  ;;  %v8784_v37 = vor.u32 %v10302_v17, %v8783_v19  ;;  %v8375_v44 = vld [vmem:[%s11071_s28 + $0x120] sm:$0xf]  ;;  %v8351_v18 = vld [vmem:[%s11071_s28 + $0xf0] sm:$0xf] }
 0x228   : > { %v9908_v41 = vld [vmem:[%s11063_s5 + $0x41c] sm:$0xf]  ;;  %v8036_v59 = vor.u32 %v10108_v29, %v8033_v35  ;;  %3398 = vmatpush.bf16.msrb.mxu2 %v7780_v58  ;;  %v8975_v35 = vld [vmem:[%s11071_s28 + $0x5d0] sm:$0xf]  ;;  %v10200_v58 = vld [vmem:[%s11071_s28 + $0x134] sm:$0xf0]  ;;  %v12024_v10 = vpop.f32.mrf.mxu1 }
 0x229   : > { %v7233_v42 = vld [vmem:[%s11063_s5 + $0x438] sm:$0xf0]  ;;  %v8951_v17 = vld [vmem:[%s11071_s28 + $0x5a0] sm:$0xf]  ;;  %v10194_v19 = vld [vmem:[%s11071_s28 + $0x104] sm:$0xf0] }
 0x22a   : > { %v9972_v46 = vld [vmem:[%s11063_s5 + $0x61c] sm:$0xf]  ;;  %v7236_v15 = vor.u32 %v9908_v41, %v7233_v42  ;;  %3412 = vmatpush.bf16.msrb.mxu3 %v8036_v59  ;;  %v8400_v42 = vor.u32 %v10206_v5, %v8399_v62  ;;  %v2760_v59 = vadd.f32 %v11514_v20, %v12997_v27  ;;  %v10344_v62 = vld [vmem:[%s11071_s28 + $0x5b4] sm:$0xf0]  ;;  %v785_v5 = vperm.slane %v12002_v52, 3 }
 0x22b   : > { %v7489_v48 = vld [vmem:[%s11063_s5 + $0x638] sm:$0xf0]  ;;  %v8376_v20 = vor.u32 %v10200_v58, %v8375_v44  ;;  %v10188_v44 = vld [vmem:[%s11071_s28 + $0xd4] sm:$0xf0] }
 0x22c   : > { %v10036_v50 = vld [vmem:[%s11063_s5 + $0x81c] sm:$0xf]  ;;  %v7492_v14 = vor.u32 %v9972_v46, %v7489_v48  ;;  %v8567_v46 = vld [vmem:[%s11071_s28 + $0x2a0] sm:$0xf]  ;;  %v12008_v48 = vpop.f32.mrf.mxu2  ;;  %3371 = vmatpush.bf16.msrb.mxu0 %v7236_v15  ;;  %v8760_v15 = vor.u32 %v10296_v26, %v8759_v12  ;;  %v2774_v26 = vadd.f32 %v11524_v32, %v2760_v59  ;;  %v3010_v12 = vadd.f32 %v11912_v53, %v785_v5 }
 0x22d   : > { %v7745_v61 = vld [vmem:[%s11063_s5 + $0x838] sm:$0xf0]  ;;  %v3012_v32 = vadd.f32 %v11945_v7, %v785_v5  ;;  %v10284_v7 = vld [vmem:[%s11071_s28 + $0x3d4] sm:$0xf0] }
 0x22e   : > { %v10100_v6 = vld [vmem:[%s11063_s5 + $0xa1c] sm:$0xf]  ;;  %v7748_v29 = vor.u32 %v10036_v50, %v7745_v61  ;;  %v8976_v50 = vor.u32 %v10350_v55, %v8975_v35  ;;  %v10248_v61 = vld [vmem:[%s11071_s28 + $0x2b4] sm:$0xf0]  ;;  %3385 = vmatpush.bf16.msrb.mxu1 %v7492_v14  ;;  %v2926_v55 = vadd.f32 %v11836_v28, %v784_v38  ;;  %v8543_v14 = vld [vmem:[%s11071_s28 + $0x270] sm:$0xf]  ;;  %v2928_v35 = vadd.f32 %v11865_v13, %v784_v38 }
 0x22f   : > { %v8001_v9 = vld [vmem:[%s11063_s5 + $0xa38] sm:$0xf0]  ;;  %v8568_v27 = vor.u32 %v10248_v61, %v8567_v46  ;;  %v12998_v28 = vperm.slane %v11450_v47, 1  ;;  %3372 = vmatmul.bf16.vlgmr.msrb.gmra.mxu0 %v11184_v23  ;;  %v8927_v47 = vld [vmem:[%s11071_s28 + $0x570] sm:$0xf]  ;;  %v8352_v23 = vor.u32 %v10194_v19, %v8351_v18  ;;  %v2788_v59 = vadd.f32 %v11544_v60, %v2774_v26 }
 0x230   : > { %v8004_v41 = vor.u32 %v10100_v6, %v8001_v9  ;;  %v12016_v6 = vpop.f32.mrf.mxu3  ;;  %v12018_v9 = vpop.f32.mrf.mxu0  ;;  %3399 = vmatpush.bf16.msrb.mxu2 %v7748_v29  ;;  %5760 = vmatpush.bf16.msra.mxu0 %v8400_v42  ;;  %v10242_v42 = vld [vmem:[%s11071_s28 + $0x284] sm:$0xf0]  ;;  %v2940_v13 = vadd.f32 %v11842_v31, %v2926_v55  ;;  %v8327_v38 = vld [vmem:[%s11071_s28 + $0xc0] sm:$0xf]  ;;  %v10332_v55 = vld [vmem:[%s11071_s28 + $0x554] sm:$0xf0] }
 0x231   : > { %v2844_v29 = vadd.f32 %v11621_v56, %v12998_v28  ;;  %3386 = vmatmul.bf16.vlgmr.msrb.gmra.mxu1 %v11186_v24  ;;  %v10338_v56 = vld [vmem:[%s11071_s28 + $0x584] sm:$0xf0]  ;;  %v8544_v24 = vor.u32 %v10242_v42, %v8543_v14  ;;  %v8519_v31 = vld [vmem:[%s11071_s28 + $0x240] sm:$0xf]  ;;  %v8328_v5 = vor.u32 %v10188_v44, %v8327_v38  ;;  %v8303_v18 = vld [vmem:[%s11071_s28 + $0x90] sm:$0xf]  ;;  %v12071_v28 = vpop.f32.mrf.mxu1  ;;  %v2802_v42 = vadd.f32 %v11549_v2, %v2788_v59 }
 0x232   : > { %3413 = vmatpush.bf16.msrb.mxu3 %v8004_v41  ;;  %5774 = vmatpush.bf16.msra.mxu1 %v8592_v45  ;;  %v8952_v41 = vor.u32 %v10344_v62, %v8951_v17  ;;  %v8735_v45 = vld [vmem:[%s11071_s28 + $0x3f0] sm:$0xf]  ;;  %v8928_v46 = vor.u32 %v10338_v56, %v8927_v47  ;;  %v8711_v61 = vld [vmem:[%s11071_s28 + $0x3c0] sm:$0xf]  ;;  %v10182_v19 = vld [vmem:[%s11071_s28 + $0xa4] sm:$0xf0] }
 0x233   : > { %3400 = vmatmul.bf16.vlgmr.msrb.gmra.mxu2 %v11233_v36  ;;  %v2858_v53 = vadd.f32 %v11627_v1, %v2844_v29  ;;  %v8903_v62 = vld [vmem:[%s11071_s28 + $0x540] sm:$0xf]  ;;  %v2954_v1 = vadd.f32 %v11856_v0, %v2940_v13  ;;  %v8495_v0 = vld [vmem:[%s11071_s28 + $0x210] sm:$0xf]  ;;  %v10230_v29 = vld [vmem:[%s11071_s28 + $0x224] sm:$0xf0] }
 0x234   : > { %5788 = vmatpush.bf16.msra.mxu2 %v8784_v37  ;;  %v10290_v37 = vld [vmem:[%s11071_s28 + $0x404] sm:$0xf0]  ;;  %5761 = vmatpush.bf16.msra.mxu0 %v8376_v20  ;;  %v12051_v58 = vpop.f32.mrf.mxu2  ;;  %v3026_v20 = vadd.f32 %v11947_v3, %v3012_v32  ;;  %v8904_v3 = vor.u32 %v10332_v55, %v8903_v62  ;;  %v8496_v56 = vor.u32 %v10230_v29, %v8495_v0  ;;  %v8279_v2 = vld [vmem:[%s11071_s28 + $0x60] sm:$0xf]  ;;  %v10272_v38 = vld [vmem:[%s11071_s28 + $0x374] sm:$0xf0] }
 0x235   : > { %3414 = vmatmul.bf16.vlgmr.msrb.gmra.mxu3 %v11238_v40  ;;  %v8736_v36 = vor.u32 %v10290_v37, %v8735_v45  ;;  %v2942_v40 = vadd.f32 %v11870_v22, %v2928_v35  ;;  %v3024_v22 = vadd.f32 %v11917_v4, %v3010_v12  ;;  %v2872_v4 = vadd.f32 %v11811_v49, %v2858_v53  ;;  %v8687_v35 = vld [vmem:[%s11071_s28 + $0x390] sm:$0xf]  ;;  %v10326_v37 = vld [vmem:[%s11071_s28 + $0x524] sm:$0xf0]  ;;  %v10176_v12 = vld [vmem:[%s11071_s28 + $0x74] sm:$0xf0] }
 0x236   : > { %5802 = vmatpush.bf16.msra.mxu3 %v8976_v50  ;;  %5775 = vmatpush.bf16.msra.mxu1 %v8568_v27  ;;  %v10236_v50 = vld [vmem:[%s11071_s28 + $0x254] sm:$0xf0]  ;;  %v8879_v45 = vld [vmem:[%s11071_s28 + $0x510] sm:$0xf]  ;;  %v2968_v26 = vadd.f32 %v11861_v8, %v2954_v1  ;;  %v3040_v47 = vadd.f32 %v11983_v43, %v3026_v20  ;;  %v2816_v43 = vadd.f32 %v11604_v34, %v2802_v42  ;;  %v8855_v44 = vld [vmem:[%s11071_s28 + $0x4e0] sm:$0xf] }
 0x237   : > { %v8520_v60 = vor.u32 %v10236_v50, %v8519_v31  ;;  %v2956_v14 = vadd.f32 %v11885_v54, %v2942_v40  ;;  %v3038_v49 = vadd.f32 %v11955_v25, %v3024_v22  ;;  %v8304_v54 = vor.u32 %v10182_v19, %v8303_v18  ;;  %v10320_v31 = vld [vmem:[%s11071_s28 + $0x4f4] sm:$0xf0]  ;;  %v10218_v55 = vld [vmem:[%s11071_s28 + $0x1c4] sm:$0xf0]  ;;  %v8639_v1 = vld [vmem:[%s11071_s28 + $0x330] sm:$0xf] }
 0x238   : > { %5789 = vmatpush.bf16.msra.mxu2 %v8760_v15  ;;  %v12057_v17 = vpop.f32.mrf.mxu3  ;;  %5762 = vmatpush.bf16.msra.mxu0 %v8352_v23  ;;  %v12064_v27 = vpop.f32.mrf.mxu0  ;;  %v8712_v15 = vor.u32 %v10284_v7, %v8711_v61  ;;  %v8471_v23 = vld [vmem:[%s11071_s28 + $0x1e0] sm:$0xf]  ;;  %v2886_v8 = vadd.f32 %v11815_v57, %v2872_v4  ;;  %v8880_v25 = vor.u32 %v10326_v37, %v8879_v45  ;;  %v10170_v7 = vld [vmem:[%s11071_s28 + $0x44] sm:$0xf0]  ;;  %v13000_v0 = vld [vmem:[#allocation22_spill] sm:$0xff] }
 0x239   : > { %v2970_v32 = vadd.f32 %v11889_v63, %v2956_v14  ;;  %v2982_v40 = vadd.f32 %v11897_v16, %v2968_v26  ;;  %v3052_v57 = vadd.f32 %v11959_v33, %v3038_v49  ;;  %v3054_v50 = vadd.f32 %v11988_v51, %v3040_v47  ;;  %v8255_v16 = vld [vmem:[%s11071_s28 + $0x30] sm:$0xf]  ;;  %v10266_v22 = vld [vmem:[%s11071_s28 + $0x344] sm:$0xf0]  ;;  %v12117_v14 = vpop.f32.mrf.mxu1  ;;  %v8423_v42 = vld [vmem:[%s11071_s28 + $0x180] sm:$0xf] }
 0x23a   : > { %5803 = vmatpush.bf16.msra.mxu3 %v8952_v41  ;;  %5776 = vmatpush.bf16.msra.mxu1 %v8544_v24  ;;  %v10278_v41 = vld [vmem:[%s11071_s28 + $0x3a4] sm:$0xf0]  ;;  %v10224_v24 = vld [vmem:[%s11071_s28 + $0x1f4] sm:$0xf0]  ;;  %v2900_v53 = vadd.f32 %v11828_v21, %v2886_v8  ;;  %v8447_v33 = vld [vmem:[%s11071_s28 + $0x1b0] sm:$0xf]  ;;  %v8856_v62 = vor.u32 %v10320_v31, %v8855_v44  ;;  %v2830_v18 = vadd.f32 %v11608_v39, %v2816_v43 }
 0x23b   : > { %v8688_v13 = vor.u32 %v10278_v41, %v8687_v35  ;;  %v8472_v21 = vor.u32 %v10224_v24, %v8471_v23  ;;  %v2984_v59 = vadd.f32 %v11928_v30, %v2970_v32  ;;  %v3420_v51 = vmax.f32 %v11554_v11, 0.0  ;;  %v12999_v30 = vld [vmem:[#allocation21_spill] sm:$0xff]  ;;  %v10164_v41 = vld [vmem:[%s11071_s28 + $0x14] sm:$0xf0]  ;;  %v13002_v37 = vld [vmem:[#allocation23_spill] sm:$0xff] }
 0x23c   : > { %5790 = vmatpush.bf16.msra.mxu2 %v8736_v36  ;;  %5763 = vmatpush.bf16.msra.mxu0 %v8328_v5  ;;  %v8663_v36 = vld [vmem:[%s11071_s28 + $0x360] sm:$0xf]  ;;  %v12096_v63 = vpop.f32.mrf.mxu2  ;;  %v3068_v5 = vadd.f32 %v12008_v48, %v3054_v50  ;;  %v2914_v19 = vadd.f32 %v12999_v30, %v2900_v53  ;;  %v2996_v4 = vadd.f32 %v13000_v0, %v2982_v40  ;;  %v10212_v45 = vld [vmem:[%s11071_s28 + $0x194] sm:$0xf0]  ;;  %v10398_v23 = vld [vmem:[%s11071_s28 + $0x764] sm:$0xf0] }
 0x23d   : > { %v8664_v61 = vor.u32 %v10272_v38, %v8663_v36  ;;  %v8256_v11 = vor.u32 %v10170_v7, %v8255_v16  ;;  %v8231_v48 = vld [vmem:[%s11071_s28] sm:$0xf]  ;;  %v8448_v39 = vor.u32 %v10218_v55, %v8447_v33  ;;  %v8640_v35 = vor.u32 %v10266_v22, %v8639_v1  ;;  %v10260_v47 = vld [vmem:[%s11071_s28 + $0x314] sm:$0xf0]  ;;  %v9359_v24 = vld [vmem:[%s11071_s28 + $0x8d0] sm:$0xf] }
 0x23e   : > { %5804 = vmatpush.bf16.msra.mxu3 %v8928_v46  ;;  %5777 = vmatpush.bf16.msra.mxu1 %v8520_v60  ;;  %v8280_v46 = vor.u32 %v10176_v12, %v8279_v2  ;;  %v8831_v60 = vld [vmem:[%s11071_s28 + $0x4b0] sm:$0xf]  ;;  %v2998_v26 = vadd.f32 %v13002_v37, %v2984_v59  ;;  %v10308_v2 = vld [vmem:[%s11071_s28 + $0x494] sm:$0xf0]  ;;  %v3428_v8 = vmax.f32 %v2830_v18, 0.0  ;;  %v3429_v32 = vmax.f32 %v2914_v19, 0.0 }
 0x23f   : > { %v9167_v12 = vld [vmem:[%s11071_s28 + $0x750] sm:$0xf]  ;;  %v10446_v36 = vld [vmem:[%s11071_s28 + $0x8e4] sm:$0xf0]  ;;  %v3422_v43 = vmax.f32 %v2996_v4, 0.0  ;;  %v787_v19 = vperm.slane %v12002_v52, 5 }
 0x240   : > { %5791 = vmatpush.bf16.msra.mxu2 %v8712_v15  ;;  %5764 = vmatpush.bf16.msra.mxu0 %v8304_v54  ;;  %v12099_v34 = vpop.f32.mrf.mxu3  ;;  %v12110_v20 = vpop.f32.mrf.mxu0  ;;  %v10314_v15 = vld [vmem:[%s11071_s28 + $0x4c4] sm:$0xf0]  ;;  %v8615_v54 = vld [vmem:[%s11071_s28 + $0x300] sm:$0xf]  ;;  %v13003_v44 = vld [vmem:[#allocation25_spill] sm:$0xff]  ;;  %v12141_v22 = vpack.c.bf16 %v3428_v8, %v3420_v51 }
 0x241   : > { %v8832_v49 = vor.u32 %v10314_v15, %v8831_v60  ;;  %v8616_v53 = vor.u32 %v10260_v47, %v8615_v54  ;;  %v10494_v16 = vld [vmem:[%s11071_s28 + $0xa64] sm:$0xf0]  ;;  %v9143_v55 = vld [vmem:[%s11071_s28 + $0x720] sm:$0xf]  ;;  %v10392_v1 = vld [vmem:[%s11071_s28 + $0x734] sm:$0xf0] }
 0x242   : > { %5805 = vmatpush.bf16.msra.mxu3 %v8904_v3  ;;  %5778 = vmatpush.bf16.msra.mxu1 %v8496_v56  ;;  %v13001_v3 = vld [vmem:[#allocation24_spill] sm:$0xff]  ;;  %v8807_v56 = vld [vmem:[%s11071_s28 + $0x480] sm:$0xf]  ;;  %v10440_v60 = vld [vmem:[%s11071_s28 + $0x8b4] sm:$0xf0] }
 0x243   : > { %v3066_v29 = vadd.f32 %v13001_v3, %v3052_v57  ;;  %v3430_v57 = vmax.f32 %v2998_v26, 0.0  ;;  %v8808_v50 = vor.u32 %v10308_v2, %v8807_v56  ;;  %v13004_v7 = vld [vmem:[#allocation20_spill] sm:$0xff]  ;;  %v9527_v3 = vld [vmem:[%s11071_s28 + $0xa20] sm:$0xf]  ;;  %v9503_v56 = vld [vmem:[%s11071_s28 + $0x9f0] sm:$0xf] }
 0x244   : > { %5792 = vmatpush.bf16.msra.mxu2 %v8688_v13  ;;  %5765 = vmatpush.bf16.msra.mxu0 %v8280_v46  ;;  %v3082_v13 = vadd.f32 %v12016_v6, %v3068_v5  ;;  %v3177_v38 = vpop.f32.mrf.mxu2  ;;  %v8424_v6 = vor.u32 %v10212_v45, %v8423_v42  ;;  %v786_v46 = vperm.slane %v12002_v52, 4  ;;  %v3421_v33 = vmax.f32 %v13004_v7, 0.0  ;;  %v9335_v5 = vld [vmem:[%s11071_s28 + $0x8a0] sm:$0xf]  ;;  %v10386_v42 = vld [vmem:[%s11071_s28 + $0x704] sm:$0xf0] }
 0x245   : > { %v3080_v31 = vadd.f32 %v13003_v44, %v3066_v29  ;;  %v12150_v4 = vpack.c.bf16 %v3430_v57, %v3422_v43  ;;  %v10488_v29 = vld [vmem:[%s11071_s28 + $0xa34] sm:$0xf0]  ;;  %v9311_v45 = vld [vmem:[%s11071_s28 + $0x870] sm:$0xf]  ;;  %v10434_v37 = vld [vmem:[%s11071_s28 + $0x884] sm:$0xf0]  ;;  %v3178_v26 = vadd.f32 %v3177_v38, %v787_v19 }
 0x246   : > { %5806 = vmatpush.bf16.msra.mxu3 %v8880_v25  ;;  %5779 = vmatpush.bf16.msra.mxu1 %v8472_v21  ;;  %v8232_v25 = vor.u32 %v10164_v41, %v8231_v48  ;;  %v9168_v21 = vor.u32 %v10398_v23, %v9167_v12  ;;  %v3431_v59 = vmax.f32 %v3082_v13, 0.0  ;;  %v12145_v15 = vpack.c.bf16 %v3429_v32, %v3421_v33  ;;  %v10482_v13 = vld [vmem:[%s11071_s28 + $0xa04] sm:$0xf0]  ;;  %v9095_v8 = vld [vmem:[%s11071_s28 + $0x6c0] sm:$0xf] }
 0x247   : > { %v3423_v18 = vmax.f32 %v3080_v31, 0.0  ;;  %v3094_v51 = vadd.f32 %v12018_v9, %v786_v46  ;;  %v9144_v48 = vor.u32 %v10392_v1, %v9143_v55  ;;  %v9336_v41 = vor.u32 %v10440_v60, %v9335_v5  ;;  %v9119_v9 = vld [vmem:[%s11071_s28 + $0x6f0] sm:$0xf]  ;;  %v10380_v32 = vld [vmem:[%s11071_s28 + $0x6d4] sm:$0xf0] }
 0x248   : > { %5793 = vmatpush.bf16.msra.mxu2 %v8664_v61  ;;  %5766 = vmatpush.bf16.msra.mxu0 %v8256_v11  ;;  %v3191_v40 = vpop.f32.mrf.mxu3  ;;  %v9551_v61 = vld [vmem:[%s11071_s28 + $0xa50] sm:$0xf]  ;;  %v12147_v30 = vpop.f32.mrf.mxu0  ;;  %v9120_v54 = vor.u32 %v10386_v42, %v9119_v9  ;;  %v9312_v12 = vor.u32 %v10434_v37, %v9311_v45  ;;  %v9504_v38 = vor.u32 %v10482_v13, %v9503_v56  ;;  %v9479_v31 = vld [vmem:[%s11071_s28 + $0x9c0] sm:$0xf]  ;;  %v10368_v60 = vld [vmem:[%s11071_s28 + $0x674] sm:$0xf0] }
 0x249   : > { %v9552_v0 = vor.u32 %v10494_v16, %v9551_v61  ;;  %v12153_v11 = vpop.f32.mrf.mxu1  ;;  %v10422_v61 = vld [vmem:[%s11071_s28 + $0x824] sm:$0xf0]  ;;  %v9047_v5 = vld [vmem:[%s11071_s28 + $0x660] sm:$0xf]  ;;  %v9023_v37 = vld [vmem:[%s11071_s28 + $0x630] sm:$0xf] }
 0x24a   : > { %5807 = vmatpush.bf16.msra.mxu3 %v8856_v62  ;;  %5780 = vmatpush.bf16.msra.mxu1 %v8448_v39  ;;  %v9360_v62 = vor.u32 %v10446_v36, %v9359_v24  ;;  %v12157_v39 = vpack.c.bf16 %v3431_v59, %v3423_v18  ;;  %v10428_v24 = vld [vmem:[%s11071_s28 + $0x854] sm:$0xf0]  ;;  %v3192_v36 = vadd.f32 %v3191_v40, %v3178_v26  ;;  %v9071_v40 = vld [vmem:[%s11071_s28 + $0x690] sm:$0xf]  ;;  %v10362_v26 = vld [vmem:[%s11071_s28 + $0x644] sm:$0xf0] }
 0x24b   : > { %v9455_v59 = vld [vmem:[%s11071_s28 + $0x990] sm:$0xf]  ;;  %v9024_v56 = vor.u32 %v10362_v26, %v9023_v37  ;;  %v10287_v26 = vld [vmem:[%s11071_s28 + $0x3f4] sm:$0xf] }
 0x24c   : > { %5794 = vmatpush.bf16.msra.mxu2 %v8640_v35  ;;  %5767 = vmatpush.bf16.msra.mxu0 %v8232_v25  ;;  %v3096_v35 = vadd.f32 %v12064_v27, %v786_v46  ;;  %v9528_v27 = vor.u32 %v10488_v29, %v9527_v3  ;;  %v3179_v47 = vpop.f32.mrf.mxu2  ;;  %v9287_v25 = vld [vmem:[%s11071_s28 + $0x840] sm:$0xf]  ;;  %v9048_v29 = vor.u32 %v10368_v60, %v9047_v5  ;;  %v9407_v13 = vld [vmem:[%s11071_s28 + $0x930] sm:$0xf]  ;;  %v8569_v5 = vld [vmem:[%s11071_s28 + $0x2b8] sm:$0xf0] }
 0x24d   : > { %v3180_v57 = vadd.f32 %v3179_v47, %v787_v19  ;;  %v9288_v46 = vor.u32 %v10428_v24, %v9287_v25  ;;  %v9239_v19 = vld [vmem:[%s11071_s28 + $0x7e0] sm:$0xf]  ;;  %v10356_v25 = vld [vmem:[%s11071_s28 + $0x614] sm:$0xf0] }
 0x24e   : > { %5808 = vmatpush.bf16.msra.mxu3 %v8832_v49  ;;  %5781 = vmatpush.bf16.msra.mxu1 %v8424_v6  ;;  %v3108_v49 = vadd.f32 %v12024_v10, %v3094_v51  ;;  %v3110_v2 = vadd.f32 %v12071_v28, %v3096_v35  ;;  %v9096_v28 = vor.u32 %v10380_v32, %v9095_v8  ;;  %v10476_v6 = vld [vmem:[%s11071_s28 + $0x9d4] sm:$0xf0]  ;;  %v9431_v35 = vld [vmem:[%s11071_s28 + $0x960] sm:$0xf] }
 0x24f   : > { %5768 = vmatmul.bf16.vlgmr.msra.gmra.mxu0 %v12141_v22  ;;  %v9480_v16 = vor.u32 %v10476_v6, %v9479_v31  ;;  %v8999_v32 = vld [vmem:[%s11071_s28 + $0x600] sm:$0xf]  ;;  %v10251_v31 = vld [vmem:[%s11071_s28 + $0x2d4] sm:$0xf]  ;;  %v8593_v6 = vld [vmem:[%s11071_s28 + $0x2e8] sm:$0xf0] }
 0x250   : > { %5795 = vmatpush.bf16.msra.mxu2 %v8616_v53  ;;  %5816 = vmatpush.bf16.msrb.mxu0 %v9168_v21  ;;  %v3193_v23 = vpop.f32.mrf.mxu3  ;;  %v3205_v10 = vpop.f32.mrf.mxu0  ;;  %v3122_v43 = vadd.f32 %v12051_v58, %v3108_v49  ;;  %v3124_v53 = vadd.f32 %v12096_v63, %v3110_v2  ;;  %v9263_v21 = vld [vmem:[%s11071_s28 + $0x810] sm:$0xf]  ;;  %v10470_v63 = vld [vmem:[%s11071_s28 + $0x9a4] sm:$0xf0]  ;;  %v9191_v24 = vld [vmem:[%s11071_s28 + $0x780] sm:$0xf] }
 0x251   : > { %5782 = vmatmul.bf16.vlgmr.msra.gmra.mxu1 %v12145_v15  ;;  %v3219_v44 = vpop.f32.mrf.mxu1  ;;  %v3206_v58 = vadd.f32 %v3205_v10, %v3192_v36  ;;  %v3194_v55 = vadd.f32 %v3193_v23, %v3180_v57  ;;  %v9264_v1 = vor.u32 %v10422_v61, %v9263_v21  ;;  %v9456_v3 = vor.u32 %v10470_v63, %v9455_v59  ;;  %v9215_v49 = vld [vmem:[%s11071_s28 + $0x7b0] sm:$0xf]  ;;  %v10458_v2 = vld [vmem:[%s11071_s28 + $0x944] sm:$0xf0]  ;;  %v10404_v10 = vld [vmem:[%s11071_s28 + $0x794] sm:$0xf0] }
 0x252   : > { %5809 = vmatpush.bf16.msra.mxu3 %v8808_v50  ;;  %5830 = vmatpush.bf16.msrb.mxu1 %v9360_v62  ;;  %v10374_v50 = vld [vmem:[%s11071_s28 + $0x6a4] sm:$0xf0]  ;;  %v3136_v7 = vadd.f32 %v12057_v17, %v3122_v43  ;;  %v3138_v62 = vadd.f32 %v12099_v34, %v3124_v53  ;;  %v9000_v57 = vor.u32 %v10356_v25, %v8999_v32  ;;  %v10197_v59 = vld [vmem:[%s11071_s28 + $0x124] sm:$0xf]  ;;  %v8377_v63 = vld [vmem:[%s11071_s28 + $0x138] sm:$0xf0] }
 0x253   : > { %5796 = vmatmul.bf16.vlgmr.msra.gmra.mxu2 %v12150_v4  ;;  %v9072_v33 = vor.u32 %v10374_v50, %v9071_v40  ;;  %v3220_v51 = vadd.f32 %v3219_v44, %v3206_v58  ;;  %v10452_v40 = vld [vmem:[%s11071_s28 + $0x914] sm:$0xf0]  ;;  %v9192_v61 = vor.u32 %v10404_v10, %v9191_v24  ;;  %v8713_v25 = vld [vmem:[%s11071_s28 + $0x3d8] sm:$0xf0]  ;;  %v9695_v24 = vld [vmem:[%s11071_s28 + $0xb70] sm:$0xf] }
 0x254   : > { %5844 = vmatpush.bf16.msrb.mxu2 %v9552_v0  ;;  %5817 = vmatpush.bf16.msrb.mxu0 %v9144_v48  ;;  %v3233_v18 = vpop.f32.mrf.mxu2  ;;  %v10416_v0 = vld [vmem:[%s11071_s28 + $0x7f4] sm:$0xf0]  ;;  %v3150_v34 = vadd.f32 %v12110_v20, %v3136_v7  ;;  %v3152_v9 = vadd.f32 %v12147_v30, %v3138_v62  ;;  %v8785_v7 = vld [vmem:[%s11071_s28 + $0x468] sm:$0xf0] }
 0x255   : > { %5810 = vmatmul.bf16.vlgmr.msra.gmra.mxu3 %v12157_v39  ;;  %v9240_v45 = vor.u32 %v10416_v0, %v9239_v19  ;;  %v3234_v20 = vadd.f32 %v3233_v18, %v3220_v51  ;;  %v10293_v19 = vld [vmem:[%s11071_s28 + $0x424] sm:$0xf] }
 0x256   : > { %5831 = vmatpush.bf16.msrb.mxu1 %v9336_v41  ;;  %v10464_v41 = vld [vmem:[%s11071_s28 + $0x974] sm:$0xf0]  ;;  %v3164_v30 = vadd.f32 %v12117_v14, %v3150_v34  ;;  %v8401_v14 = vld [vmem:[%s11071_s28 + $0x168] sm:$0xf0]  ;;  %v10542_v34 = vld [vmem:[%s11071_s28 + $0xbe4] sm:$0xf0] }
 0x257   : > { %v9432_v47 = vor.u32 %v10464_v41, %v9431_v35  ;;  %v10191_v35 = vld [vmem:[%s11071_s28 + $0xf4] sm:$0xf]  ;;  %v8353_v41 = vld [vmem:[%s11071_s28 + $0x108] sm:$0xf0] }
 0x258   : > { %5845 = vmatpush.bf16.msrb.mxu2 %v9528_v27  ;;  %5818 = vmatpush.bf16.msrb.mxu0 %v9120_v54  ;;  %v3207_v17 = vpop.f32.mrf.mxu0  ;;  %v3247_v48 = vpop.f32.mrf.mxu3  ;;  %v10410_v54 = vld [vmem:[%s11071_s28 + $0x7c4] sm:$0xf0]  ;;  %v3424_v53 = vmax.f32 %v3164_v30, 0.0  ;;  %v10185_v30 = vld [vmem:[%s11071_s28 + $0xc4] sm:$0xf] }
 0x259   : > { %v3208_v42 = vadd.f32 %v3207_v17, %v3194_v55  ;;  %v3221_v27 = vpop.f32.mrf.mxu1  ;;  %v9216_v8 = vor.u32 %v10410_v54, %v9215_v49  ;;  %v3248_v43 = vadd.f32 %v3247_v48, %v3234_v20  ;;  %v8380_v17 = vor.u32 %v10197_v59, %v8377_v63  ;;  %v8761_v48 = vld [vmem:[%s11071_s28 + $0x438] sm:$0xf0]  ;;  %v8737_v49 = vld [vmem:[%s11071_s28 + $0x408] sm:$0xf0]  ;;  %v9719_v54 = vld [vmem:[%s11071_s28 + $0xba0] sm:$0xf] }
 0x25a   : > { %5832 = vmatpush.bf16.msrb.mxu1 %v9312_v12  ;;  %v3166_v12 = vadd.f32 %v12153_v11, %v3152_v9  ;;  %v9408_v11 = vor.u32 %v10458_v2, %v9407_v13  ;;  %v8764_v37 = vor.u32 %v10293_v19, %v8761_v48  ;;  %v10536_v20 = vld [vmem:[%s11071_s28 + $0xbb4] sm:$0xf0]  ;;  %v10233_v2 = vld [vmem:[%s11071_s28 + $0x244] sm:$0xf]  ;;  %v8665_v63 = vld [vmem:[%s11071_s28 + $0x378] sm:$0xf0] }
 0x25b   : > { %v3222_v23 = vadd.f32 %v3221_v27, %v3208_v42  ;;  %v3425_v62 = vmax.f32 %v3248_v43, 0.0  ;;  %v10239_v42 = vld [vmem:[%s11071_s28 + $0x274] sm:$0xf]  ;;  %v8356_v27 = vor.u32 %v10191_v35, %v8353_v41  ;;  %v9720_v13 = vor.u32 %v10536_v20, %v9719_v54  ;;  %v8449_v48 = vld [vmem:[%s11071_s28 + $0x1c8] sm:$0xf0] }
 0x25c   : > { %5846 = vmatpush.bf16.msrb.mxu2 %v9504_v38  ;;  %5819 = vmatpush.bf16.msrb.mxu0 %v9096_v28  ;;  %v3235_v36 = vpop.f32.mrf.mxu2  ;;  %v10203_v38 = vld [vmem:[%s11071_s28 + $0x154] sm:$0xf]  ;;  %v3432_v50 = vmax.f32 %v3166_v12, 0.0  ;;  %v8521_v12 = vld [vmem:[%s11071_s28 + $0x258] sm:$0xf0] }
 0x25d   : > { %v3236_v28 = vadd.f32 %v3235_v36, %v3222_v23  ;;  %v8404_v58 = vor.u32 %v10203_v38, %v8401_v14  ;;  %v8740_v23 = vor.u32 %v10287_v26, %v8737_v49  ;;  %v10530_v36 = vld [vmem:[%s11071_s28 + $0xb84] sm:$0xf0]  ;;  %v8524_v10 = vor.u32 %v10233_v2, %v8521_v12  ;;  %v10179_v38 = vld [vmem:[%s11071_s28 + $0x94] sm:$0xf]  ;;  %v8305_v14 = vld [vmem:[%s11071_s28 + $0xa8] sm:$0xf0] }
 0x25e   : > { %5833 = vmatpush.bf16.msrb.mxu1 %v9288_v46  ;;  %v9383_v46 = vld [vmem:[%s11071_s28 + $0x900] sm:$0xf]  ;;  %v12221_v0 = vpack.c.bf16 %v3432_v50, %v3424_v53  ;;  %v9696_v43 = vor.u32 %v10530_v36, %v9695_v24  ;;  %v8689_v53 = vld [vmem:[%s11071_s28 + $0x3a8] sm:$0xf0]  ;;  %v10173_v50 = vld [vmem:[%s11071_s28 + $0x64] sm:$0xf] }
 0x25f   : > { %v9384_v60 = vor.u32 %v10452_v40, %v9383_v46  ;;  %v10524_v46 = vld [vmem:[%s11071_s28 + $0xb54] sm:$0xf0]  ;;  %v10263_v35 = vld [vmem:[%s11071_s28 + $0x334] sm:$0xf]  ;;  %v10161_v26 = vld [vmem:[%s11071_s28 + $0x4] sm:$0xf] }
 0x260   : > { %5847 = vmatpush.bf16.msrb.mxu2 %v9480_v16  ;;  %5820 = vmatpush.bf16.msrb.mxu0 %v9072_v33  ;;  %v3249_v44 = vpop.f32.mrf.mxu3  ;;  %v10299_v16 = vld [vmem:[%s11071_s28 + $0x454] sm:$0xf]  ;;  %v8596_v33 = vor.u32 %v10251_v31, %v8593_v6  ;;  %v3261_v19 = vpop.f32.mrf.mxu0  ;;  %v10209_v49 = vld [vmem:[%s11071_s28 + $0x184] sm:$0xf]  ;;  %v8425_v20 = vld [vmem:[%s11071_s28 + $0x198] sm:$0xf0] }
 0x261   : > { %v3250_v21 = vadd.f32 %v3249_v44, %v3236_v28  ;;  %v8788_v18 = vor.u32 %v10299_v16, %v8785_v7  ;;  %v10227_v28 = vld [vmem:[%s11071_s28 + $0x214] sm:$0xf]  ;;  %v8497_v44 = vld [vmem:[%s11071_s28 + $0x228] sm:$0xf0]  ;;  %v8473_v16 = vld [vmem:[%s11071_s28 + $0x1f8] sm:$0xf0] }
 0x262   : > { %5834 = vmatpush.bf16.msrb.mxu1 %v9264_v1  ;;  %v10245_v1 = vld [vmem:[%s11071_s28 + $0x2a4] sm:$0xf]  ;;  %v10275_v6 = vld [vmem:[%s11071_s28 + $0x394] sm:$0xf]  ;;  %v8500_v40 = vor.u32 %v10227_v28, %v8497_v44  ;;  %v9599_v36 = vld [vmem:[%s11071_s28 + $0xab0] sm:$0xf] }
 0x263   : > { %v3433_v55 = vmax.f32 %v3250_v21, 0.0  ;;  %v8281_v21 = vld [vmem:[%s11071_s28 + $0x78] sm:$0xf0]  ;;  %v8692_v7 = vor.u32 %v10275_v6, %v8689_v53 }
 0x264   : > { %5848 = vmatpush.bf16.msrb.mxu2 %v9456_v3  ;;  %5821 = vmatpush.bf16.msrb.mxu0 %v9048_v29  ;;  %v9743_v3 = vld [vmem:[%s11071_s28 + $0xbd0] sm:$0xf]  ;;  %v8572_v29 = vor.u32 %v10245_v1, %v8569_v5  ;;  %v8284_v59 = vor.u32 %v10173_v50, %v8281_v21  ;;  %v10167_v5 = vld [vmem:[%s11071_s28 + $0x34] sm:$0xf]  ;;  %v3289_v28 = vpop.f32.mrf.mxu2  ;;  %v9337_v6 = vld [vmem:[%s11071_s28 + $0x8b8] sm:$0xf0] }
 0x265   : > { %v12223_v51 = vpack.c.bf16 %v3433_v55, %v3425_v62  ;;  %v9744_v9 = vor.u32 %v10542_v34, %v9743_v3  ;;  %v9647_v62 = vld [vmem:[%s11071_s28 + $0xb10] sm:$0xf]  ;;  %v10518_v55 = vld [vmem:[%s11071_s28 + $0xb24] sm:$0xf0]  ;;  %v788_v3 = vperm.slane %v12002_v52, 6  ;;  %v3275_v34 = vpop.f32.mrf.mxu1 }
 0x266   : > { %5835 = vmatpush.bf16.msrb.mxu1 %v9240_v45  ;;  %v8545_v45 = vld [vmem:[%s11071_s28 + $0x288] sm:$0xf0]  ;;  %v8953_v52 = vld [vmem:[%s11071_s28 + $0x5b8] sm:$0xf0] }
 0x267   : > { %5858 = vmatpush.bf16.msrb.mxu3 %v9744_v9  ;;  %v8641_v9 = vld [vmem:[%s11071_s28 + $0x348] sm:$0xf0] }
 0x268   : > { %5849 = vmatpush.bf16.msrb.mxu2 %v9432_v47  ;;  %5822 = vmatpush.bf16.msrb.mxu0 %v9024_v56  ;;  %v8548_v47 = vor.u32 %v10239_v42, %v8545_v45  ;;  %v8329_v56 = vld [vmem:[%s11071_s28 + $0xd8] sm:$0xf0]  ;;  %v9623_v42 = vld [vmem:[%s11071_s28 + $0xae0] sm:$0xf]  ;;  %v10512_v45 = vld [vmem:[%s11071_s28 + $0xaf4] sm:$0xf0]  ;;  %v8644_v2 = vor.u32 %v10263_v35, %v8641_v9  ;;  %v3263_v53 = vpop.f32.mrf.mxu0 }
 0x269   : > { %v8332_v32 = vor.u32 %v10185_v30, %v8329_v56  ;;  %v9624_v54 = vor.u32 %v10512_v45, %v9623_v42  ;;  %v9169_v30 = vld [vmem:[%s11071_s28 + $0x768] sm:$0xf0]  ;;  %v10443_v56 = vld [vmem:[%s11071_s28 + $0x8d4] sm:$0xf]  ;;  %v10425_v35 = vld [vmem:[%s11071_s28 + $0x844] sm:$0xf] }
 0x26a   : > { %5836 = vmatpush.bf16.msrb.mxu1 %v9216_v8  ;;  %v10281_v8 = vld [vmem:[%s11071_s28 + $0x3c4] sm:$0xf] }
 0x26b   : > { %5859 = vmatpush.bf16.msrb.mxu3 %v9720_v13  ;;  %v8716_v31 = vor.u32 %v10281_v8, %v8713_v25  ;;  %v9361_v13 = vld [vmem:[%s11071_s28 + $0x8e8] sm:$0xf0]  ;;  %v8617_v8 = vld [vmem:[%s11071_s28 + $0x318] sm:$0xf0]  ;;  %v8428_v25 = vor.u32 %v10209_v49, %v8425_v20 }
 0x26c   : > { %5850 = vmatpush.bf16.msrb.mxu2 %v9408_v11  ;;  %5823 = vmatpush.bf16.msrb.mxu0 %v9000_v57  ;;  %v8308_v11 = vor.u32 %v10179_v38, %v8305_v14  ;;  %v9671_v57 = vld [vmem:[%s11071_s28 + $0xb40] sm:$0xf]  ;;  %v9364_v38 = vor.u32 %v10443_v56, %v9361_v13  ;;  %v10389_v14 = vld [vmem:[%s11071_s28 + $0x724] sm:$0xf]  ;;  %v3291_v9 = vpop.f32.mrf.mxu2  ;;  %v9073_v20 = vld [vmem:[%s11071_s28 + $0x6a8] sm:$0xf0] }
 0x26d   : > { %v3277_v21 = vpop.f32.mrf.mxu1  ;;  %v10419_v13 = vld [vmem:[%s11071_s28 + $0x814] sm:$0xf] }
 0x26e   : > { %5837 = vmatpush.bf16.msrb.mxu1 %v9192_v61  ;;  %v9672_v61 = vor.u32 %v10524_v46, %v9671_v57  ;;  %v9575_v57 = vld [vmem:[%s11071_s28 + $0xa80] sm:$0xf]  ;;  %v10500_v46 = vld [vmem:[%s11071_s28 + $0xa94] sm:$0xf0] }
 0x26f   : > { %5824 = vmatmul.bf16.vlgmr.msrb.gmra.mxu0 %v12221_v0  ;;  %5860 = vmatpush.bf16.msrb.mxu3 %v9696_v43  ;;  %v9145_v43 = vld [vmem:[%s11071_s28 + $0x738] sm:$0xf0] }
 0x270   : > { %5872 = vmatpush.bf16.msra.mxu0 %v8404_v58  ;;  %5851 = vmatpush.bf16.msrb.mxu2 %v9384_v60  ;;  %v10221_v58 = vld [vmem:[%s11071_s28 + $0x1e4] sm:$0xf]  ;;  %v8257_v60 = vld [vmem:[%s11071_s28 + $0x48] sm:$0xf0]  ;;  %v9148_v50 = vor.u32 %v10389_v14, %v9145_v43 }
 0x271   : > { %5838 = vmatmul.bf16.vlgmr.msrb.gmra.mxu1 %v12223_v51  ;;  %v8476_v1 = vor.u32 %v10221_v58, %v8473_v16  ;;  %v8260_v41 = vor.u32 %v10167_v5, %v8257_v60  ;;  %v9576_v58 = vor.u32 %v10500_v46, %v9575_v57  ;;  %v10413_v43 = vld [vmem:[%s11071_s28 + $0x7e4] sm:$0xf]  ;;  %v10359_v46 = vld [vmem:[%s11071_s28 + $0x634] sm:$0xf] }
 0x272   : > { %5886 = vmatpush.bf16.msra.mxu1 %v8596_v33  ;;  %v10269_v33 = vld [vmem:[%s11071_s28 + $0x364] sm:$0xf] }
 0x273   : > { %5861 = vmatpush.bf16.msrb.mxu3 %v9672_v61  ;;  %v10383_v61 = vld [vmem:[%s11071_s28 + $0x6f4] sm:$0xf] }
 0x274   : > { %5900 = vmatpush.bf16.msra.mxu2 %v8788_v18  ;;  %5873 = vmatpush.bf16.msra.mxu0 %v8380_v17  ;;  %v9648_v18 = vor.u32 %v10518_v55, %v9647_v62  ;;  %v10215_v17 = vld [vmem:[%s11071_s28 + $0x1b4] sm:$0xf]  ;;  %v3264_v62 = vadd.f32 %v3263_v53, %v788_v3 }
 0x275   : > { %v10431_v55 = vld [vmem:[%s11071_s28 + $0x874] sm:$0xf] }
 0x276   : > { %5887 = vmatpush.bf16.msra.mxu1 %v8572_v29  ;;  %v8668_v29 = vor.u32 %v10269_v33, %v8665_v63  ;;  %v9121_v33 = vld [vmem:[%s11071_s28 + $0x708] sm:$0xf0] }
 0x277   : > { %5862 = vmatpush.bf16.msrb.mxu3 %v9648_v18  ;;  %v8977_v63 = vld [vmem:[%s11071_s28 + $0x5e8] sm:$0xf0]  ;;  %v9124_v18 = vor.u32 %v10383_v61, %v9121_v33  ;;  %v10491_v33 = vld [vmem:[%s11071_s28 + $0xa54] sm:$0xf] }
 0x278   : > { %5901 = vmatpush.bf16.msra.mxu2 %v8764_v37  ;;  %5874 = vmatpush.bf16.msra.mxu0 %v8356_v27  ;;  %v8452_v37 = vor.u32 %v10215_v17, %v8449_v48  ;;  %v8233_v27 = vld [vmem:[%s11071_s28 + $0x18] sm:$0xf0]  ;;  %v10377_v48 = vld [vmem:[%s11071_s28 + $0x6c4] sm:$0xf] }
 0x279   : > { %v8236_v12 = vor.u32 %v10161_v26, %v8233_v27  ;;  %v8929_v26 = vld [vmem:[%s11071_s28 + $0x588] sm:$0xf0] }
 0x27a   : > { %5888 = vmatpush.bf16.msra.mxu1 %v8548_v47  ;;  %v10395_v47 = vld [vmem:[%s11071_s28 + $0x754] sm:$0xf] }
 0x27b   : > { %5863 = vmatpush.bf16.msrb.mxu3 %v9624_v54  ;;  %v9172_v24 = vor.u32 %v10395_v47, %v9169_v30  ;;  %v10371_v54 = vld [vmem:[%s11071_s28 + $0x694] sm:$0xf] }
 0x27c   : > { %5902 = vmatpush.bf16.msra.mxu2 %v8740_v23  ;;  %5875 = vmatpush.bf16.msra.mxu0 %v8332_v32  ;;  %v10257_v23 = vld [vmem:[%s11071_s28 + $0x304] sm:$0xf]  ;;  %v3262_v32 = vadd.f32 %v3261_v19, %v788_v3  ;;  %v9097_v3 = vld [vmem:[%s11071_s28 + $0x6d8] sm:$0xf0] }
 0x27d   : > { %v10341_v19 = vld [vmem:[%s11071_s28 + $0x5a4] sm:$0xf]  ;;  %v9100_v45 = vor.u32 %v10377_v48, %v9097_v3  ;;  %v3317_v27 = vpop.f32.mrf.mxu0  ;;  %v8407_v3 = vld [vmem:[%s11071_s28 + $0x158] sm:$0xf] }
 0x27e   : > { %5889 = vmatpush.bf16.msra.mxu1 %v8524_v10  ;;  %v10506_v10 = vld [vmem:[%s11071_s28 + $0xac4] sm:$0xf0] }
 0x27f   : > { %v9600_v44 = vor.u32 %v10506_v10, %v9599_v36  ;;  %v3331_v30 = vpop.f32.mrf.mxu1  ;;  %v10365_v36 = vld [vmem:[%s11071_s28 + $0x664] sm:$0xf]  ;;  %v9049_v10 = vld [vmem:[%s11071_s28 + $0x678] sm:$0xf0] }
 0x280   : > { %5903 = vmatpush.bf16.msra.mxu2 %v8716_v31  ;;  %5876 = vmatpush.bf16.msra.mxu0 %v8308_v11  ;;  %v10437_v31 = vld [vmem:[%s11071_s28 + $0x8a4] sm:$0xf]  ;;  %v8620_v11 = vor.u32 %v10257_v23, %v8617_v8  ;;  %v9076_v8 = vor.u32 %v10371_v54, %v9073_v20  ;;  %v8833_v54 = vld [vmem:[%s11071_s28 + $0x4c8] sm:$0xf0] }
 0x281   : > { %5864 = vmatpush.bf16.msrb.mxu3 %v9600_v44  ;;  %v9340_v16 = vor.u32 %v10437_v31, %v9337_v6  ;;  %v9052_v31 = vor.u32 %v10365_v36, %v9049_v10  ;;  %v10323_v6 = vld [vmem:[%s11071_s28 + $0x514] sm:$0xf] }
 0x282   : > { %5890 = vmatpush.bf16.msra.mxu1 %v8500_v40  ;;  %v3276_v40 = vadd.f32 %v3275_v34, %v3262_v32  ;;  %v8956_v34 = vor.u32 %v10341_v19, %v8953_v52  ;;  %v10329_v32 = vld [vmem:[%s11071_s28 + $0x544] sm:$0xf]  ;;  %v9193_v52 = vld [vmem:[%s11071_s28 + $0x798] sm:$0xf0] }
 0x283   : > { %v10401_v19 = vld [vmem:[%s11071_s28 + $0x784] sm:$0xf] }
 0x284   : > { %5904 = vmatpush.bf16.msra.mxu2 %v8692_v7  ;;  %5877 = vmatpush.bf16.msra.mxu0 %v8284_v59  ;;  %v3303_v7 = vpop.f32.mrf.mxu3  ;;  %v10347_v59 = vld [vmem:[%s11071_s28 + $0x5d4] sm:$0xf]  ;;  %v3290_v60 = vadd.f32 %v3289_v28, %v3276_v40  ;;  %v9241_v28 = vld [vmem:[%s11071_s28 + $0x7f8] sm:$0xf0]  ;;  %v9025_v40 = vld [vmem:[%s11071_s28 + $0x648] sm:$0xf0] }
 0x285   : > { %v8980_v5 = vor.u32 %v10347_v59, %v8977_v63  ;;  %5865 = vmatpush.bf16.msrb.mxu3 %v9576_v58  ;;  %v3319_v53 = vpop.f32.mrf.mxu0  ;;  %v9244_v57 = vor.u32 %v10413_v43, %v9241_v28  ;;  %v10407_v58 = vld [vmem:[%s11071_s28 + $0x7b4] sm:$0xf]  ;;  %v9553_v59 = vld [vmem:[%s11071_s28 + $0xa68] sm:$0xf0]  ;;  %v8359_v43 = vld [vmem:[%s11071_s28 + $0xf8] sm:$0xf] }
 0x286   : > { %5891 = vmatpush.bf16.msra.mxu1 %v8476_v1  ;;  %v9313_v1 = vld [vmem:[%s11071_s28 + $0x888] sm:$0xf0]  ;;  %v3304_v42 = vadd.f32 %v3303_v7, %v3290_v60  ;;  %v10353_v7 = vld [vmem:[%s11071_s28 + $0x604] sm:$0xf]  ;;  %v10195_v28 = vld [vmem:[%s11071_s28 + $0x10c] sm:$0xf0] }
 0x287   : > { %v9316_v17 = vor.u32 %v10431_v55, %v9313_v1  ;;  %v3333_v61 = vpop.f32.mrf.mxu1  ;;  %v9028_v55 = vor.u32 %v10359_v46, %v9025_v40  ;;  %v10317_v1 = vld [vmem:[%s11071_s28 + $0x4e4] sm:$0xf]  ;;  %v8335_v40 = vld [vmem:[%s11071_s28 + $0xc8] sm:$0xf] }
 0x288   : > { %5905 = vmatpush.bf16.msra.mxu2 %v8668_v29  ;;  %5878 = vmatpush.bf16.msra.mxu0 %v8260_v41  ;;  %v3278_v29 = vadd.f32 %v3277_v21, %v3264_v62  ;;  %v9289_v41 = vld [vmem:[%s11071_s28 + $0x858] sm:$0xf0]  ;;  %v3318_v23 = vadd.f32 %v3317_v27, %v3304_v42 }
 0x289   : > { %5914 = vmatpush.bf16.msra.mxu3 %v8980_v5  ;;  %v9292_v49 = vor.u32 %v10425_v35, %v9289_v41  ;;  %v8857_v5 = vld [vmem:[%s11071_s28 + $0x4f8] sm:$0xf0]  ;;  %v8599_v35 = vld [vmem:[%s11071_s28 + $0x2d8] sm:$0xf]  ;;  %v10255_v41 = vld [vmem:[%s11071_s28 + $0x2ec] sm:$0xf0] }
 0x28a   : > { %5892 = vmatpush.bf16.msra.mxu1 %v8452_v37  ;;  %v10335_v37 = vld [vmem:[%s11071_s28 + $0x574] sm:$0xf]  ;;  %v3292_v56 = vadd.f32 %v3291_v9, %v3278_v29  ;;  %v3332_v44 = vadd.f32 %v3331_v30, %v3318_v23  ;;  %v9556_v29 = vor.u32 %v10491_v33, %v9553_v59  ;;  %v8600_v20 = vor.u32 %v10255_v41, %v8599_v35  ;;  %v10201_v30 = vld [vmem:[%s11071_s28 + $0x13c] sm:$0xf0]  ;;  %v9457_v59 = vld [vmem:[%s11071_s28 + $0x9a8] sm:$0xf0] }
 0x28b   : > { %v8932_v47 = vor.u32 %v10335_v37, %v8929_v26  ;;  %v9529_v37 = vld [vmem:[%s11071_s28 + $0xa38] sm:$0xf0]  ;;  %v9196_v26 = vor.u32 %v10401_v19, %v9193_v52  ;;  %v10479_v23 = vld [vmem:[%s11071_s28 + $0x9f4] sm:$0xf] }
 0x28c   : > { %5906 = vmatpush.bf16.msra.mxu2 %v8644_v2  ;;  %5879 = vmatpush.bf16.msra.mxu0 %v8236_v12  ;;  %v9265_v2 = vld [vmem:[%s11071_s28 + $0x828] sm:$0xf0]  ;;  %v3305_v12 = vpop.f32.mrf.mxu3  ;;  %v3426_v63 = vmax.f32 %v3332_v44, 0.0  ;;  %v10467_v33 = vld [vmem:[%s11071_s28 + $0x994] sm:$0xf] }
 0x28d   : > { %5915 = vmatpush.bf16.msra.mxu3 %v8956_v34  ;;  %v3306_v14 = vadd.f32 %v3305_v12, %v3292_v56  ;;  %v10207_v34 = vld [vmem:[%s11071_s28 + $0x16c] sm:$0xf0]  ;;  %v10249_v12 = vld [vmem:[%s11071_s28 + $0x2bc] sm:$0xf0]  ;;  %v9460_v52 = vor.u32 %v10467_v33, %v9457_v59  ;;  %v9367_v33 = vld [vmem:[%s11071_s28 + $0x8d8] sm:$0xf] }
 0x28e   : > { %5893 = vmatpush.bf16.msra.mxu1 %v8428_v25  ;;  %v8905_v25 = vld [vmem:[%s11071_s28 + $0x558] sm:$0xf0]  ;;  %v8408_v27 = vor.u32 %v10207_v34, %v8407_v3  ;;  %v10461_v3 = vld [vmem:[%s11071_s28 + $0x964] sm:$0xf]  ;;  %v10447_v59 = vld [vmem:[%s11071_s28 + $0x8ec] sm:$0xf0] }
 0x28f   : > { %5880 = vmatmul.bf16.vlgmr.msra.gmra.mxu0 %v12141_v22  ;;  %v3320_v21 = vadd.f32 %v3319_v53, %v3306_v14  ;;  %v9481_v53 = vld [vmem:[%s11071_s28 + $0x9d8] sm:$0xf0] }
 0x290   : > { %5928 = vmatpush.bf16.msrb.mxu0 %v9172_v24  ;;  %5907 = vmatpush.bf16.msra.mxu2 %v8620_v11  ;;  %v9268_v24 = vor.u32 %v10419_v13, %v9265_v2  ;;  %v8881_v11 = vld [vmem:[%s11071_s28 + $0x528] sm:$0xf0]  ;;  %v8575_v2 = vld [vmem:[%s11071_s28 + $0x2a8] sm:$0xf]  ;;  %v9433_v34 = vld [vmem:[%s11071_s28 + $0x978] sm:$0xf0] }
 0x291   : > { %5894 = vmatmul.bf16.vlgmr.msra.gmra.mxu1 %v12145_v15  ;;  %5916 = vmatpush.bf16.msra.mxu3 %v8932_v47  ;;  %v3334_v62 = vadd.f32 %v3333_v61, %v3320_v21  ;;  %v8383_v47 = vld [vmem:[%s11071_s28 + $0x128] sm:$0xf]  ;;  %v8576_v14 = vor.u32 %v10249_v12, %v8575_v2  ;;  %v10651_v21 = vld [vmem:[%s11069_s6] sm:$0xff] }
 0x292   : > { %5942 = vmatpush.bf16.msrb.mxu1 %v9364_v38  ;;  %v8908_v38 = vor.u32 %v10329_v32, %v8905_v25  ;;  %v9505_v32 = vld [vmem:[%s11071_s28 + $0xa08] sm:$0xf0]  ;;  %v10305_v25 = vld [vmem:[%s11071_s28 + $0x484] sm:$0xf]  ;;  %v8384_v10 = vor.u32 %v10201_v30, %v8383_v47  ;;  %v789_v61 = vperm.slane %v10651_v21, 7 }
 0x293   : > { %v3434_v48 = vmax.f32 %v3334_v62, 0.0  ;;  %v9508_v44 = vor.u32 %v10479_v23, %v9505_v32  ;;  %v9409_v47 = vld [vmem:[%s11071_s28 + $0x948] sm:$0xf0]  ;;  %v8263_v12 = vld [vmem:[%s11071_s28 + $0x38] sm:$0xf] }
 0x294   : > { %5929 = vmatpush.bf16.msrb.mxu0 %v9148_v50  ;;  %v8884_v50 = vor.u32 %v10323_v6, %v8881_v11  ;;  %v3359_v36 = vpop.f32.mrf.mxu3  ;;  %v10243_v6 = vld [vmem:[%s11071_s28 + $0x28c] sm:$0xf0]  ;;  %v10473_v11 = vld [vmem:[%s11071_s28 + $0x9c4] sm:$0xf]  ;;  %v10213_v21 = vld [vmem:[%s11071_s28 + $0x19c] sm:$0xf0] }
 0x295   : > { %5917 = vmatpush.bf16.msra.mxu3 %v8908_v38  ;;  %v12337_v9 = vpack.c.bf16 %v3434_v48, %v3426_v63  ;;  %v10231_v48 = vld [vmem:[%s11071_s28 + $0x22c] sm:$0xf0] }
 0x296   : > { %5943 = vmatpush.bf16.msrb.mxu1 %v9340_v16  ;;  %v9217_v16 = vld [vmem:[%s11071_s28 + $0x7c8] sm:$0xf0]  ;;  %v10171_v23 = vld [vmem:[%s11071_s28 + $0x4c] sm:$0xf0] }
 0x297   : > { %v9220_v60 = vor.u32 %v10407_v58, %v9217_v16  ;;  %5852 = vmatmul.bf16.vlgmr.msrb.gmra.mxu2 %v12337_v9  ;;  %v9484_v58 = vor.u32 %v10473_v11, %v9481_v53  ;;  %v8527_v16 = vld [vmem:[%s11071_s28 + $0x248] sm:$0xf] }
 0x298   : > { %5930 = vmatpush.bf16.msrb.mxu0 %v9124_v18  ;;  %v9001_v18 = vld [vmem:[%s11071_s28 + $0x618] sm:$0xf0]  ;;  %5956 = vmatpush.bf16.msrb.mxu2 %v9556_v29  ;;  %v8239_v53 = vld [vmem:[%s11071_s28 + $0x8] sm:$0xf] }
 0x299   : > { %5918 = vmatpush.bf16.msra.mxu3 %v8884_v50  ;;  %v9004_v42 = vor.u32 %v10353_v7, %v9001_v18  ;;  %v10189_v50 = vld [vmem:[%s11071_s28 + $0xdc] sm:$0xf0] }
 0x29a   : > { %5944 = vmatpush.bf16.msrb.mxu1 %v9316_v17  ;;  %v8860_v17 = vor.u32 %v10317_v1, %v8857_v5  ;;  %v10237_v7 = vld [vmem:[%s11071_s28 + $0x25c] sm:$0xf0]  ;;  %v8336_v63 = vor.u32 %v10189_v50, %v8335_v40  ;;  %v8311_v1 = vld [vmem:[%s11071_s28 + $0x98] sm:$0xf]  ;;  %v10183_v5 = vld [vmem:[%s11071_s28 + $0xac] sm:$0xf0] }
 0x29b   : > { %v8312_v29 = vor.u32 %v10183_v5, %v8311_v1  ;;  %v10297_v1 = vld [vmem:[%s11071_s28 + $0x43c] sm:$0xf0] }
 0x29c   : > { %5931 = vmatpush.bf16.msrb.mxu0 %v9100_v45  ;;  %v10485_v45 = vld [vmem:[%s11071_s28 + $0xa24] sm:$0xf]  ;;  %v3361_v18 = vpop.f32.mrf.mxu3 }
 0x29d   : > { %5919 = vmatpush.bf16.msra.mxu3 %v8860_v17  ;;  %v9532_v13 = vor.u32 %v10485_v45, %v9529_v37  ;;  %v8503_v17 = vld [vmem:[%s11071_s28 + $0x218] sm:$0xf]  ;;  %v10177_v45 = vld [vmem:[%s11071_s28 + $0x7c] sm:$0xf0] }
 0x29e   : > { %5945 = vmatpush.bf16.msrb.mxu1 %v9292_v49  ;;  %v10311_v49 = vld [vmem:[%s11071_s28 + $0x4b4] sm:$0xf]  ;;  %v8504_v41 = vor.u32 %v10231_v48, %v8503_v17  ;;  %v9368_v17 = vor.u32 %v10447_v59, %v9367_v33  ;;  %v9151_v48 = vld [vmem:[%s11071_s28 + $0x728] sm:$0xf]  ;;  %v10423_v33 = vld [vmem:[%s11071_s28 + $0x82c] sm:$0xf0] }
 0x29f   : > { %v8836_v56 = vor.u32 %v10311_v49, %v8833_v54  ;;  %5957 = vmatpush.bf16.msrb.mxu2 %v9532_v13  ;;  %v8479_v49 = vld [vmem:[%s11071_s28 + $0x1e8] sm:$0xf]  ;;  %v10225_v54 = vld [vmem:[%s11071_s28 + $0x1fc] sm:$0xf0]  ;;  %v10521_v59 = vld [vmem:[%s11071_s28 + $0xb44] sm:$0xf] }
 0x2a0   : > { %5932 = vmatpush.bf16.msrb.mxu0 %v9076_v8  ;;  %v3345_v8 = vpop.f32.mrf.mxu2  ;;  %v8480_v2 = vor.u32 %v10225_v54, %v8479_v49 }
 0x2a1   : > { %5920 = vmatpush.bf16.msra.mxu3 %v8836_v56 }
 0x2a2   : > { %5946 = vmatpush.bf16.msrb.mxu1 %v9268_v24  ;;  %v8809_v24 = vld [vmem:[%s11071_s28 + $0x498] sm:$0xf0] }
 0x2a3   : > { %v8812_v38 = vor.u32 %v10305_v25, %v8809_v24  ;;  %5958 = vmatpush.bf16.msrb.mxu2 %v9508_v44  ;;  %v8264_v44 = vor.u32 %v10171_v23, %v8263_v12  ;;  %v9319_v12 = vld [vmem:[%s11071_s28 + $0x878] sm:$0xf]  ;;  %v10435_v23 = vld [vmem:[%s11071_s28 + $0x88c] sm:$0xf0] }
 0x2a4   : > { %5933 = vmatpush.bf16.msrb.mxu0 %v9052_v31  ;;  %v8551_v31 = vld [vmem:[%s11071_s28 + $0x278] sm:$0xf] }
 0x2a5   : > { %5921 = vmatpush.bf16.msra.mxu3 %v8812_v38  ;;  %v8552_v46 = vor.u32 %v10243_v6, %v8551_v31  ;;  %v10449_v38 = vld [vmem:[%s11071_s28 + $0x904] sm:$0xf]  ;;  %v8791_v31 = vld [vmem:[%s11071_s28 + $0x458] sm:$0xf]  ;;  %v10303_v6 = vld [vmem:[%s11071_s28 + $0x46c] sm:$0xf0] }
 0x2a6   : > { %5947 = vmatpush.bf16.msrb.mxu1 %v9244_v57  ;;  %v8360_v57 = vor.u32 %v10195_v28, %v8359_v43 }
 0x2a7   : > { %5959 = vmatpush.bf16.msrb.mxu2 %v9484_v58  ;;  %v10399_v58 = vld [vmem:[%s11071_s28 + $0x76c] sm:$0xf0] }
 0x2a8   : > { %5934 = vmatpush.bf16.msrb.mxu0 %v9028_v55  ;;  %v3347_v62 = vpop.f32.mrf.mxu2  ;;  %v8528_v55 = vor.u32 %v10237_v7, %v8527_v16  ;;  %5908 = vmatmul.bf16.vlgmr.msra.gmra.mxu2 %v12150_v4  ;;  %v8792_v7 = vor.u32 %v10303_v6, %v8791_v31  ;;  %v9295_v31 = vld [vmem:[%s11071_s28 + $0x848] sm:$0xf]  ;;  %v10429_v6 = vld [vmem:[%s11071_s28 + $0x85c] sm:$0xf0] }
 0x2aa   : > { %5948 = vmatpush.bf16.msrb.mxu1 %v9220_v60  ;;  %v3346_v60 = vadd.f32 %v3345_v8, %v789_v61 }
 0x2ab   : > { %5960 = vmatpush.bf16.msrb.mxu2 %v9460_v52 }
 0x2ac   : > { %5935 = vmatpush.bf16.msrb.mxu0 %v9004_v42  ;;  %v3373_v19 = vpop.f32.mrf.mxu0  ;;  %v8287_v42 = vld [vmem:[%s11071_s28 + $0x68] sm:$0xf]  ;;  %v3360_v37 = vadd.f32 %v3359_v36, %v3346_v60  ;;  %v8455_v36 = vld [vmem:[%s11071_s28 + $0x1b8] sm:$0xf] }
 0x2ad   : > { %v8288_v56 = vor.u32 %v10177_v45, %v8287_v42  ;;  %v10539_v42 = vld [vmem:[%s11071_s28 + $0xbd4] sm:$0xf] }
 0x2ae   : > { %5949 = vmatpush.bf16.msrb.mxu1 %v9196_v26  ;;  %v3387_v35 = vpop.f32.mrf.mxu1  ;;  %v3348_v26 = vadd.f32 %v3347_v62, %v789_v61  ;;  %v3374_v30 = vadd.f32 %v3373_v19, %v3360_v37  ;;  %v9175_v61 = vld [vmem:[%s11071_s28 + $0x758] sm:$0xf]  ;;  %v9745_v37 = vld [vmem:[%s11071_s28 + $0xbe8] sm:$0xf0] }
 0x2af   : > { %5936 = vmatmul.bf16.vlgmr.msrb.gmra.mxu0 %v12221_v0 }
 0x2b0   : > { %5984 = vmatpush.bf16.msra.mxu0 %v8408_v27  ;;  %v9436_v27 = vor.u32 %v10461_v3, %v9433_v34  ;;  %v3362_v8 = vadd.f32 %v3361_v18, %v3348_v26  ;;  %v3388_v43 = vadd.f32 %v3387_v35, %v3374_v30  ;;  %v9176_v18 = vor.u32 %v10399_v58, %v9175_v61  ;;  %v10393_v3 = vld [vmem:[%s11071_s28 + $0x73c] sm:$0xf0]  ;;  %v9343_v35 = vld [vmem:[%s11071_s28 + $0x8a8] sm:$0xf]  ;;  %v8743_v26 = vld [vmem:[%s11071_s28 + $0x3f8] sm:$0xf] }
 0x2b1   : > { %5950 = vmatmul.bf16.vlgmr.msrb.gmra.mxu1 %v12223_v51  ;;  %v9152_v49 = vor.u32 %v10393_v3, %v9151_v48  ;;  %v9127_v30 = vld [vmem:[%s11071_s28 + $0x6f8] sm:$0xf]  ;;  %v10375_v61 = vld [vmem:[%s11071_s28 + $0x6ac] sm:$0xf0]  ;;  %v10417_v48 = vld [vmem:[%s11071_s28 + $0x7fc] sm:$0xf0] }
 0x2b2   : > { %5998 = vmatpush.bf16.msra.mxu1 %v8600_v20  ;;  %v10455_v20 = vld [vmem:[%s11071_s28 + $0x934] sm:$0xf]  ;;  %5961 = vmatpush.bf16.msrb.mxu2 %v9436_v27  ;;  %v10291_v27 = vld [vmem:[%s11071_s28 + $0x40c] sm:$0xf0] }
 0x2b3   : > { %v9412_v24 = vor.u32 %v10455_v20, %v9409_v47  ;;  %v10515_v3 = vld [vmem:[%s11071_s28 + $0xb14] sm:$0xf] }
 0x2b4   : > { %5985 = vmatpush.bf16.msra.mxu0 %v8384_v10  ;;  %v3375_v25 = vpop.f32.mrf.mxu0  ;;  %v10219_v10 = vld [vmem:[%s11071_s28 + $0x1cc] sm:$0xf0] }
 0x2b5   : > { %v3376_v28 = vadd.f32 %v3375_v25, %v3362_v8  ;;  %v8456_v11 = vor.u32 %v10219_v10, %v8455_v36  ;;  %v10533_v8 = vld [vmem:[%s11071_s28 + $0xba4] sm:$0xf]  ;;  %v9721_v25 = vld [vmem:[%s11071_s28 + $0xbb8] sm:$0xf0]  ;;  %v10285_v36 = vld [vmem:[%s11071_s28 + $0x3dc] sm:$0xf0] }
 0x2b6   : > { %5999 = vmatpush.bf16.msra.mxu1 %v8576_v14  ;;  %v3401_v13 = vpop.f32.mrf.mxu2  ;;  %v9385_v14 = vld [vmem:[%s11071_s28 + $0x918] sm:$0xf0]  ;;  %5962 = vmatpush.bf16.msrb.mxu2 %v9412_v24  ;;  %v3389_v16 = vpop.f32.mrf.mxu1  ;;  %v8719_v24 = vld [vmem:[%s11071_s28 + $0x3c8] sm:$0xf] }
 0x2b7   : > { %v3402_v40 = vadd.f32 %v3401_v13, %v3388_v43  ;;  %v9388_v50 = vor.u32 %v10449_v38, %v9385_v14  ;;  %v9748_v13 = vor.u32 %v10539_v42, %v9745_v37  ;;  %v9320_v38 = vor.u32 %v10435_v23, %v9319_v12  ;;  %v9103_v14 = vld [vmem:[%s11071_s28 + $0x6c8] sm:$0xf]  ;;  %v10381_v43 = vld [vmem:[%s11071_s28 + $0x6dc] sm:$0xf0]  ;;  %v10363_v37 = vld [vmem:[%s11071_s28 + $0x64c] sm:$0xf0] }
 0x2b8   : > { %5986 = vmatpush.bf16.msra.mxu0 %v8360_v57  ;;  %v3415_v32 = vpop.f32.mrf.mxu3  ;;  %v10165_v57 = vld [vmem:[%s11071_s28 + $0x1c] sm:$0xf0]  ;;  %v9559_v12 = vld [vmem:[%s11071_s28 + $0xa58] sm:$0xf]  ;;  %v10495_v23 = vld [vmem:[%s11071_s28 + $0xa6c] sm:$0xf0] }
 0x2b9   : > { %v8240_v62 = vor.u32 %v10165_v57, %v8239_v53  ;;  %v3416_v19 = vadd.f32 %v3415_v32, %v3402_v40  ;;  %v9697_v53 = vld [vmem:[%s11071_s28 + $0xb88] sm:$0xf0]  ;;  %v8695_v57 = vld [vmem:[%s11071_s28 + $0x398] sm:$0xf]  ;;  %v9104_v40 = vor.u32 %v10381_v43, %v9103_v14  ;;  %v10503_v14 = vld [vmem:[%s11071_s28 + $0xab4] sm:$0xf] }
 0x2ba   : > { %6000 = vmatpush.bf16.msra.mxu1 %v8552_v46  ;;  %v8431_v46 = vld [vmem:[%s11071_s28 + $0x188] sm:$0xf]  ;;  %5963 = vmatpush.bf16.msrb.mxu2 %v9388_v50  ;;  %v9296_v50 = vor.u32 %v10429_v6, %v9295_v31  ;;  %v10204_v43 = vld [vmem:[%s11071_s28 + $0x15c] sm:$0xf]  ;;  %v9601_v31 = vld [vmem:[%s11071_s28 + $0xac8] sm:$0xf0] }
 0x2bb   : > { %v8432_v60 = vor.u32 %v10213_v21, %v8431_v46  ;;  %v3427_v54 = vmax.f32 %v3416_v19, 0.0  ;;  %v10279_v46 = vld [vmem:[%s11071_s28 + $0x3ac] sm:$0xf0]  ;;  %v9079_v21 = vld [vmem:[%s11071_s28 + $0x698] sm:$0xf] }
 0x2bc   : > { %5987 = vmatpush.bf16.msra.mxu0 %v8336_v63  ;;  %v3390_v63 = vadd.f32 %v3389_v16, %v3376_v28  ;;  %v9724_v28 = vor.u32 %v10533_v8, %v9721_v25  ;;  %v8696_v16 = vor.u32 %v10279_v46, %v8695_v57  ;;  %v10357_v25 = vld [vmem:[%s11071_s28 + $0x61c] sm:$0xf0]  ;;  %v10252_v6 = vld [vmem:[%s11071_s28 + $0x2dc] sm:$0xf] }
 0x2bd   : > { %5964 = vmatmul.bf16.vlgmr.msrb.gmra.mxu2 %v12337_v9 }
 0x2be   : > { %6001 = vmatpush.bf16.msra.mxu1 %v8528_v55  ;;  %v8767_v55 = vld [vmem:[%s11071_s28 + $0x428] sm:$0xf]  ;;  %v3403_v5 = vpop.f32.mrf.mxu2  ;;  %6012 = vmatpush.bf16.msra.mxu2 %v8792_v7  ;;  %v9271_v7 = vld [vmem:[%s11071_s28 + $0x818] sm:$0xf] }
 0x2bf   : > { %v3404_v52 = vadd.f32 %v3403_v5, %v3390_v63  ;;  %v9673_v63 = vld [vmem:[%s11071_s28 + $0xb58] sm:$0xf0]  ;;  %v9272_v5 = vor.u32 %v10423_v33, %v9271_v7  ;;  %v8385_v7 = vld [vmem:[%s11071_s28 + $0x140] sm:$0xf0] }
 0x2c0   : > { %5988 = vmatpush.bf16.msra.mxu0 %v8312_v29  ;;  %v3417_v34 = vpop.f32.mrf.mxu3  ;;  %v8768_v29 = vor.u32 %v10297_v1, %v8767_v55  ;;  %v10273_v55 = vld [vmem:[%s11071_s28 + $0x37c] sm:$0xf0]  ;;  %v9080_v1 = vor.u32 %v10375_v61, %v9079_v21  ;;  %v9676_v19 = vor.u32 %v10521_v59, %v9673_v63  ;;  %v9604_v21 = vor.u32 %v10503_v14, %v9601_v31  ;;  %v9577_v33 = vld [vmem:[%s11071_s28 + $0xa98] sm:$0xf0]  ;;  %v10246_v59 = vld [vmem:[%s11071_s28 + $0x2ac] sm:$0xf] }
 0x2c1   : > { %v3418_v45 = vadd.f32 %v3417_v34, %v3404_v52  ;;  %v9649_v34 = vld [vmem:[%s11071_s28 + $0xb28] sm:$0xf0]  ;;  %v8577_v63 = vld [vmem:[%s11071_s28 + $0x2c0] sm:$0xf0]  ;;  %v8505_v14 = vld [vmem:[%s11071_s28 + $0x230] sm:$0xf0] }
 0x2c2   : > { %6002 = vmatpush.bf16.msra.mxu1 %v8504_v41  ;;  %v10441_v41 = vld [vmem:[%s11071_s28 + $0x8bc] sm:$0xf0]  ;;  %6013 = vmatpush.bf16.msra.mxu2 %v8768_v29  ;;  %v8647_v29 = vld [vmem:[%s11071_s28 + $0x338] sm:$0xf] }
 0x2c3   : > { %v3435_v20 = vmax.f32 %v3418_v45, 0.0  ;;  %v9344_v47 = vor.u32 %v10441_v41, %v9343_v35  ;;  %v10267_v35 = vld [vmem:[%s11071_s28 + $0x34c] sm:$0xf0]  ;;  %v9031_v45 = vld [vmem:[%s11071_s28 + $0x638] sm:$0xf] }
 0x2c4   : > { %5989 = vmatpush.bf16.msra.mxu0 %v8288_v56  ;;  %v10387_v56 = vld [vmem:[%s11071_s28 + $0x70c] sm:$0xf0] }
 0x2c5   : > { %v12413_v32 = vpack.c.bf16 %v3435_v20, %v3427_v54  ;;  %v9128_v10 = vor.u32 %v10387_v56, %v9127_v30  ;;  %v10411_v54 = vld [vmem:[%s11071_s28 + $0x7cc] sm:$0xf0]  ;;  %v10509_v20 = vld [vmem:[%s11071_s28 + $0xae4] sm:$0xf]  ;;  %v8623_v30 = vld [vmem:[%s11071_s28 + $0x308] sm:$0xf] }
 0x2c6   : > { %6003 = vmatpush.bf16.msra.mxu1 %v8480_v2  ;;  %v8744_v2 = vor.u32 %v10291_v27, %v8743_v26  ;;  %v9652_v26 = vor.u32 %v10515_v3, %v9649_v34  ;;  %v8648_v27 = vor.u32 %v10267_v35, %v8647_v29  ;;  %v10261_v56 = vld [vmem:[%s11071_s28 + $0x31c] sm:$0xf0]  ;;  %v10240_v34 = vld [vmem:[%s11071_s28 + $0x27c] sm:$0xf]  ;;  %v8553_v29 = vld [vmem:[%s11071_s28 + $0x290] sm:$0xf0] }
 0x2c7   : > { %5866 = vmatmul.bf16.vlgmr.msrb.gmra.mxu3 %v12413_v32 }
 0x2c8   : > { %5990 = vmatpush.bf16.msra.mxu0 %v8264_v44  ;;  %5970 = vmatpush.bf16.msrb.mxu3 %v9748_v13  ;;  %v8720_v44 = vor.u32 %v10285_v36, %v8719_v24  ;;  %v9032_v13 = vor.u32 %v10363_v37, %v9031_v45  ;;  %v9199_v24 = vld [vmem:[%s11071_s28 + $0x788] sm:$0xf]  ;;  %v10405_v36 = vld [vmem:[%s11071_s28 + $0x79c] sm:$0xf0] }
 0x2c9   : > { %6014 = vmatpush.bf16.msra.mxu2 %v8744_v2  ;;  %v9007_v2 = vld [vmem:[%s11071_s28 + $0x608] sm:$0xf]  ;;  %v9200_v57 = vor.u32 %v10405_v36, %v9199_v24  ;;  %v10180_v24 = vld [vmem:[%s11071_s28 + $0x9c] sm:$0xf]  ;;  %v8313_v36 = vld [vmem:[%s11071_s28 + $0xb0] sm:$0xf0] }
 0x2ca   : > { %6004 = vmatpush.bf16.msra.mxu1 %v8456_v11  ;;  %v10527_v11 = vld [vmem:[%s11071_s28 + $0xb74] sm:$0xf]  ;;  %v9487_v37 = vld [vmem:[%s11071_s28 + $0x9c8] sm:$0xf]  ;;  %v8316_v31 = vor.u32 %v10180_v24, %v8313_v36 }
 0x2cb   : > { %v9700_v58 = vor.u32 %v10527_v11, %v9697_v53  ;;  %v8601_v11 = vld [vmem:[%s11071_s28 + $0x2f0] sm:$0xf0]  ;;  %v9008_v53 = vor.u32 %v10357_v25, %v9007_v2  ;;  %v10339_v2 = vld [vmem:[%s11071_s28 + $0x58c] sm:$0xf0] }
 0x2cc   : > { %5991 = vmatpush.bf16.msra.mxu0 %v8240_v62  ;;  %5971 = vmatpush.bf16.msrb.mxu3 %v9724_v28  ;;  %v8671_v62 = vld [vmem:[%s11071_s28 + $0x368] sm:$0xf]  ;;  %v8409_v28 = vld [vmem:[%s11071_s28 + $0x170] sm:$0xf0]  ;;  %v8604_v61 = vor.u32 %v10252_v6, %v8601_v11  ;;  %v10465_v11 = vld [vmem:[%s11071_s28 + $0x97c] sm:$0xf0] }
 0x2cd   : > { %6015 = vmatpush.bf16.msra.mxu2 %v8720_v44  ;;  %v8672_v52 = vor.u32 %v10273_v55, %v8671_v62  ;;  %v9560_v44 = vor.u32 %v10495_v23, %v9559_v12  ;;  %v8412_v46 = vor.u32 %v10204_v43, %v8409_v28  ;;  %v8983_v55 = vld [vmem:[%s11071_s28 + $0x5d8] sm:$0xf]  ;;  %v8911_v28 = vld [vmem:[%s11071_s28 + $0x548] sm:$0xf] }
 0x2ce   : > { %6005 = vmatpush.bf16.msra.mxu1 %v8432_v60  ;;  %v9055_v60 = vld [vmem:[%s11071_s28 + $0x668] sm:$0xf]  ;;  %v9463_v23 = vld [vmem:[%s11071_s28 + $0x998] sm:$0xf] }
 0x2cf   : > { %5992 = vmatmul.bf16.vlgmr.msra.gmra.mxu0 %v12141_v22  ;;  %v9439_v6 = vld [vmem:[%s11071_s28 + $0x968] sm:$0xf] }
 0x2d0   : > { %6040 = vmatpush.bf16.msrb.mxu0 %v9176_v18  ;;  %v10369_v18 = vld [vmem:[%s11071_s28 + $0x67c] sm:$0xf0]  ;;  %5972 = vmatpush.bf16.msrb.mxu3 %v9700_v58  ;;  %v10497_v58 = vld [vmem:[%s11071_s28 + $0xa84] sm:$0xf] }
 0x2d1   : > { %6006 = vmatmul.bf16.vlgmr.msra.gmra.mxu1 %v12145_v15  ;;  %6016 = vmatpush.bf16.msra.mxu2 %v8696_v16  ;;  %v9056_v41 = vor.u32 %v10369_v18, %v9055_v60  ;;  %v10198_v16 = vld [vmem:[%s11071_s28 + $0x12c] sm:$0xf]  ;;  %v9511_v60 = vld [vmem:[%s11071_s28 + $0x9f8] sm:$0xf]  ;;  %v10483_v18 = vld [vmem:[%s11071_s28 + $0xa0c] sm:$0xf0] }
 0x2d2   : > { %6054 = vmatpush.bf16.msrb.mxu1 %v9368_v17  ;;  %v9247_v17 = vld [vmem:[%s11071_s28 + $0x7e8] sm:$0xf]  ;;  %v9512_v35 = vor.u32 %v10483_v18, %v9511_v60  ;;  %v8457_v60 = vld [vmem:[%s11071_s28 + $0x1d0] sm:$0xf0] }
 0x2d3   : > { %v9248_v42 = vor.u32 %v10417_v48, %v9247_v17  ;;  %v10192_v17 = vld [vmem:[%s11071_s28 + $0xfc] sm:$0xf]  ;;  %v8361_v48 = vld [vmem:[%s11071_s28 + $0x110] sm:$0xf0]  ;;  %v8863_v18 = vld [vmem:[%s11071_s28 + $0x4e8] sm:$0xf] }
 0x2d4   : > { %6041 = vmatpush.bf16.msrb.mxu0 %v9152_v49  ;;  %5973 = vmatpush.bf16.msrb.mxu3 %v9676_v19  ;;  %v9223_v49 = vld [vmem:[%s11071_s28 + $0x7b8] sm:$0xf]  ;;  %v9580_v19 = vor.u32 %v10497_v58, %v9577_v33  ;;  %v8364_v45 = vor.u32 %v10192_v17, %v8361_v48  ;;  %v9391_v17 = vld [vmem:[%s11071_s28 + $0x908] sm:$0xf]  ;;  %v10453_v48 = vld [vmem:[%s11071_s28 + $0x91c] sm:$0xf0] }
 0x2d5   : > { %6017 = vmatpush.bf16.msra.mxu2 %v8672_v52  ;;  %v9224_v8 = vor.u32 %v10411_v54, %v9223_v49  ;;  %v8580_v52 = vor.u32 %v10246_v59, %v8577_v63  ;;  %v10186_v49 = vld [vmem:[%s11071_s28 + $0xcc] sm:$0xf]  ;;  %v8337_v54 = vld [vmem:[%s11071_s28 + $0xe0] sm:$0xf0]  ;;  %v8887_v58 = vld [vmem:[%s11071_s28 + $0x518] sm:$0xf] }
 0x2d6   : > { %6055 = vmatpush.bf16.msrb.mxu1 %v9344_v47  ;;  %v9625_v47 = vld [vmem:[%s11071_s28 + $0xaf8] sm:$0xf0]  ;;  %v8340_v12 = vor.u32 %v10186_v49, %v8337_v54  ;;  %v9415_v33 = vld [vmem:[%s11071_s28 + $0x938] sm:$0xf]  ;;  %v10459_v59 = vld [vmem:[%s11071_s28 + $0x94c] sm:$0xf0] }
 0x2d7   : > { %5922 = vmatmul.bf16.vlgmr.msra.gmra.mxu3 %v12157_v39  ;;  %v10396_v49 = vld [vmem:[%s11071_s28 + $0x75c] sm:$0xf]  ;;  %v9177_v54 = vld [vmem:[%s11071_s28 + $0x770] sm:$0xf0] }
 0x2d8   : > { %6042 = vmatpush.bf16.msrb.mxu0 %v9128_v10  ;;  %5974 = vmatpush.bf16.msrb.mxu3 %v9652_v26  ;;  %v9628_v10 = vor.u32 %v10509_v20, %v9625_v47  ;;  %v10477_v26 = vld [vmem:[%s11071_s28 + $0x9dc] sm:$0xf0]  ;;  %v10234_v47 = vld [vmem:[%s11071_s28 + $0x24c] sm:$0xf] }
 0x2d9   : > { %6018 = vmatpush.bf16.msra.mxu2 %v8648_v27  ;;  %v8556_v27 = vor.u32 %v10240_v34, %v8553_v29  ;;  %v10162_v34 = vld [vmem:[%s11071_s28 + $0xc] sm:$0xf]  ;;  %v8241_v29 = vld [vmem:[%s11071_s28 + $0x20] sm:$0xf0] }
 0x2da   : > { %6056 = vmatpush.bf16.msrb.mxu1 %v9320_v38  ;;  %v8624_v38 = vor.u32 %v10261_v56, %v8623_v30  ;;  %v8529_v30 = vld [vmem:[%s11071_s28 + $0x260] sm:$0xf0]  ;;  %v9488_v56 = vor.u32 %v10477_v26, %v9487_v37  ;;  %v8793_v37 = vld [vmem:[%s11071_s28 + $0x470] sm:$0xf0] }
 0x2db   : > { %v8532_v25 = vor.u32 %v10234_v47, %v8529_v30  ;;  %v10315_v47 = vld [vmem:[%s11071_s28 + $0x4cc] sm:$0xf0]  ;;  %v10444_v30 = vld [vmem:[%s11071_s28 + $0x8dc] sm:$0xf] }
 0x2dc   : > { %6043 = vmatpush.bf16.msrb.mxu0 %v9104_v40  ;;  %v9535_v40 = vld [vmem:[%s11071_s28 + $0xa28] sm:$0xf]  ;;  %5975 = vmatpush.bf16.msrb.mxu3 %v9628_v10 }
 0x2dd   : > { %6019 = vmatpush.bf16.msra.mxu2 %v8624_v38  ;;  %v10228_v38 = vld [vmem:[%s11071_s28 + $0x21c] sm:$0xf] }
 0x2de   : > { %6057 = vmatpush.bf16.msrb.mxu1 %v9296_v50  ;;  %v10489_v50 = vld [vmem:[%s11071_s28 + $0xa3c] sm:$0xf0] }
 0x2df   : > { %v9536_v62 = vor.u32 %v10489_v50, %v9535_v40  ;;  %v10222_v50 = vld [vmem:[%s11071_s28 + $0x1ec] sm:$0xf] }
 0x2e0   : > { %6044 = vmatpush.bf16.msrb.mxu0 %v9080_v1  ;;  %v10351_v1 = vld [vmem:[%s11071_s28 + $0x5ec] sm:$0xf0]  ;;  %5976 = vmatpush.bf16.msrb.mxu3 %v9604_v21  ;;  %v8481_v21 = vld [vmem:[%s11071_s28 + $0x200] sm:$0xf0] }
 0x2e1   : > { %6068 = vmatpush.bf16.msrb.mxu2 %v9560_v44  ;;  %v8984_v3 = vor.u32 %v10351_v1, %v8983_v55  ;;  %v10333_v44 = vld [vmem:[%s11071_s28 + $0x55c] sm:$0xf0]  ;;  %v8484_v63 = vor.u32 %v10222_v50, %v8481_v21  ;;  %v8265_v55 = vld [vmem:[%s11071_s28 + $0x50] sm:$0xf0]  ;;  %v10384_v21 = vld [vmem:[%s11071_s28 + $0x6fc] sm:$0xf] }
 0x2e2   : > { %6058 = vmatpush.bf16.msrb.mxu1 %v9272_v5  ;;  %v8388_v5 = vor.u32 %v10198_v16, %v8385_v7  ;;  %6020 = vmatmul.bf16.vlgmr.msra.gmra.mxu2 %v12150_v4  ;;  %v8912_v40 = vor.u32 %v10333_v44, %v8911_v28  ;;  %v10327_v16 = vld [vmem:[%s11071_s28 + $0x52c] sm:$0xf0]  ;;  %v10438_v28 = vld [vmem:[%s11071_s28 + $0x8ac] sm:$0xf]  ;;  %v9345_v44 = vld [vmem:[%s11071_s28 + $0x8c0] sm:$0xf0] }
 0x2e3   : > { %v8888_v1 = vor.u32 %v10327_v16, %v8887_v58  ;;  %v9348_v50 = vor.u32 %v10438_v28, %v9345_v44  ;;  %v10432_v16 = vld [vmem:[%s11071_s28 + $0x87c] sm:$0xf]  ;;  %v8649_v28 = vld [vmem:[%s11071_s28 + $0x350] sm:$0xf0] }
 0x2e4   : > { %6045 = vmatpush.bf16.msrb.mxu0 %v9056_v41  ;;  %v8959_v41 = vld [vmem:[%s11071_s28 + $0x5a8] sm:$0xf]  ;;  %5977 = vmatpush.bf16.msrb.mxu3 %v9580_v19  ;;  %v9416_v19 = vor.u32 %v10459_v59, %v9415_v33 }
 0x2e5   : > { %6069 = vmatpush.bf16.msrb.mxu2 %v9536_v62  ;;  %v10168_v62 = vld [vmem:[%s11071_s28 + $0x3c] sm:$0xf]  ;;  %v9727_v59 = vld [vmem:[%s11071_s28 + $0xba8] sm:$0xf] }
 0x2e6   : > { %6059 = vmatpush.bf16.msrb.mxu1 %v9248_v42  ;;  %v10345_v42 = vld [vmem:[%s11071_s28 + $0x5bc] sm:$0xf0] }
 0x2e7   : > { %v8960_v20 = vor.u32 %v10345_v42, %v8959_v41  ;;  %5978 = vmatmul.bf16.vlgmr.msrb.gmra.mxu3 %v12413_v32  ;;  %v8433_v42 = vld [vmem:[%s11071_s28 + $0x1a0] sm:$0xf0] }
 0x2e8   : > { %6046 = vmatpush.bf16.msrb.mxu0 %v9032_v13  ;;  %6026 = vmatpush.bf16.msra.mxu3 %v8984_v3  ;;  %v8935_v13 = vld [vmem:[%s11071_s28 + $0x578] sm:$0xf]  ;;  %v8268_v3 = vor.u32 %v10168_v62, %v8265_v55  ;;  %v10282_v55 = vld [vmem:[%s11071_s28 + $0x3cc] sm:$0xf] }
 0x2e9   : > { %6070 = vmatpush.bf16.msrb.mxu2 %v9512_v35  ;;  %v8936_v10 = vor.u32 %v10339_v2, %v8935_v13  ;;  %v10210_v35 = vld [vmem:[%s11071_s28 + $0x18c] sm:$0xf]  ;;  %v8244_v13 = vor.u32 %v10162_v34, %v8241_v29  ;;  %v10531_v34 = vld [vmem:[%s11071_s28 + $0xb8c] sm:$0xf0] }
 0x2ea   : > { %6060 = vmatpush.bf16.msrb.mxu1 %v9224_v8  ;;  %v10471_v8 = vld [vmem:[%s11071_s28 + $0x9ac] sm:$0xf0] }
 0x2eb   : > { %v9464_v43 = vor.u32 %v10471_v8, %v9463_v23  ;;  %v9180_v23 = vor.u32 %v10396_v49, %v9177_v54  ;;  %v10294_v8 = vld [vmem:[%s11071_s28 + $0x42c] sm:$0xf]  ;;  %v9273_v49 = vld [vmem:[%s11071_s28 + $0x830] sm:$0xf0] }
 0x2ec   : > { %6047 = vmatpush.bf16.msrb.mxu0 %v9008_v53  ;;  %6027 = vmatpush.bf16.msra.mxu3 %v8960_v20  ;;  %v8508_v53 = vor.u32 %v10228_v38, %v8505_v14  ;;  %v9392_v20 = vor.u32 %v10453_v48, %v9391_v17  ;;  %v10390_v38 = vld [vmem:[%s11071_s28 + $0x72c] sm:$0xf]  ;;  %v9153_v14 = vld [vmem:[%s11071_s28 + $0x740] sm:$0xf0] }
 0x2ed   : > { %6071 = vmatpush.bf16.msrb.mxu2 %v9488_v56  ;;  %v9369_v56 = vld [vmem:[%s11071_s28 + $0x8f0] sm:$0xf0]  ;;  %v9297_v17 = vld [vmem:[%s11071_s28 + $0x860] sm:$0xf0] }
 0x2ee   : > { %6061 = vmatpush.bf16.msrb.mxu1 %v9200_v57  ;;  %v10174_v57 = vld [vmem:[%s11071_s28 + $0x6c] sm:$0xf]  ;;  %v9372_v36 = vor.u32 %v10444_v30, %v9369_v56 }
 0x2ef   : > { %6048 = vmatmul.bf16.vlgmr.msrb.gmra.mxu0 %v12221_v0  ;;  %v10270_v56 = vld [vmem:[%s11071_s28 + $0x36c] sm:$0xf] }
 0x2f0   : > { %6096 = vmatpush.bf16.msra.mxu0 %v8412_v46  ;;  %v8289_v46 = vld [vmem:[%s11071_s28 + $0x80] sm:$0xf0]  ;;  %6028 = vmatpush.bf16.msra.mxu3 %v8936_v10  ;;  %v8815_v10 = vld [vmem:[%s11071_s28 + $0x488] sm:$0xf] }
 0x2f1   : > { %6062 = vmatmul.bf16.vlgmr.msrb.gmra.mxu1 %v12223_v51  ;;  %6072 = vmatpush.bf16.msrb.mxu2 %v9464_v43  ;;  %v8292_v7 = vor.u32 %v10174_v57, %v8289_v46  ;;  %v10309_v43 = vld [vmem:[%s11071_s28 + $0x49c] sm:$0xf0]  ;;  %v10288_v57 = vld [vmem:[%s11071_s28 + $0x3fc] sm:$0xf]  ;;  %v8745_v46 = vld [vmem:[%s11071_s28 + $0x410] sm:$0xf0] }
 0x2f2   : > { %6110 = vmatpush.bf16.msra.mxu1 %v8604_v61  ;;  %v9440_v61 = vor.u32 %v10465_v11, %v9439_v6  ;;  %v9751_v6 = vld [vmem:[%s11071_s28 + $0xbd8] sm:$0xf]  ;;  %v10543_v11 = vld [vmem:[%s11071_s28 + $0xbec] sm:$0xf0]  ;;  %v8748_v33 = vor.u32 %v10288_v57, %v8745_v46  ;;  %v9225_v57 = vld [vmem:[%s11071_s28 + $0x7d0] sm:$0xf0] }
 0x2f3   : > { %v9752_v58 = vor.u32 %v10543_v11, %v9751_v6  ;;  %v9033_v6 = vld [vmem:[%s11071_s28 + $0x650] sm:$0xf0]  ;;  %v9631_v46 = vld [vmem:[%s11071_s28 + $0xae8] sm:$0xf] }
 0x2f4   : > { %6097 = vmatpush.bf16.msra.mxu0 %v8388_v5  ;;  %6029 = vmatpush.bf16.msra.mxu3 %v8912_v40  ;;  %v10216_v5 = vld [vmem:[%s11071_s28 + $0x1bc] sm:$0xf]  ;;  %v8816_v40 = vor.u32 %v10309_v43, %v8815_v10  ;;  %v9655_v10 = vld [vmem:[%s11071_s28 + $0xb18] sm:$0xf] }
 0x2f5   : > { %6073 = vmatpush.bf16.msrb.mxu2 %v9440_v61  ;;  %v8460_v41 = vor.u32 %v10216_v5, %v8457_v60  ;;  %v9129_v61 = vld [vmem:[%s11071_s28 + $0x710] sm:$0xf0]  ;;  %v10378_v60 = vld [vmem:[%s11071_s28 + $0x6cc] sm:$0xf]  ;;  %v10264_v43 = vld [vmem:[%s11071_s28 + $0x33c] sm:$0xf] }
 0x2f6   : > { %6111 = vmatpush.bf16.msra.mxu1 %v8580_v52  ;;  %v10321_v52 = vld [vmem:[%s11071_s28 + $0x4fc] sm:$0xf0]  ;;  %v9132_v62 = vor.u32 %v10384_v21, %v9129_v61  ;;  %v10258_v21 = vld [vmem:[%s11071_s28 + $0x30c] sm:$0xf]  ;;  %v8625_v61 = vld [vmem:[%s11071_s28 + $0x320] sm:$0xf0] }
 0x2f7   : > { %v8864_v26 = vor.u32 %v10321_v52, %v8863_v18  ;;  %v9105_v18 = vld [vmem:[%s11071_s28 + $0x6e0] sm:$0xf0]  ;;  %v10426_v52 = vld [vmem:[%s11071_s28 + $0x84c] sm:$0xf] }
 0x2f8   : > { %6098 = vmatpush.bf16.msra.mxu0 %v8364_v45  ;;  %v10300_v45 = vld [vmem:[%s11071_s28 + $0x45c] sm:$0xf]  ;;  %6030 = vmatpush.bf16.msra.mxu3 %v8888_v1  ;;  %v8721_v1 = vld [vmem:[%s11071_s28 + $0x3e0] sm:$0xf0]  ;;  %v9108_v29 = vor.u32 %v10378_v60, %v9105_v18  ;;  %v8415_v60 = vld [vmem:[%s11071_s28 + $0x160] sm:$0xf] }
 0x2f9   : > { %6074 = vmatpush.bf16.msrb.mxu2 %v9416_v19  ;;  %v8796_v2 = vor.u32 %v10300_v45, %v8793_v37  ;;  %v8724_v48 = vor.u32 %v10282_v55, %v8721_v1  ;;  %v10372_v45 = vld [vmem:[%s11071_s28 + $0x69c] sm:$0xf]  ;;  %v9081_v37 = vld [vmem:[%s11071_s28 + $0x6b0] sm:$0xf0]  ;;  %v10208_v18 = vld [vmem:[%s11071_s28 + $0x174] sm:$0xf0] }
 0x2fa   : > { %6112 = vmatpush.bf16.msra.mxu1 %v8556_v27  ;;  %v8839_v27 = vld [vmem:[%s11071_s28 + $0x4b8] sm:$0xf]  ;;  %v9084_v30 = vor.u32 %v10372_v45, %v9081_v37  ;;  %v9561_v55 = vld [vmem:[%s11071_s28 + $0xa70] sm:$0xf0] }
 0x2fb   : > { %v8840_v24 = vor.u32 %v10315_v47, %v8839_v27  ;;  %v10420_v27 = vld [vmem:[%s11071_s28 + $0x81c] sm:$0xf]  ;;  %v10525_v47 = vld [vmem:[%s11071_s28 + $0xb5c] sm:$0xf0] }
 0x2fc   : > { %6099 = vmatpush.bf16.msra.mxu0 %v8340_v12  ;;  %v8436_v12 = vor.u32 %v10210_v35, %v8433_v42  ;;  %6031 = vmatpush.bf16.msra.mxu3 %v8864_v26  ;;  %v10276_v35 = vld [vmem:[%s11071_s28 + $0x39c] sm:$0xf]  ;;  %v9300_v42 = vor.u32 %v10426_v52, %v9297_v17  ;;  %v10507_v52 = vld [vmem:[%s11071_s28 + $0xacc] sm:$0xf0]  ;;  %v8607_v17 = vld [vmem:[%s11071_s28 + $0x2e0] sm:$0xf] }
 0x2fd   : > { %6075 = vmatpush.bf16.msrb.mxu2 %v9392_v20  ;;  %v9679_v20 = vld [vmem:[%s11071_s28 + $0xb48] sm:$0xf] }
 0x2fe   : > { %6113 = vmatpush.bf16.msra.mxu1 %v8532_v25  ;;  %v8769_v25 = vld [vmem:[%s11071_s28 + $0x440] sm:$0xf0] }
 0x300   : > { %6100 = vmatpush.bf16.msra.mxu0 %v8316_v31  ;;  %v8772_v31 = vor.u32 %v10294_v8, %v8769_v25  ;;  %6032 = vmatpush.bf16.msra.mxu3 %v8840_v24  ;;  %v9680_v8 = vor.u32 %v10525_v47, %v9679_v20  ;;  %v10414_v25 = vld [vmem:[%s11071_s28 + $0x7ec] sm:$0xf]  ;;  %v9249_v24 = vld [vmem:[%s11071_s28 + $0x800] sm:$0xf0]  ;;  %v8583_v20 = vld [vmem:[%s11071_s28 + $0x2b0] sm:$0xf] }
 0x301   : > { %6124 = vmatpush.bf16.msra.mxu2 %v8796_v2  ;;  %v9276_v2 = vor.u32 %v10420_v27, %v9273_v49  ;;  %v9252_v44 = vor.u32 %v10414_v25, %v9249_v24  ;;  %v8391_v27 = vld [vmem:[%s11071_s28 + $0x130] sm:$0xf]  ;;  %v10202_v49 = vld [vmem:[%s11071_s28 + $0x144] sm:$0xf0]  ;;  %v8367_v24 = vld [vmem:[%s11071_s28 + $0x100] sm:$0xf] }
 0x302   : > { %6114 = vmatpush.bf16.msra.mxu1 %v8508_v53  ;;  %v9156_v53 = vor.u32 %v10390_v38, %v9153_v14  ;;  %6076 = vmatmul.bf16.vlgmr.msrb.gmra.mxu2 %v12337_v9  ;;  %v10519_v38 = vld [vmem:[%s11071_s28 + $0xb2c] sm:$0xf0]  ;;  %v10250_v47 = vld [vmem:[%s11071_s28 + $0x2c4] sm:$0xf0] }
 0x303   : > { %v9656_v11 = vor.u32 %v10519_v38, %v9655_v10  ;;  %v8584_v25 = vor.u32 %v10250_v47, %v8583_v20  ;;  %v8559_v38 = vld [vmem:[%s11071_s28 + $0x280] sm:$0xf]  ;;  %v10456_v20 = vld [vmem:[%s11071_s28 + $0x93c] sm:$0xf]  ;;  %v9417_v47 = vld [vmem:[%s11071_s28 + $0x950] sm:$0xf0] }
 0x304   : > { %6101 = vmatpush.bf16.msra.mxu0 %v8292_v7  ;;  %v9321_v7 = vld [vmem:[%s11071_s28 + $0x890] sm:$0xf0]  ;;  %6033 = vmatpush.bf16.msra.mxu3 %v8816_v40  ;;  %v8652_v40 = vor.u32 %v10264_v43, %v8649_v28  ;;  %v10342_v28 = vld [vmem:[%s11071_s28 + $0x5ac] sm:$0xf] }
 0x305   : > { %6125 = vmatpush.bf16.msra.mxu2 %v8772_v31  ;;  %v9324_v5 = vor.u32 %v10432_v16, %v9321_v7  ;;  %v10360_v31 = vld [vmem:[%s11071_s28 + $0x63c] sm:$0xf]  ;;  %v10354_v16 = vld [vmem:[%s11071_s28 + $0x60c] sm:$0xf]  ;;  %v9009_v7 = vld [vmem:[%s11071_s28 + $0x620] sm:$0xf0] }
 0x306   : > { %6115 = vmatpush.bf16.msra.mxu1 %v8484_v63  ;;  %v10537_v63 = vld [vmem:[%s11071_s28 + $0xbbc] sm:$0xf0] }
 0x307   : > { %v9728_v19 = vor.u32 %v10537_v63, %v9727_v59  ;;  %6034 = vmatmul.bf16.vlgmr.msra.gmra.mxu3 %v12157_v39  ;;  %v9201_v63 = vld [vmem:[%s11071_s28 + $0x7a0] sm:$0xf0] }
 0x308   : > { %6102 = vmatpush.bf16.msra.mxu0 %v8268_v3  ;;  %6082 = vmatpush.bf16.msrb.mxu3 %v9752_v58  ;;  %v9703_v3 = vld [vmem:[%s11071_s28 + $0xb78] sm:$0xf]  ;;  %v9036_v58 = vor.u32 %v10360_v31, %v9033_v6  ;;  %v10474_v6 = vld [vmem:[%s11071_s28 + $0x9cc] sm:$0xf] }
 0x309   : > { %6126 = vmatpush.bf16.msra.mxu2 %v8748_v33  ;;  %v9704_v26 = vor.u32 %v10531_v34, %v9703_v3  ;;  %v10402_v33 = vld [vmem:[%s11071_s28 + $0x78c] sm:$0xf]  ;;  %v9012_v3 = vor.u32 %v10354_v16, %v9009_v7  ;;  %v8937_v16 = vld [vmem:[%s11071_s28 + $0x590] sm:$0xf0] }
 0x30a   : > { %6116 = vmatpush.bf16.msra.mxu1 %v8460_v41  ;;  %v8697_v41 = vld [vmem:[%s11071_s28 + $0x3b0] sm:$0xf0] }
 0x30b   : > { %v8700_v54 = vor.u32 %v10276_v35, %v8697_v41  ;;  %v8416_v35 = vor.u32 %v10208_v18, %v8415_v60  ;;  %v10486_v41 = vld [vmem:[%s11071_s28 + $0xa2c] sm:$0xf]  ;;  %v10232_v60 = vld [vmem:[%s11071_s28 + $0x234] sm:$0xf0] }
 0x30c   : > { %6103 = vmatpush.bf16.msra.mxu0 %v8244_v13  ;;  %6083 = vmatpush.bf16.msrb.mxu3 %v9728_v19  ;;  %v8673_v13 = vld [vmem:[%s11071_s28 + $0x380] sm:$0xf0]  ;;  %v8628_v19 = vor.u32 %v10258_v21, %v8625_v61  ;;  %v10238_v21 = vld [vmem:[%s11071_s28 + $0x264] sm:$0xf0] }
 0x30d   : > { %6127 = vmatpush.bf16.msra.mxu2 %v8724_v48  ;;  %v10256_v48 = vld [vmem:[%s11071_s28 + $0x2f4] sm:$0xf0] }
 0x30e   : > { %6117 = vmatpush.bf16.msra.mxu1 %v8436_v12  ;;  %v10366_v12 = vld [vmem:[%s11071_s28 + $0x66c] sm:$0xf]  ;;  %v8608_v37 = vor.u32 %v10256_v48, %v8607_v17 }
 0x30f   : > { %6104 = vmatmul.bf16.vlgmr.msra.gmra.mxu0 %v12141_v22  ;;  %v10462_v48 = vld [vmem:[%s11071_s28 + $0x96c] sm:$0xf] }
 0x310   : > { %6152 = vmatpush.bf16.msrb.mxu0 %v9180_v23  ;;  %v9057_v23 = vld [vmem:[%s11071_s28 + $0x680] sm:$0xf0]  ;;  %6084 = vmatpush.bf16.msrb.mxu3 %v9704_v26  ;;  %v9583_v26 = vld [vmem:[%s11071_s28 + $0xa88] sm:$0xf] }
 0x311   : > { %6118 = vmatmul.bf16.vlgmr.msra.gmra.mxu1 %v12145_v15  ;;  %6128 = vmatpush.bf16.msra.mxu2 %v8700_v54  ;;  %v9060_v14 = vor.u32 %v10366_v12, %v9057_v23  ;;  %v10501_v54 = vld [vmem:[%s11071_s28 + $0xa9c] sm:$0xf0]  ;;  %v10480_v12 = vld [vmem:[%s11071_s28 + $0x9fc] sm:$0xf]  ;;  %v9513_v23 = vld [vmem:[%s11071_s28 + $0xa10] sm:$0xf0] }
 0x312   : > { %6166 = vmatpush.bf16.msrb.mxu1 %v9372_v36  ;;  %v8676_v36 = vor.u32 %v10270_v56, %v8673_v13  ;;  %v10348_v56 = vld [vmem:[%s11071_s28 + $0x5dc] sm:$0xf]  ;;  %v8985_v13 = vld [vmem:[%s11071_s28 + $0x5f0] sm:$0xf0]  ;;  %v9516_v43 = vor.u32 %v10480_v12, %v9513_v23  ;;  %v8463_v12 = vld [vmem:[%s11071_s28 + $0x1c0] sm:$0xf] }
 0x313   : > { %v8988_v10 = vor.u32 %v10348_v56, %v8985_v13  ;;  %v8271_v56 = vld [vmem:[%s11071_s28 + $0x40] sm:$0xf]  ;;  %v10172_v13 = vld [vmem:[%s11071_s28 + $0x54] sm:$0xf0] }
 0x314   : > { %6153 = vmatpush.bf16.msrb.mxu0 %v9156_v53  ;;  %6085 = vmatpush.bf16.msrb.mxu3 %v9680_v8  ;;  %v10408_v53 = vld [vmem:[%s11071_s28 + $0x7bc] sm:$0xf]  ;;  %v9584_v8 = vor.u32 %v10501_v54, %v9583_v26  ;;  %v10220_v23 = vld [vmem:[%s11071_s28 + $0x1d4] sm:$0xf0] }
 0x315   : > { %6129 = vmatpush.bf16.msra.mxu2 %v8676_v36  ;;  %v9228_v59 = vor.u32 %v10408_v53, %v9225_v57  ;;  %v10196_v36 = vld [vmem:[%s11071_s28 + $0x114] sm:$0xf0]  ;;  %v8343_v57 = vld [vmem:[%s11071_s28 + $0xd0] sm:$0xf] }
 0x316   : > { %6167 = vmatpush.bf16.msrb.mxu1 %v9348_v50  ;;  %v10513_v50 = vld [vmem:[%s11071_s28 + $0xafc] sm:$0xf0]  ;;  %v8368_v31 = vor.u32 %v10196_v36, %v8367_v24  ;;  %v12658_v24 = vpop.f32.mrf.mxu2  ;;  %v9420_v36 = vor.u32 %v10456_v20, %v9417_v47 }
 0x317   : > { %v9632_v1 = vor.u32 %v10513_v50, %v9631_v46  ;;  %v10190_v46 = vld [vmem:[%s11071_s28 + $0xe4] sm:$0xf0]  ;;  %v8535_v50 = vld [vmem:[%s11071_s28 + $0x250] sm:$0xf]  ;;  %v9135_v47 = vld [vmem:[%s11071_s28 + $0x700] sm:$0xf] }
 0x318   : > { %6154 = vmatpush.bf16.msrb.mxu0 %v9132_v62  ;;  %v10492_v62 = vld [vmem:[%s11071_s28 + $0xa5c] sm:$0xf]  ;;  %6086 = vmatpush.bf16.msrb.mxu3 %v9656_v11  ;;  %v9489_v11 = vld [vmem:[%s11071_s28 + $0x9e0] sm:$0xf0]  ;;  %v8344_v7 = vor.u32 %v10190_v46, %v8343_v57  ;;  %v10304_v57 = vld [vmem:[%s11071_s28 + $0x474] sm:$0xf0] }
 0x319   : > { %6130 = vmatpush.bf16.msra.mxu2 %v8652_v40  ;;  %v9564_v34 = vor.u32 %v10492_v62, %v9561_v55  ;;  %v9492_v61 = vor.u32 %v10474_v6, %v9489_v11  ;;  %v8319_v62 = vld [vmem:[%s11071_s28 + $0xa0] sm:$0xf]  ;;  %v10184_v55 = vld [vmem:[%s11071_s28 + $0xb4] sm:$0xf0]  ;;  %v8464_v6 = vor.u32 %v10220_v23, %v8463_v12  ;;  %v10214_v11 = vld [vmem:[%s11071_s28 + $0x1a4] sm:$0xf0] }
 0x31a   : > { %6168 = vmatpush.bf16.msrb.mxu1 %v9324_v5  ;;  %v9607_v5 = vld [vmem:[%s11071_s28 + $0xab8] sm:$0xf]  ;;  %v8320_v17 = vor.u32 %v10184_v55, %v8319_v62 }
 0x31b   : > { %v9608_v45 = vor.u32 %v10507_v52, %v9607_v5  ;;  %v8511_v5 = vld [vmem:[%s11071_s28 + $0x220] sm:$0xf]  ;;  %v8913_v52 = vld [vmem:[%s11071_s28 + $0x560] sm:$0xf0]  ;;  %v10436_v12 = vld [vmem:[%s11071_s28 + $0x894] sm:$0xf0] }
 0x31c   : > { %6155 = vmatpush.bf16.msrb.mxu0 %v9108_v29  ;;  %v9204_v29 = vor.u32 %v10402_v33, %v9201_v63  ;;  %6087 = vmatpush.bf16.msrb.mxu3 %v9632_v1  ;;  %v10468_v33 = vld [vmem:[%s11071_s28 + $0x99c] sm:$0xf]  ;;  %v8536_v63 = vor.u32 %v10238_v21, %v8535_v50  ;;  %v9183_v50 = vld [vmem:[%s11071_s28 + $0x760] sm:$0xf]  ;;  %v10400_v21 = vld [vmem:[%s11071_s28 + $0x774] sm:$0xf0] }
 0x31d   : > { %6131 = vmatpush.bf16.msra.mxu2 %v8628_v19  ;;  %v10330_v19 = vld [vmem:[%s11071_s28 + $0x54c] sm:$0xf]  ;;  %v9184_v55 = vor.u32 %v10400_v21, %v9183_v50  ;;  %v10528_v50 = vld [vmem:[%s11071_s28 + $0xb7c] sm:$0xf] }
 0x31e   : > { %6169 = vmatpush.bf16.msrb.mxu1 %v9300_v42  ;;  %v9537_v42 = vld [vmem:[%s11071_s28 + $0xa40] sm:$0xf0] }
 0x320   : > { %6156 = vmatpush.bf16.msrb.mxu0 %v9084_v30  ;;  %v9540_v30 = vor.u32 %v10486_v41, %v9537_v42  ;;  %6088 = vmatpush.bf16.msrb.mxu3 %v9608_v45  ;;  %v8916_v41 = vor.u32 %v10330_v19, %v8913_v52  ;;  %v8487_v42 = vld [vmem:[%s11071_s28 + $0x1f0] sm:$0xf]  ;;  %v10226_v45 = vld [vmem:[%s11071_s28 + $0x204] sm:$0xf0]  ;;  %v10306_v19 = vld [vmem:[%s11071_s28 + $0x48c] sm:$0xf] }
 0x321   : > { %6180 = vmatpush.bf16.msrb.mxu2 %v9564_v34  ;;  %v8512_v34 = vor.u32 %v10232_v60, %v8511_v5  ;;  %v10298_v5 = vld [vmem:[%s11071_s28 + $0x444] sm:$0xf0]  ;;  %v9159_v52 = vld [vmem:[%s11071_s28 + $0x730] sm:$0xf] }
 0x322   : > { %6170 = vmatpush.bf16.msrb.mxu1 %v9276_v2  ;;  %v8392_v2 = vor.u32 %v10202_v49, %v8391_v27  ;;  %6132 = vmatmul.bf16.vlgmr.msra.gmra.mxu2 %v12150_v4  ;;  %v10324_v27 = vld [vmem:[%s11071_s28 + $0x51c] sm:$0xf]  ;;  %v8889_v49 = vld [vmem:[%s11071_s28 + $0x530] sm:$0xf0] }
 0x324   : > { %6157 = vmatpush.bf16.msrb.mxu0 %v9060_v14  ;;  %v10244_v14 = vld [vmem:[%s11071_s28 + $0x294] sm:$0xf0]  ;;  %6089 = vmatpush.bf16.msrb.mxu3 %v9584_v8  ;;  %v10318_v8 = vld [vmem:[%s11071_s28 + $0x4ec] sm:$0xf] }
 0x325   : > { %6181 = vmatpush.bf16.msrb.mxu2 %v9540_v30  ;;  %v8560_v53 = vor.u32 %v10244_v14, %v8559_v38  ;;  %v8488_v30 = vor.u32 %v10226_v45, %v8487_v42  ;;  %v10450_v38 = vld [vmem:[%s11071_s28 + $0x90c] sm:$0xf]  ;;  %v9393_v14 = vld [vmem:[%s11071_s28 + $0x920] sm:$0xf0]  ;;  %v12689_v45 = vpop.f32.mrf.mxu2 }
 0x326   : > { %6171 = vmatpush.bf16.msrb.mxu1 %v9252_v44  ;;  %v8961_v44 = vld [vmem:[%s11071_s28 + $0x5c0] sm:$0xf0] }
 0x327   : > { %v8964_v40 = vor.u32 %v10342_v28, %v8961_v44  ;;  %6090 = vmatmul.bf16.vlgmr.msrb.gmra.mxu3 %v12413_v32  ;;  %v8247_v28 = vld [vmem:[%s11071_s28 + $0x10] sm:$0xf]  ;;  %v10166_v44 = vld [vmem:[%s11071_s28 + $0x24] sm:$0xf0] }
 0x328   : > { %6158 = vmatpush.bf16.msrb.mxu0 %v9036_v58  ;;  %6138 = vmatpush.bf16.msra.mxu3 %v8988_v10  ;;  %v10336_v58 = vld [vmem:[%s11071_s28 + $0x57c] sm:$0xf]  ;;  %v8865_v10 = vld [vmem:[%s11071_s28 + $0x500] sm:$0xf0] }
 0x329   : > { %6182 = vmatpush.bf16.msrb.mxu2 %v9516_v43  ;;  %v8940_v1 = vor.u32 %v10336_v58, %v8937_v16  ;;  %v8272_v43 = vor.u32 %v10172_v13, %v8271_v56  ;;  %v8868_v46 = vor.u32 %v10318_v8, %v8865_v10  ;;  %v8841_v58 = vld [vmem:[%s11071_s28 + $0x4d0] sm:$0xf0]  ;;  %v9375_v16 = vld [vmem:[%s11071_s28 + $0x8e0] sm:$0xf]  ;;  %v5811_v56 = vpop.f32.mrf.mxu3  ;;  %v10534_v8 = vld [vmem:[%s11071_s28 + $0xbac] sm:$0xf] }
 0x32a   : > { %6172 = vmatpush.bf16.msrb.mxu1 %v9228_v59  ;;  %v9465_v59 = vld [vmem:[%s11071_s28 + $0x9b0] sm:$0xf0] }
 0x32b   : > { %v9468_v18 = vor.u32 %v10468_v33, %v9465_v59  ;;  %v8248_v33 = vor.u32 %v10166_v44, %v8247_v28 }
 0x32c   : > { %6159 = vmatpush.bf16.msrb.mxu0 %v9012_v3  ;;  %6139 = vmatpush.bf16.msra.mxu3 %v8964_v40  ;;  %v9441_v3 = vld [vmem:[%s11071_s28 + $0x980] sm:$0xf0]  ;;  %v10312_v40 = vld [vmem:[%s11071_s28 + $0x4bc] sm:$0xf] }
 0x32d   : > { %6183 = vmatpush.bf16.msrb.mxu2 %v9492_v61  ;;  %v9444_v26 = vor.u32 %v10462_v48, %v9441_v3  ;;  %v9396_v61 = vor.u32 %v10450_v38, %v9393_v14  ;;  %v8844_v60 = vor.u32 %v10312_v40, %v8841_v58  ;;  %v8817_v48 = vld [vmem:[%s11071_s28 + $0x4a0] sm:$0xf0]  ;;  %v9351_v3 = vld [vmem:[%s11071_s28 + $0x8b0] sm:$0xf]  ;;  %v5853_v21 = vpop.f32.mrf.mxu2  ;;  %v8703_v58 = vld [vmem:[%s11071_s28 + $0x3a0] sm:$0xf] }
 0x32e   : > { %6173 = vmatpush.bf16.msrb.mxu1 %v9204_v29  ;;  %v8295_v29 = vld [vmem:[%s11071_s28 + $0x70] sm:$0xf] }
 0x32f   : > { %6160 = vmatmul.bf16.vlgmr.msrb.gmra.mxu0 %v12221_v0  ;;  %v8727_v14 = vld [vmem:[%s11071_s28 + $0x3d0] sm:$0xf] }
 0x330   : > { %6208 = vmatpush.bf16.msra.mxu0 %v8416_v35  ;;  %v10178_v35 = vld [vmem:[%s11071_s28 + $0x84] sm:$0xf0]  ;;  %6140 = vmatpush.bf16.msra.mxu3 %v8940_v1  ;;  %v8775_v1 = vld [vmem:[%s11071_s28 + $0x430] sm:$0xf] }
 0x331   : > { %6174 = vmatmul.bf16.vlgmr.msrb.gmra.mxu1 %v12223_v51  ;;  %6184 = vmatpush.bf16.msrb.mxu2 %v9468_v18  ;;  %v8296_v54 = vor.u32 %v10178_v35, %v8295_v29  ;;  %v8776_v29 = vor.u32 %v10298_v5, %v8775_v1  ;;  %v10540_v35 = vld [vmem:[%s11071_s28 + $0xbdc] sm:$0xf] }
 0x332   : > { %6222 = vmatpush.bf16.msra.mxu1 %v8608_v37  ;;  %v12645_v37 = vpop.f32.mrf.mxu0 }
 0x334   : > { %6209 = vmatpush.bf16.msra.mxu0 %v8392_v2  ;;  %6141 = vmatpush.bf16.msra.mxu3 %v8916_v41  ;;  %v8892_v2 = vor.u32 %v10324_v27, %v8889_v49  ;;  %v9753_v41 = vld [vmem:[%s11071_s28 + $0xbf0] sm:$0xf0]  ;;  %v8751_v27 = vld [vmem:[%s11071_s28 + $0x400] sm:$0xf]  ;;  %v10292_v49 = vld [vmem:[%s11071_s28 + $0x414] sm:$0xf0] }
 0x335   : > { %6185 = vmatpush.bf16.msrb.mxu2 %v9444_v26  ;;  %v9756_v13 = vor.u32 %v10540_v35, %v9753_v41  ;;  %v8752_v23 = vor.u32 %v10292_v49, %v8751_v27  ;;  %v9063_v35 = vld [vmem:[%s11071_s28 + $0x670] sm:$0xf]  ;;  %v10370_v41 = vld [vmem:[%s11071_s28 + $0x684] sm:$0xf0] }
 0x336   : > { %6223 = vmatpush.bf16.msra.mxu1 %v8584_v25  ;;  %v12656_v25 = vpop.f32.mrf.mxu1  ;;  %v9255_v49 = vld [vmem:[%s11071_s28 + $0x7f0] sm:$0xf] }
 0x337   : > { %v5784_v28 = vadd.f32 %v12656_v25, %v12645_v37  ;;  %v9705_v37 = vld [vmem:[%s11071_s28 + $0xb90] sm:$0xf0] }
 0x338   : > { %6210 = vmatpush.bf16.msra.mxu0 %v8368_v31  ;;  %v8439_v31 = vld [vmem:[%s11071_s28 + $0x190] sm:$0xf]  ;;  %6142 = vmatpush.bf16.msra.mxu3 %v8892_v2  ;;  %v9327_v2 = vld [vmem:[%s11071_s28 + $0x880] sm:$0xf] }
 0x339   : > { %6186 = vmatpush.bf16.msrb.mxu2 %v9420_v36  ;;  %v8440_v62 = vor.u32 %v10214_v11, %v8439_v31  ;;  %v9729_v36 = vld [vmem:[%s11071_s28 + $0xbc0] sm:$0xf0]  ;;  %v9328_v44 = vor.u32 %v10436_v12, %v9327_v2  ;;  %v9111_v31 = vld [vmem:[%s11071_s28 + $0x6d0] sm:$0xf] }
 0x33a   : > { %6224 = vmatpush.bf16.msra.mxu1 %v8560_v53  ;;  %v8799_v53 = vld [vmem:[%s11071_s28 + $0x460] sm:$0xf]  ;;  %v9732_v11 = vor.u32 %v10534_v8, %v9729_v36  ;;  %v10364_v8 = vld [vmem:[%s11071_s28 + $0x654] sm:$0xf0]  ;;  %v5855_v36 = vpop.f32.mrf.mxu2 }
 0x33b   : > { %v8800_v59 = vor.u32 %v10304_v57, %v8799_v53  ;;  %v9303_v53 = vld [vmem:[%s11071_s28 + $0x850] sm:$0xf]  ;;  %v10430_v57 = vld [vmem:[%s11071_s28 + $0x864] sm:$0xf0] }
 0x33c   : > { %6211 = vmatpush.bf16.msra.mxu0 %v8344_v7  ;;  %v10448_v7 = vld [vmem:[%s11071_s28 + $0x8f4] sm:$0xf0]  ;;  %6143 = vmatpush.bf16.msra.mxu3 %v8868_v46  ;;  %v5798_v46 = vadd.f32 %v12658_v24, %v5784_v28  ;;  %v9087_v24 = vld [vmem:[%s11071_s28 + $0x6a0] sm:$0xf]  ;;  %v10510_v28 = vld [vmem:[%s11071_s28 + $0xaec] sm:$0xf] }
 0x33d   : > { %v9376_v18 = vor.u32 %v10448_v7, %v9375_v16  ;;  %6187 = vmatpush.bf16.msrb.mxu2 %v9396_v61  ;;  %v10280_v16 = vld [vmem:[%s11071_s28 + $0x3b4] sm:$0xf0]  ;;  %v9304_v7 = vor.u32 %v10430_v57, %v9303_v53  ;;  %v8631_v53 = vld [vmem:[%s11071_s28 + $0x310] sm:$0xf]  ;;  %v10262_v57 = vld [vmem:[%s11071_s28 + $0x324] sm:$0xf0] }
 0x33e   : > { %6225 = vmatpush.bf16.msra.mxu1 %v8536_v63  ;;  %v12675_v63 = vpop.f32.mrf.mxu0  ;;  %v12687_v42 = vpop.f32.mrf.mxu1  ;;  %v5812_v1 = vadd.f32 %v5811_v56, %v5798_v46  ;;  %v8704_v5 = vor.u32 %v10280_v16, %v8703_v58  ;;  %v8655_v56 = vld [vmem:[%s11071_s28 + $0x340] sm:$0xf]  ;;  %v10406_v16 = vld [vmem:[%s11071_s28 + $0x7a4] sm:$0xf0] }
 0x340   : > { %6212 = vmatpush.bf16.msra.mxu0 %v8320_v17  ;;  %v10394_v17 = vld [vmem:[%s11071_s28 + $0x744] sm:$0xf0]  ;;  %6144 = vmatpush.bf16.msra.mxu3 %v8844_v60  ;;  %v10522_v60 = vld [vmem:[%s11071_s28 + $0xb4c] sm:$0xf] }
 0x341   : > { %6236 = vmatpush.bf16.msra.mxu2 %v8800_v59  ;;  %v9160_v26 = vor.u32 %v10394_v17, %v9159_v52  ;;  %v9708_v59 = vor.u32 %v10528_v50, %v9705_v37  ;;  %v8679_v17 = vld [vmem:[%s11071_s28 + $0x370] sm:$0xf]  ;;  %v10358_v37 = vld [vmem:[%s11071_s28 + $0x624] sm:$0xf0] }
 0x342   : > { %6226 = vmatpush.bf16.msra.mxu1 %v8512_v34  ;;  %v10442_v34 = vld [vmem:[%s11071_s28 + $0x8c4] sm:$0xf0]  ;;  %6188 = vmatmul.bf16.vlgmr.msrb.gmra.mxu2 %v12337_v9  ;;  %v9015_v50 = vld [vmem:[%s11071_s28 + $0x610] sm:$0xf] }
 0x343   : > { %v9352_v20 = vor.u32 %v10442_v34, %v9351_v3  ;;  %v5786_v3 = vadd.f32 %v12687_v42, %v12675_v63  ;;  %v9657_v63 = vld [vmem:[%s11071_s28 + $0xb30] sm:$0xf0]  ;;  %v9064_v42 = vor.u32 %v10370_v41, %v9063_v35  ;;  %v9543_v35 = vld [vmem:[%s11071_s28 + $0xa30] sm:$0xf]  ;;  %v10490_v41 = vld [vmem:[%s11071_s28 + $0xa44] sm:$0xf0] }
 0x344   : > { %6213 = vmatpush.bf16.msra.mxu0 %v8296_v54  ;;  %v8820_v54 = vor.u32 %v10306_v19, %v8817_v48  ;;  %v5813_v19 = vpop.f32.mrf.mxu3  ;;  %v10274_v48 = vld [vmem:[%s11071_s28 + $0x384] sm:$0xf0] }
 0x345   : > { %6237 = vmatpush.bf16.msra.mxu2 %v8776_v29 }
 0x346   : > { %6227 = vmatpush.bf16.msra.mxu1 %v8488_v30  ;;  %v10388_v30 = vld [vmem:[%s11071_s28 + $0x714] sm:$0xf0]  ;;  %v5825_v10 = vpop.f32.mrf.mxu0  ;;  %6145 = vmatpush.bf16.msra.mxu3 %v8820_v54  ;;  %v5839_v25 = vpop.f32.mrf.mxu1  ;;  %v10418_v54 = vld [vmem:[%s11071_s28 + $0x804] sm:$0xf0] }
 0x347   : > { %v9136_v38 = vor.u32 %v10388_v30, %v9135_v47  ;;  %v5826_v34 = vadd.f32 %v5825_v10, %v5812_v1  ;;  %v8680_v47 = vor.u32 %v10274_v48, %v8679_v17  ;;  %v10516_v30 = vld [vmem:[%s11071_s28 + $0xb1c] sm:$0xf]  ;;  %v9256_v12 = vor.u32 %v10418_v54, %v9255_v49  ;;  %v3436_v10 = vld [vmem:[#allocation2 + $0x30] sm:$0xff]  ;;  %v10498_v54 = vld [vmem:[%s11071_s28 + $0xa8c] sm:$0xf] }
 0x348   : > { %6214 = vmatpush.bf16.msra.mxu0 %v8272_v43  ;;  %v10286_v43 = vld [vmem:[%s11071_s28 + $0x3e4] sm:$0xf0]  ;;  %v8417_v1 = vld [vmem:[%s11071_s28 + $0x178] sm:$0xf0]  ;;  %v9016_v17 = vor.u32 %v10358_v37, %v9015_v50  ;;  %v8967_v50 = vld [vmem:[%s11071_s28 + $0x5b0] sm:$0xf] }
 0x349   : > { %6238 = vmatpush.bf16.msra.mxu2 %v8752_v23  ;;  %v8728_v40 = vor.u32 %v10286_v43, %v8727_v14  ;;  %6146 = vmatmul.bf16.vlgmr.msra.gmra.mxu3 %v12157_v39  ;;  %v5840_v2 = vadd.f32 %v5839_v25, %v5826_v34  ;;  %v9039_v23 = vld [vmem:[%s11071_s28 + $0x640] sm:$0xf]  ;;  %v10412_v43 = vld [vmem:[%s11071_s28 + $0x7d4] sm:$0xf0]  ;;  %v9207_v25 = vld [vmem:[%s11071_s28 + $0x790] sm:$0xf] }
 0x34a   : > { %6228 = vmatpush.bf16.msra.mxu1 %v8464_v6  ;;  %v10382_v6 = vld [vmem:[%s11071_s28 + $0x6e4] sm:$0xf0]  ;;  %6194 = vmatpush.bf16.msrb.mxu3 %v9756_v13  ;;  %v10268_v13 = vld [vmem:[%s11071_s28 + $0x354] sm:$0xf0]  ;;  %v9231_v14 = vld [vmem:[%s11071_s28 + $0x7c0] sm:$0xf]  ;;  %v9208_v34 = vor.u32 %v10406_v16, %v9207_v25 }
 0x34b   : > { %v9112_v61 = vor.u32 %v10382_v6, %v9111_v31  ;;  %v5854_v31 = vadd.f32 %v5853_v21, %v5840_v2  ;;  %v8656_v6 = vor.u32 %v10268_v13, %v8655_v56  ;;  %v9232_v58 = vor.u32 %v10412_v43, %v9231_v14  ;;  %v8585_v56 = vld [vmem:[%s11071_s28 + $0x2c8] sm:$0xf0]  ;;  %v5909_v13 = vpop.f32.mrf.mxu2  ;;  %v10484_v14 = vld [vmem:[%s11071_s28 + $0xa14] sm:$0xf0]  ;;  %v10346_v37 = vld [vmem:[%s11071_s28 + $0x5c4] sm:$0xf0] }
 0x34c   : > { %6215 = vmatpush.bf16.msra.mxu0 %v8248_v33  ;;  %v10376_v33 = vld [vmem:[%s11071_s28 + $0x6b4] sm:$0xf0]  ;;  %v5867_v46 = vpop.f32.mrf.mxu3  ;;  %v3442_v2 = vld [vmem:[#allocation2 + $0x8] sm:$0xff]  ;;  %v10187_v16 = vld [vmem:[%s11071_s28 + $0xd4] sm:$0xf] }
 0x34d   : > { %6239 = vmatpush.bf16.msra.mxu2 %v8728_v40  ;;  %v9088_v52 = vor.u32 %v10376_v33, %v9087_v24  ;;  %v9040_v40 = vor.u32 %v10364_v8, %v9039_v23  ;;  %v5868_v21 = vadd.f32 %v5867_v46, %v5854_v31  ;;  %v10496_v24 = vld [vmem:[%s11071_s28 + $0xa74] sm:$0xf0]  ;;  %v9544_v23 = vor.u32 %v10490_v41, %v9543_v35  ;;  %v8991_v8 = vld [vmem:[%s11071_s28 + $0x5e0] sm:$0xf]  ;;  %v8369_v31 = vld [vmem:[%s11071_s28 + $0x118] sm:$0xf0] }
 0x34e   : > { %6229 = vmatpush.bf16.msra.mxu1 %v8440_v62  ;;  %6195 = vmatpush.bf16.msrb.mxu3 %v9732_v11  ;;  %v9279_v62 = vld [vmem:[%s11071_s28 + $0x820] sm:$0xf]  ;;  %v9633_v11 = vld [vmem:[%s11071_s28 + $0xb00] sm:$0xf0]  ;;  %v8321_v35 = vld [vmem:[%s11071_s28 + $0xb8] sm:$0xf0] }
 0x34f   : > { %6216 = vmatmul.bf16.vlgmr.msra.gmra.mxu0 %v12141_v22 }
 0x350   : > { %6264 = vmatpush.bf16.msrb.mxu0 %v9184_v55  ;;  %v10424_v55 = vld [vmem:[%s11071_s28 + $0x834] sm:$0xf0] }
 0x351   : > { %6230 = vmatmul.bf16.vlgmr.msra.gmra.mxu1 %v12145_v15  ;;  %v9280_v29 = vor.u32 %v10424_v55, %v9279_v62  ;;  %6240 = vmatpush.bf16.msra.mxu2 %v8704_v5  ;;  %v10504_v62 = vld [vmem:[%s11071_s28 + $0xabc] sm:$0xf]  ;;  %v10205_v55 = vld [vmem:[%s11071_s28 + $0x164] sm:$0xf]  ;;  %v6432_v5 = vadd.f32 %v5868_v21, %v3436_v10  ;;  %v10478_v21 = vld [vmem:[%s11071_s28 + $0x9e4] sm:$0xf0] }
 0x352   : > { %6278 = vmatpush.bf16.msrb.mxu1 %v9376_v18  ;;  %v9681_v18 = vld [vmem:[%s11071_s28 + $0xb60] sm:$0xf0]  ;;  %6196 = vmatpush.bf16.msrb.mxu3 %v9708_v59  ;;  %v9636_v59 = vor.u32 %v10510_v28, %v9633_v11 }
 0x353   : > { %v9684_v27 = vor.u32 %v10522_v60, %v9681_v18  ;;  %v8632_v60 = vor.u32 %v10262_v57, %v8631_v53  ;;  %v9609_v18 = vld [vmem:[%s11071_s28 + $0xad0] sm:$0xf0]  ;;  %6444 = vst [vmem:[#allocation2 + $0x30] sm:$0xff] %v6432_v5  ;;  %v10241_v53 = vld [vmem:[%s11071_s28 + $0x284] sm:$0xf] }
 0x354   : > { %6265 = vmatpush.bf16.msrb.mxu0 %v9160_v26  ;;  %v5827_v26 = vpop.f32.mrf.mxu0  ;;  %v8561_v57 = vld [vmem:[%s11071_s28 + $0x298] sm:$0xf0] }
 0x355   : > { %6241 = vmatpush.bf16.msra.mxu2 %v8680_v47  ;;  %v8393_v47 = vld [vmem:[%s11071_s28 + $0x148] sm:$0xf0] }
 0x356   : > { %6279 = vmatpush.bf16.msrb.mxu1 %v9352_v20  ;;  %v5800_v20 = vadd.f32 %v12689_v45, %v5786_v3  ;;  %v5841_v45 = vpop.f32.mrf.mxu1  ;;  %6197 = vmatpush.bf16.msrb.mxu3 %v9684_v27  ;;  %v9612_v27 = vor.u32 %v10504_v62, %v9609_v18  ;;  %v10235_v62 = vld [vmem:[%s11071_s28 + $0x254] sm:$0xf]  ;;  %v8943_v18 = vld [vmem:[%s11071_s28 + $0x580] sm:$0xf] }
 0x358   : > { %6266 = vmatpush.bf16.msrb.mxu0 %v9136_v38  ;;  %v9660_v38 = vor.u32 %v10516_v30, %v9657_v63  ;;  %v9585_v63 = vld [vmem:[%s11071_s28 + $0xaa0] sm:$0xf0] }
 0x359   : > { %6242 = vmatpush.bf16.msra.mxu2 %v8656_v6  ;;  %v9588_v43 = vor.u32 %v10498_v54, %v9585_v63 }
 0x35a   : > { %6280 = vmatpush.bf16.msrb.mxu1 %v9328_v44  ;;  %v5814_v44 = vadd.f32 %v5813_v19, %v5800_v20  ;;  %6198 = vmatpush.bf16.msrb.mxu3 %v9660_v38  ;;  %v10253_v19 = vld [vmem:[%s11071_s28 + $0x2e4] sm:$0xf]  ;;  %v10199_v20 = vld [vmem:[%s11071_s28 + $0x134] sm:$0xf]  ;;  %v9519_v38 = vld [vmem:[%s11071_s28 + $0xa00] sm:$0xf] }
 0x35c   : > { %6267 = vmatpush.bf16.msrb.mxu0 %v9112_v61  ;;  %v5828_v61 = vadd.f32 %v5827_v26, %v5814_v44  ;;  %v12749_v33 = vpop.f32.mrf.mxu0  ;;  %v10193_v44 = vld [vmem:[%s11071_s28 + $0x104] sm:$0xf] }
 0x35d   : > { %6243 = vmatpush.bf16.msra.mxu2 %v8632_v60  ;;  %v8372_v25 = vor.u32 %v10193_v44, %v8369_v31  ;;  %v10328_v44 = vld [vmem:[%s11071_s28 + $0x534] sm:$0xf0] }
 0x35e   : > { %6281 = vmatpush.bf16.msrb.mxu1 %v9304_v7  ;;  %v9567_v7 = vld [vmem:[%s11071_s28 + $0xa60] sm:$0xf]  ;;  %v5842_v3 = vadd.f32 %v5841_v45, %v5828_v61  ;;  %v5895_v26 = vpop.f32.mrf.mxu1  ;;  %6199 = vmatpush.bf16.msrb.mxu3 %v9636_v59  ;;  %v10352_v45 = vld [vmem:[%s11071_s28 + $0x5f4] sm:$0xf0]  ;;  %v9495_v61 = vld [vmem:[%s11071_s28 + $0x9d0] sm:$0xf]  ;;  %v8968_v59 = vor.u32 %v10346_v37, %v8967_v50 }
 0x35f   : > { %v9568_v48 = vor.u32 %v10496_v24, %v9567_v7  ;;  %v8992_v11 = vor.u32 %v10352_v45, %v8991_v8  ;;  %v8345_v7 = vld [vmem:[%s11071_s28 + $0xe8] sm:$0xf0]  ;;  %v5896_v24 = vadd.f32 %v5895_v26, %v12749_v33  ;;  %v9496_v60 = vor.u32 %v10478_v21, %v9495_v61  ;;  %v10217_v61 = vld [vmem:[%s11071_s28 + $0x1c4] sm:$0xf]  ;;  %v8465_v21 = vld [vmem:[%s11071_s28 + $0x1d8] sm:$0xf0] }
 0x360   : > { %6268 = vmatpush.bf16.msrb.mxu0 %v9088_v52  ;;  %v8609_v52 = vld [vmem:[%s11071_s28 + $0x2f8] sm:$0xf0]  ;;  %v5856_v30 = vadd.f32 %v5855_v36, %v5842_v3  ;;  %v8396_v36 = vor.u32 %v10199_v20, %v8393_v47  ;;  %6244 = vmatmul.bf16.vlgmr.msra.gmra.mxu2 %v12150_v4  ;;  %v8348_v33 = vor.u32 %v10187_v16, %v8345_v7  ;;  %v5911_v3 = vpop.f32.mrf.mxu2  ;;  %v8919_v47 = vld [vmem:[%s11071_s28 + $0x550] sm:$0xf] }
 0x361   : > { %v8612_v49 = vor.u32 %v10253_v19, %v8609_v52  ;;  %6292 = vmatpush.bf16.msrb.mxu2 %v9568_v48  ;;  %v10340_v19 = vld [vmem:[%s11071_s28 + $0x594] sm:$0xf0]  ;;  %v5910_v52 = vadd.f32 %v5909_v13, %v5896_v24  ;;  %v10322_v24 = vld [vmem:[%s11071_s28 + $0x504] sm:$0xf0] }
 0x362   : > { %6282 = vmatpush.bf16.msrb.mxu1 %v9280_v29  ;;  %v8420_v29 = vor.u32 %v10205_v55, %v8417_v1  ;;  %6200 = vmatpush.bf16.msrb.mxu3 %v9612_v27  ;;  %v8537_v55 = vld [vmem:[%s11071_s28 + $0x268] sm:$0xf0]  ;;  %v10472_v48 = vld [vmem:[%s11071_s28 + $0x9b4] sm:$0xf0]  ;;  %v8944_v26 = vor.u32 %v10340_v19, %v8943_v18  ;;  %v10229_v27 = vld [vmem:[%s11071_s28 + $0x224] sm:$0xf] }
 0x363   : > { %v3437_v19 = vld [vmem:[#allocation2] sm:$0xff] }
 0x364   : > { %6269 = vmatpush.bf16.msrb.mxu0 %v9064_v42  ;;  %v10247_v42 = vld [vmem:[%s11071_s28 + $0x2b4] sm:$0xf]  ;;  %v5883_v46 = vpop.f32.mrf.mxu0 }
 0x365   : > { %v8588_v28 = vor.u32 %v10247_v42, %v8585_v56  ;;  %6293 = vmatpush.bf16.msrb.mxu2 %v9544_v23  ;;  %v9447_v42 = vld [vmem:[%s11071_s28 + $0x970] sm:$0xf]  ;;  %v10466_v56 = vld [vmem:[%s11071_s28 + $0x984] sm:$0xf0] }
 0x366   : > { %6283 = vmatpush.bf16.msrb.mxu1 %v9256_v12  ;;  %v5869_v12 = vpop.f32.mrf.mxu3  ;;  %6201 = vmatpush.bf16.msrb.mxu3 %v9588_v43  ;;  %v5897_v1 = vpop.f32.mrf.mxu1  ;;  %v9448_v43 = vor.u32 %v10466_v56, %v9447_v42 }
 0x367   : > { %v5870_v10 = vadd.f32 %v5869_v12, %v5856_v30  ;;  %v10334_v30 = vld [vmem:[%s11071_s28 + $0x564] sm:$0xf0]  ;;  %v8297_v12 = vld [vmem:[%s11071_s28 + $0x88] sm:$0xf0]  ;;  %v5898_v23 = vadd.f32 %v5897_v1, %v5883_v46  ;;  %v10169_v46 = vld [vmem:[%s11071_s28 + $0x44] sm:$0xf] }
 0x368   : > { %6270 = vmatpush.bf16.msrb.mxu0 %v9040_v40  ;;  %v9520_v40 = vor.u32 %v10484_v14, %v9519_v38  ;;  %v8920_v45 = vor.u32 %v10334_v30, %v8919_v47  ;;  %v5965_v16 = vpop.f32.mrf.mxu2  ;;  %v10163_v1 = vld [vmem:[%s11071_s28 + $0x14] sm:$0xf]  ;;  %v9377_v47 = vld [vmem:[%s11071_s28 + $0x8f8] sm:$0xf0] }
 0x369   : > { %v6438_v6 = vadd.f32 %v5870_v10, %v3442_v2  ;;  %6202 = vmatmul.bf16.vlgmr.msrb.gmra.mxu3 %v12413_v32  ;;  %v10175_v2 = vld [vmem:[%s11071_s28 + $0x74] sm:$0xf]  ;;  %v5912_v31 = vadd.f32 %v5911_v3, %v5898_v23  ;;  %v8777_v23 = vld [vmem:[%s11071_s28 + $0x448] sm:$0xf0] }
 0x36a   : > { %6284 = vmatpush.bf16.msrb.mxu1 %v9232_v58  ;;  %v8564_v58 = vor.u32 %v10241_v53, %v8561_v57  ;;  %6250 = vmatpush.bf16.msra.mxu3 %v8992_v11  ;;  %v10223_v10 = vld [vmem:[%s11071_s28 + $0x1f4] sm:$0xf]  ;;  %v9423_v11 = vld [vmem:[%s11071_s28 + $0x940] sm:$0xf]  ;;  %v10460_v53 = vld [vmem:[%s11071_s28 + $0x954] sm:$0xf0] }
 0x36b   : > { %6450 = vst [vmem:[#allocation2 + $0x8] sm:$0xff] %v6438_v6  ;;  %6294 = vmatpush.bf16.msrb.mxu2 %v9520_v40  ;;  %v8300_v6 = vor.u32 %v10175_v2, %v8297_v12  ;;  %v8273_v40 = vld [vmem:[%s11071_s28 + $0x58] sm:$0xf0]  ;;  %v9424_v7 = vor.u32 %v10460_v53, %v9423_v11  ;;  %v10295_v12 = vld [vmem:[%s11071_s28 + $0x434] sm:$0xf] }
 0x36c   : > { %6271 = vmatpush.bf16.msrb.mxu0 %v9016_v17  ;;  %v9471_v17 = vld [vmem:[%s11071_s28 + $0x9a0] sm:$0xf]  ;;  %v5937_v54 = vpop.f32.mrf.mxu0  ;;  %v10544_v53 = vld [vmem:[%s11071_s28 + $0xbf4] sm:$0xf0] }
 0x36d   : > { %v9472_v20 = vor.u32 %v10472_v48, %v9471_v17  ;;  %v10301_v17 = vld [vmem:[%s11071_s28 + $0x464] sm:$0xf]  ;;  %v8801_v48 = vld [vmem:[%s11071_s28 + $0x478] sm:$0xf0]  ;;  %v9759_v11 = vld [vmem:[%s11071_s28 + $0xbe0] sm:$0xf] }
 0x36e   : > { %6285 = vmatpush.bf16.msrb.mxu1 %v9208_v34  ;;  %v5923_v5 = vpop.f32.mrf.mxu3  ;;  %v8540_v34 = vor.u32 %v10235_v62, %v8537_v55  ;;  %6251 = vmatpush.bf16.msra.mxu3 %v8968_v59  ;;  %v5951_v38 = vpop.f32.mrf.mxu1  ;;  %v9399_v59 = vld [vmem:[%s11071_s28 + $0x910] sm:$0xf]  ;;  %v10454_v62 = vld [vmem:[%s11071_s28 + $0x924] sm:$0xf0]  ;;  %v8276_v55 = vor.u32 %v10169_v46, %v8273_v40  ;;  %v8804_v42 = vor.u32 %v10301_v17, %v8801_v48  ;;  %v10289_v40 = vld [vmem:[%s11071_s28 + $0x404] sm:$0xf] }
 0x36f   : > { %6272 = vmatmul.bf16.vlgmr.msrb.gmra.mxu0 %v12221_v0  ;;  %v5924_v41 = vadd.f32 %v5923_v5, %v5910_v52  ;;  %6295 = vmatpush.bf16.msrb.mxu2 %v9496_v60  ;;  %v8249_v5 = vld [vmem:[%s11071_s28 + $0x28] sm:$0xf0]  ;;  %v10211_v60 = vld [vmem:[%s11071_s28 + $0x194] sm:$0xf]  ;;  %v8468_v52 = vor.u32 %v10217_v61, %v8465_v21  ;;  %v10385_v21 = vld [vmem:[%s11071_s28 + $0x704] sm:$0xf] }
 0x370   : > { %6320 = vmatpush.bf16.msra.mxu0 %v8420_v29  ;;  %v10181_v29 = vld [vmem:[%s11071_s28 + $0xa4] sm:$0xf]  ;;  %v10379_v17 = vld [vmem:[%s11071_s28 + $0x6d4] sm:$0xf] }
 0x371   : > { %6286 = vmatmul.bf16.vlgmr.msrb.gmra.mxu1 %v12223_v51  ;;  %v8324_v63 = vor.u32 %v10181_v29, %v8321_v35  ;;  %v5938_v8 = vadd.f32 %v5937_v54, %v5924_v41  ;;  %v8847_v35 = vld [vmem:[%s11071_s28 + $0x4c0] sm:$0xf]  ;;  %v10397_v41 = vld [vmem:[%s11071_s28 + $0x764] sm:$0xf]  ;;  %v10316_v54 = vld [vmem:[%s11071_s28 + $0x4d4] sm:$0xf0] }
 0x372   : > { %6334 = vmatpush.bf16.msra.mxu1 %v8612_v49  ;;  %v8513_v49 = vld [vmem:[%s11071_s28 + $0x238] sm:$0xf0]  ;;  %6252 = vmatpush.bf16.msra.mxu3 %v8944_v26 }
 0x373   : > { %v8516_v13 = vor.u32 %v10229_v27, %v8513_v49  ;;  %6296 = vmatpush.bf16.msrb.mxu2 %v9472_v20  ;;  %v9185_v26 = vld [vmem:[%s11071_s28 + $0x778] sm:$0xf0]  ;;  %v9400_v49 = vor.u32 %v10454_v62, %v9399_v59  ;;  %v10445_v20 = vld [vmem:[%s11071_s28 + $0x8e4] sm:$0xf] }
 0x374   : > { %6321 = vmatpush.bf16.msra.mxu0 %v8396_v36  ;;  %v8489_v36 = vld [vmem:[%s11071_s28 + $0x208] sm:$0xf0]  ;;  %v5939_v18 = vpop.f32.mrf.mxu0  ;;  %v9188_v2 = vor.u32 %v10397_v41, %v9185_v26  ;;  %v10433_v59 = vld [vmem:[%s11071_s28 + $0x884] sm:$0xf]  ;;  %v9329_v62 = vld [vmem:[%s11071_s28 + $0x898] sm:$0xf0] }
 0x375   : > { %v8492_v57 = vor.u32 %v10223_v10, %v8489_v36  ;;  %v9380_v10 = vor.u32 %v10445_v20, %v9377_v47  ;;  %v10532_v41 = vld [vmem:[%s11071_s28 + $0xb94] sm:$0xf0]  ;;  %v10373_v20 = vld [vmem:[%s11071_s28 + $0x6a4] sm:$0xf]  ;;  %v9089_v47 = vld [vmem:[%s11071_s28 + $0x6b8] sm:$0xf0] }
 0x376   : > { %6335 = vmatpush.bf16.msra.mxu1 %v8588_v28  ;;  %v5925_v14 = vpop.f32.mrf.mxu3  ;;  %v8895_v28 = vld [vmem:[%s11071_s28 + $0x520] sm:$0xf]  ;;  %6253 = vmatpush.bf16.msra.mxu3 %v8920_v45  ;;  %v5953_v56 = vpop.f32.mrf.mxu1  ;;  %v8848_v45 = vor.u32 %v10316_v54, %v8847_v35 }
 0x377   : > { %v5926_v50 = vadd.f32 %v5925_v14, %v5912_v31  ;;  %v8896_v37 = vor.u32 %v10328_v44, %v8895_v28  ;;  %6297 = vmatpush.bf16.msrb.mxu2 %v9448_v43  ;;  %v10391_v14 = vld [vmem:[%s11071_s28 + $0x734] sm:$0xf]  ;;  %v9161_v43 = vld [vmem:[%s11071_s28 + $0x748] sm:$0xf0]  ;;  %v10310_v28 = vld [vmem:[%s11071_s28 + $0x4a4] sm:$0xf0] }
 0x378   : > { %6322 = vmatpush.bf16.msra.mxu0 %v8372_v25  ;;  %v5952_v25 = vadd.f32 %v5951_v38, %v5938_v8  ;;  %v8823_v38 = vld [vmem:[%s11071_s28 + $0x490] sm:$0xf]  ;;  %v10439_v44 = vld [vmem:[%s11071_s28 + $0x8b4] sm:$0xf]  ;;  %v9353_v31 = vld [vmem:[%s11071_s28 + $0x8c8] sm:$0xf0]  ;;  %v9164_v46 = vor.u32 %v10391_v14, %v9161_v43 }
 0x379   : > { %v5940_v3 = vadd.f32 %v5939_v18, %v5926_v50  ;;  %v8753_v50 = vld [vmem:[%s11071_s28 + $0x418] sm:$0xf0]  ;;  %v9356_v61 = vor.u32 %v10439_v44, %v9353_v31  ;;  %v9711_v35 = vld [vmem:[%s11071_s28 + $0xb80] sm:$0xf]  ;;  %v10415_v14 = vld [vmem:[%s11071_s28 + $0x7f4] sm:$0xf] }
 0x37a   : > { %6336 = vmatpush.bf16.msra.mxu1 %v8564_v58  ;;  %v8871_v58 = vld [vmem:[%s11071_s28 + $0x4f0] sm:$0xf]  ;;  %6254 = vmatpush.bf16.msra.mxu3 %v8896_v37  ;;  %v9257_v43 = vld [vmem:[%s11071_s28 + $0x808] sm:$0xf0]  ;;  %v9663_v44 = vld [vmem:[%s11071_s28 + $0xb20] sm:$0xf] }
 0x37b   : > { %v8872_v29 = vor.u32 %v10322_v24, %v8871_v58  ;;  %6298 = vmatpush.bf16.msrb.mxu2 %v9424_v7  ;;  %v5954_v36 = vadd.f32 %v5953_v56, %v5940_v3  ;;  %v9137_v58 = vld [vmem:[%s11071_s28 + $0x718] sm:$0xf0]  ;;  %v9760_v24 = vor.u32 %v10544_v53, %v9759_v11  ;;  %v10427_v3 = vld [vmem:[%s11071_s28 + $0x854] sm:$0xf]  ;;  %v10520_v31 = vld [vmem:[%s11071_s28 + $0xb34] sm:$0xf0] }
 0x37c   : > { %6323 = vmatpush.bf16.msra.mxu0 %v8348_v33  ;;  %v8441_v33 = vld [vmem:[%s11071_s28 + $0x1a8] sm:$0xf0]  ;;  %v9140_v18 = vor.u32 %v10385_v21, %v9137_v58  ;;  %v10265_v11 = vld [vmem:[%s11071_s28 + $0x344] sm:$0xf]  ;;  %v8657_v53 = vld [vmem:[%s11071_s28 + $0x358] sm:$0xf0] }
 0x37d   : > { %v9639_v21 = vld [vmem:[%s11071_s28 + $0xaf0] sm:$0xf]  ;;  %v10514_v58 = vld [vmem:[%s11071_s28 + $0xb04] sm:$0xf0] }
 0x37e   : > { %6337 = vmatpush.bf16.msra.mxu1 %v8540_v34  ;;  %v5966_v34 = vadd.f32 %v5965_v16, %v5952_v25  ;;  %v5979_v27 = vpop.f32.mrf.mxu3  ;;  %6255 = vmatpush.bf16.msra.mxu3 %v8872_v29  ;;  %v8824_v25 = vor.u32 %v10310_v28, %v8823_v38  ;;  %v3443_v16 = vld [vmem:[#allocation2 + $0x38] sm:$0xff] }
 0x37f   : > { %6299 = vmatpush.bf16.msrb.mxu2 %v9400_v49  ;;  %v8705_v49 = vld [vmem:[%s11071_s28 + $0x3b8] sm:$0xf0] }
 0x380   : > { %6324 = vmatpush.bf16.msra.mxu0 %v8324_v63  ;;  %v5980_v30 = vadd.f32 %v5979_v27, %v5966_v34  ;;  %v8252_v63 = vor.u32 %v10163_v1, %v8249_v5  ;;  %v8756_v1 = vor.u32 %v10289_v40, %v8753_v50  ;;  %v9735_v5 = vld [vmem:[%s11071_s28 + $0xbb0] sm:$0xf]  ;;  %v9305_v34 = vld [vmem:[%s11071_s28 + $0x868] sm:$0xf0]  ;;  %v10277_v27 = vld [vmem:[%s11071_s28 + $0x3a4] sm:$0xf]  ;;  %v9664_v50 = vor.u32 %v10520_v31, %v9663_v44 }
 0x381   : > { %v9308_v54 = vor.u32 %v10427_v3, %v9305_v34  ;;  %v8708_v56 = vor.u32 %v10277_v27, %v8705_v49  ;;  %v9041_v40 = vld [vmem:[%s11071_s28 + $0x658] sm:$0xf0]  ;;  %v10487_v34 = vld [vmem:[%s11071_s28 + $0xa34] sm:$0xf]  ;;  %v10502_v27 = vld [vmem:[%s11071_s28 + $0xaa4] sm:$0xf0] }
 0x382   : > { %6338 = vmatpush.bf16.msra.mxu1 %v8516_v13  ;;  %v8444_v13 = vor.u32 %v10211_v60, %v8441_v33  ;;  %v6433_v8 = vadd.f32 %v5980_v30, %v3437_v19  ;;  %6256 = vmatpush.bf16.msra.mxu3 %v8848_v45  ;;  %v10538_v60 = vld [vmem:[%s11071_s28 + $0xbc4] sm:$0xf0]  ;;  %v10283_v19 = vld [vmem:[%s11071_s28 + $0x3d4] sm:$0xf]  ;;  %v9332_v33 = vor.u32 %v10433_v59, %v9329_v62  ;;  %v9473_v44 = vld [vmem:[%s11071_s28 + $0x9b8] sm:$0xf0] }
 0x383   : > { %6348 = vmatpush.bf16.msra.mxu2 %v8804_v42  ;;  %v9736_v48 = vor.u32 %v10538_v60, %v9735_v5  ;;  %v9712_v30 = vor.u32 %v10532_v41, %v9711_v35  ;;  %v9281_v42 = vld [vmem:[%s11071_s28 + $0x838] sm:$0xf0]  ;;  %v10355_v59 = vld [vmem:[%s11071_s28 + $0x614] sm:$0xf]  ;;  %v5993_v60 = vpop.f32.mrf.mxu0  ;;  %v6007_v35 = vpop.f32.mrf.mxu1 }
 0x384   : > { %6325 = vmatpush.bf16.msra.mxu0 %v8300_v6  ;;  %6445 = vst [vmem:[#allocation2] sm:$0xff] %v6433_v8  ;;  %v8780_v6 = vor.u32 %v10295_v12, %v8777_v23  ;;  %6300 = vmatmul.bf16.vlgmr.msrb.gmra.mxu2 %v12337_v9  ;;  %v9092_v12 = vor.u32 %v10373_v20, %v9089_v47  ;;  %v10271_v23 = vld [vmem:[%s11071_s28 + $0x374] sm:$0xf]  ;;  %v8681_v8 = vld [vmem:[%s11071_s28 + $0x388] sm:$0xf0] }
 0x385   : > { %v8684_v28 = vor.u32 %v10271_v23, %v8681_v8  ;;  %v9569_v5 = vld [vmem:[%s11071_s28 + $0xa78] sm:$0xf0]  ;;  %v10481_v47 = vld [vmem:[%s11071_s28 + $0xa04] sm:$0xf]  ;;  %v8969_v23 = vld [vmem:[%s11071_s28 + $0x5c8] sm:$0xf0] }
 0x386   : > { %6339 = vmatpush.bf16.msra.mxu1 %v8492_v57  ;;  %v5967_v57 = vpop.f32.mrf.mxu2  ;;  %v5981_v7 = vpop.f32.mrf.mxu3  ;;  %6257 = vmatpush.bf16.msra.mxu3 %v8824_v25  ;;  %v9233_v25 = vld [vmem:[%s11071_s28 + $0x7d8] sm:$0xf0]  ;;  %v10475_v8 = vld [vmem:[%s11071_s28 + $0x9d4] sm:$0xf] }
 0x387   : > { %v5968_v37 = vadd.f32 %v5967_v57, %v5954_v36  ;;  %6349 = vmatpush.bf16.msra.mxu2 %v8780_v6  ;;  %v9065_v36 = vld [vmem:[%s11071_s28 + $0x688] sm:$0xf0]  ;;  %v9260_v57 = vor.u32 %v10415_v14, %v9257_v43  ;;  %v8993_v20 = vld [vmem:[%s11071_s28 + $0x5f8] sm:$0xf0] }
 0x388   : > { %6326 = vmatpush.bf16.msra.mxu0 %v8276_v55  ;;  %v8945_v14 = vld [vmem:[%s11071_s28 + $0x598] sm:$0xf0] }
 0x389   : > { %v5982_v55 = vadd.f32 %v5981_v7, %v5968_v37  ;;  %6258 = vmatmul.bf16.vlgmr.msra.gmra.mxu3 %v12157_v39  ;;  %v10409_v37 = vld [vmem:[%s11071_s28 + $0x7c4] sm:$0xf]  ;;  %v10259_v7 = vld [vmem:[%s11071_s28 + $0x314] sm:$0xf] }
 0x38a   : > { %6340 = vmatpush.bf16.msra.mxu1 %v8468_v52  ;;  %6306 = vmatpush.bf16.msrb.mxu3 %v9760_v24  ;;  %v8633_v24 = vld [vmem:[%s11071_s28 + $0x328] sm:$0xf0]  ;;  %v9236_v62 = vor.u32 %v10409_v37, %v9233_v25 }
 0x38b   : > { %v6439_v52 = vadd.f32 %v5982_v55, %v3443_v16  ;;  %6350 = vmatpush.bf16.msra.mxu2 %v8756_v1  ;;  %v9017_v55 = vld [vmem:[%s11071_s28 + $0x628] sm:$0xf0]  ;;  %v10493_v1 = vld [vmem:[%s11071_s28 + $0xa64] sm:$0xf] }
 0x38c   : > { %6327 = vmatpush.bf16.msra.mxu0 %v8252_v63  ;;  %v10421_v63 = vld [vmem:[%s11071_s28 + $0x824] sm:$0xf]  ;;  %v9449_v37 = vld [vmem:[%s11071_s28 + $0x988] sm:$0xf0] }
 0x38d   : > { %6451 = vst [vmem:[#allocation2 + $0x38] sm:$0xff] %v6439_v52  ;;  %v9284_v45 = vor.u32 %v10421_v63, %v9281_v42  ;;  %v8636_v52 = vor.u32 %v10259_v7, %v8633_v24  ;;  %v10325_v24 = vld [vmem:[%s11071_s28 + $0x524] sm:$0xf] }
 0x38e   : > { %6341 = vmatpush.bf16.msra.mxu1 %v8444_v13  ;;  %6307 = vmatpush.bf16.msrb.mxu3 %v9736_v48  ;;  %v9687_v13 = vld [vmem:[%s11071_s28 + $0xb50] sm:$0xf]  ;;  %v9572_v48 = vor.u32 %v10493_v1, %v9569_v5  ;;  %v6021_v63 = vpop.f32.mrf.mxu2  ;;  %v9425_v1 = vld [vmem:[%s11071_s28 + $0x958] sm:$0xf0] }
 0x38f   : > { %6328 = vmatmul.bf16.vlgmr.msra.gmra.mxu0 %v12141_v22  ;;  %v8729_v22 = vld [vmem:[%s11071_s28 + $0x3e8] sm:$0xf0] }
 0x390   : > { %6376 = vmatpush.bf16.msrb.mxu0 %v9188_v2  ;;  %v8732_v29 = vor.u32 %v10283_v19, %v8729_v22  ;;  %v10526_v2 = vld [vmem:[%s11071_s28 + $0xb64] sm:$0xf0]  ;;  %v10403_v19 = vld [vmem:[%s11071_s28 + $0x794] sm:$0xf]  ;;  %v9209_v22 = vld [vmem:[%s11071_s28 + $0x7a8] sm:$0xf0] }
 0x391   : > { %6342 = vmatmul.bf16.vlgmr.msra.gmra.mxu1 %v12145_v15  ;;  %v9113_v15 = vld [vmem:[%s11071_s28 + $0x6e8] sm:$0xf0]  ;;  %v9688_v38 = vor.u32 %v10526_v2, %v9687_v13  ;;  %v9212_v3 = vor.u32 %v10403_v19, %v9209_v22  ;;  %v5995_v13 = vpop.f32.mrf.mxu0 }
 0x392   : > { %6390 = vmatpush.bf16.msrb.mxu1 %v9380_v10  ;;  %v9116_v26 = vor.u32 %v10379_v17, %v9113_v15  ;;  %6351 = vmatpush.bf16.msra.mxu2 %v8732_v29  ;;  %v10367_v10 = vld [vmem:[%s11071_s28 + $0x674] sm:$0xf]  ;;  %v10508_v17 = vld [vmem:[%s11071_s28 + $0xad4] sm:$0xf0]  ;;  %v9020_v15 = vor.u32 %v10355_v59, %v9017_v55  ;;  %v9545_v29 = vld [vmem:[%s11071_s28 + $0xa48] sm:$0xf0] }
 0x393   : > { %6308 = vmatpush.bf16.msrb.mxu3 %v9712_v30  ;;  %v9068_v6 = vor.u32 %v10367_v10, %v9065_v36  ;;  %v9548_v49 = vor.u32 %v10487_v34, %v9545_v29  ;;  %v9521_v30 = vld [vmem:[%s11071_s28 + $0xa18] sm:$0xf0]  ;;  %v6035_v10 = vpop.f32.mrf.mxu3  ;;  %v10457_v55 = vld [vmem:[%s11071_s28 + $0x944] sm:$0xf] }
 0x394   : > { %6377 = vmatpush.bf16.msrb.mxu0 %v9164_v46  ;;  %v10361_v46 = vld [vmem:[%s11071_s28 + $0x644] sm:$0xf]  ;;  %v9524_v2 = vor.u32 %v10481_v47, %v9521_v30  ;;  %v8897_v59 = vld [vmem:[%s11071_s28 + $0x538] sm:$0xf0]  ;;  %v9428_v22 = vor.u32 %v10457_v55, %v9425_v1 }
 0x395   : > { %v9044_v16 = vor.u32 %v10361_v46, %v9041_v40  ;;  %v10331_v46 = vld [vmem:[%s11071_s28 + $0x554] sm:$0xf]  ;;  %v8921_v40 = vld [vmem:[%s11071_s28 + $0x568] sm:$0xf0] }
 0x396   : > { %6391 = vmatpush.bf16.msrb.mxu1 %v9356_v61  ;;  %6352 = vmatpush.bf16.msra.mxu2 %v8708_v56  ;;  %v8660_v61 = vor.u32 %v10265_v11, %v8657_v53  ;;  %v6023_v53 = vpop.f32.mrf.mxu2 }
 0x397   : > { %6309 = vmatpush.bf16.msrb.mxu3 %v9688_v38 }
 0x398   : > { %6378 = vmatpush.bf16.msrb.mxu0 %v9140_v18  ;;  %v9640_v18 = vor.u32 %v10514_v58, %v9639_v21  ;;  %v8924_v21 = vor.u32 %v10331_v46, %v8921_v40  ;;  %v10511_v46 = vld [vmem:[%s11071_s28 + $0xaf4] sm:$0xf]  ;;  %v9641_v40 = vld [vmem:[%s11071_s28 + $0xb08] sm:$0xf0] }
 0x399   : > { %v6049_v11 = vpop.f32.mrf.mxu0 }
 0x39a   : > { %6392 = vmatpush.bf16.msrb.mxu1 %v9332_v33  ;;  %6353 = vmatpush.bf16.msra.mxu2 %v8684_v28  ;;  %v9615_v33 = vld [vmem:[%s11071_s28 + $0xac0] sm:$0xf]  ;;  %v10469_v28 = vld [vmem:[%s11071_s28 + $0x9a4] sm:$0xf] }
 0x39b   : > { %6310 = vmatpush.bf16.msrb.mxu3 %v9664_v50  ;;  %v9616_v41 = vor.u32 %v10508_v17, %v9615_v33  ;;  %v10463_v50 = vld [vmem:[%s11071_s28 + $0x974] sm:$0xf]  ;;  %v8873_v33 = vld [vmem:[%s11071_s28 + $0x508] sm:$0xf0] }
 0x39c   : > { %6379 = vmatpush.bf16.msrb.mxu0 %v9116_v26  ;;  %v9591_v26 = vld [vmem:[%s11071_s28 + $0xa90] sm:$0xf]  ;;  %v9452_v7 = vor.u32 %v10463_v50, %v9449_v37  ;;  %v10451_v17 = vld [vmem:[%s11071_s28 + $0x914] sm:$0xf]  ;;  %v9644_v37 = vor.u32 %v10511_v46, %v9641_v40 }
 0x39d   : > { %v9592_v42 = vor.u32 %v10502_v27, %v9591_v26  ;;  %v10313_v27 = vld [vmem:[%s11071_s28 + $0x4c4] sm:$0xf]  ;;  %v3440_v40 = vld [vmem:[#allocation2 + $0x50] sm:$0xff] }
 0x39e   : > { %6393 = vmatpush.bf16.msrb.mxu1 %v9308_v54  ;;  %6354 = vmatpush.bf16.msra.mxu2 %v8660_v61  ;;  %v10349_v54 = vld [vmem:[%s11071_s28 + $0x5e4] sm:$0xf]  ;;  %v6077_v19 = vpop.f32.mrf.mxu2 }
 0x39f   : > { %6311 = vmatpush.bf16.msrb.mxu3 %v9640_v18  ;;  %v8996_v56 = vor.u32 %v10349_v54, %v8993_v20 }
 0x3a0   : > { %6380 = vmatpush.bf16.msrb.mxu0 %v9092_v12  ;;  %v10343_v12 = vld [vmem:[%s11071_s28 + $0x5b4] sm:$0xf] }
 0x3a1   : > { %v8972_v36 = vor.u32 %v10343_v12, %v8969_v23 }
 0x3a2   : > { %6394 = vmatpush.bf16.msrb.mxu1 %v9284_v45  ;;  %6355 = vmatpush.bf16.msra.mxu2 %v8636_v52  ;;  %v9497_v45 = vld [vmem:[%s11071_s28 + $0x9e8] sm:$0xf0]  ;;  %v10319_v52 = vld [vmem:[%s11071_s28 + $0x4f4] sm:$0xf] }
 0x3a3   : > { %6312 = vmatpush.bf16.msrb.mxu3 %v9616_v41  ;;  %v9500_v38 = vor.u32 %v10475_v8, %v9497_v45  ;;  %v8876_v29 = vor.u32 %v10319_v52, %v8873_v33  ;;  %v3444_v45 = vld [vmem:[#allocation2 + $0x28] sm:$0xff] }
 0x3a4   : > { %6381 = vmatpush.bf16.msrb.mxu0 %v9068_v6 }
 0x3a5   : > { %6356 = vmatmul.bf16.vlgmr.msra.gmra.mxu2 %v12150_v4  ;;  %v6008_v4 = vadd.f32 %v6007_v35, %v5993_v60  ;;  %v8900_v60 = vor.u32 %v10325_v24, %v8897_v59  ;;  %v3438_v35 = vld [vmem:[#allocation2 + $0x58] sm:$0xff] }
 0x3a6   : > { %6395 = vmatpush.bf16.msrb.mxu1 %v9260_v57  ;;  %6404 = vmatpush.bf16.msrb.mxu2 %v9572_v48  ;;  %v9476_v57 = vor.u32 %v10469_v28, %v9473_v44  ;;  %v6051_v48 = vpop.f32.mrf.mxu0  ;;  %v6079_v12 = vpop.f32.mrf.mxu2  ;;  %v10523_v44 = vld [vmem:[%s11071_s28 + $0xb54] sm:$0xf] }
 0x3a7   : > { %6313 = vmatpush.bf16.msrb.mxu3 %v9592_v42  ;;  %v6022_v43 = vadd.f32 %v6021_v63, %v6008_v4  ;;  %v10307_v42 = vld [vmem:[%s11071_s28 + $0x494] sm:$0xf] }
 0x3a8   : > { %6382 = vmatpush.bf16.msrb.mxu0 %v9044_v16  ;;  %v6037_v16 = vpop.f32.mrf.mxu3 }
 0x3a9   : > { %v6036_v31 = vadd.f32 %v6035_v10, %v6022_v43  ;;  %v10529_v43 = vld [vmem:[%s11071_s28 + $0xb84] sm:$0xf] }
 0x3aa   : > { %6396 = vmatpush.bf16.msrb.mxu1 %v9236_v62  ;;  %6405 = vmatpush.bf16.msrb.mxu2 %v9548_v49  ;;  %v8849_v49 = vld [vmem:[%s11071_s28 + $0x4d8] sm:$0xf0] }
 0x3ab   : > { %6362 = vmatpush.bf16.msra.mxu3 %v8996_v56  ;;  %v6050_v61 = vadd.f32 %v6049_v11, %v6036_v31  ;;  %v8852_v30 = vor.u32 %v10313_v27, %v8849_v49  ;;  %v8825_v56 = vld [vmem:[%s11071_s28 + $0x4a8] sm:$0xf0]  ;;  %v10517_v11 = vld [vmem:[%s11071_s28 + $0xb24] sm:$0xf] }
 0x3ac   : > { %6383 = vmatpush.bf16.msrb.mxu0 %v9020_v15  ;;  %6314 = vmatmul.bf16.vlgmr.msrb.gmra.mxu3 %v12413_v32  ;;  %v9401_v15 = vld [vmem:[%s11071_s28 + $0x928] sm:$0xf0]  ;;  %v8828_v8 = vor.u32 %v10307_v42, %v8825_v56 }
 0x3ad   : > { %v9404_v26 = vor.u32 %v10451_v17, %v9401_v15  ;;  %v9689_v31 = vld [vmem:[%s11071_s28 + $0xb68] sm:$0xf0] }
 0x3ae   : > { %6397 = vmatpush.bf16.msrb.mxu1 %v9212_v3  ;;  %6406 = vmatpush.bf16.msrb.mxu2 %v9524_v2  ;;  %v9761_v2 = vld [vmem:[%s11071_s28 + $0xbf8] sm:$0xf0]  ;;  %v6105_v50 = vpop.f32.mrf.mxu0 }
 0x3af   : > { %6384 = vmatmul.bf16.vlgmr.msrb.gmra.mxu0 %v12221_v0  ;;  %v6009_v0 = vpop.f32.mrf.mxu1  ;;  %6363 = vmatpush.bf16.msra.mxu3 %v8972_v36 }
 0x3b0   : > { %v6010_v25 = vadd.f32 %v6009_v0, %v5995_v13  ;;  %v6091_v41 = vpop.f32.mrf.mxu3  ;;  %v10541_v13 = vld [vmem:[%s11071_s28 + $0xbe4] sm:$0xf]  ;;  %v10535_v0 = vld [vmem:[%s11071_s28 + $0xbb4] sm:$0xf] }
 0x3b1   : > { %6398 = vmatmul.bf16.vlgmr.msrb.gmra.mxu1 %v12223_v51  ;;  %v10337_v51 = vld [vmem:[%s11071_s28 + $0x584] sm:$0xf]  ;;  %v9764_v4 = vor.u32 %v10541_v13, %v9761_v2 }
 0x3b2   : > { %v8948_v6 = vor.u32 %v10337_v51, %v8945_v14  ;;  %6407 = vmatpush.bf16.msrb.mxu2 %v9500_v38  ;;  %v6024_v62 = vadd.f32 %v6023_v53, %v6010_v25  ;;  %v9737_v38 = vld [vmem:[%s11071_s28 + $0xbc8] sm:$0xf0]  ;;  %v9665_v53 = vld [vmem:[%s11071_s28 + $0xb38] sm:$0xf0] }
 0x3b3   : > { %v9740_v14 = vor.u32 %v10535_v0, %v9737_v38  ;;  %v9617_v25 = vld [vmem:[%s11071_s28 + $0xad8] sm:$0xf0] }
 0x3b4   : > { %6364 = vmatpush.bf16.msra.mxu3 %v8948_v6  ;;  %v6038_v5 = vadd.f32 %v6037_v16, %v6024_v62  ;;  %v9692_v6 = vor.u32 %v10523_v44, %v9689_v31  ;;  %v9593_v16 = vld [vmem:[%s11071_s28 + $0xaa8] sm:$0xf0] }
 0x3b6   : > { %6408 = vmatpush.bf16.msrb.mxu2 %v9476_v57  ;;  %v6052_v3 = vadd.f32 %v6051_v48, %v6038_v5  ;;  %v9668_v57 = vor.u32 %v10517_v11, %v9665_v53  ;;  %v6107_v59 = vpop.f32.mrf.mxu0 }
 0x3b7   : > { %v6063_v58 = vpop.f32.mrf.mxu1 }
 0x3b8   : > { %6365 = vmatpush.bf16.msra.mxu3 %v8924_v21  ;;  %v6064_v18 = vadd.f32 %v6063_v58, %v6050_v61  ;;  %v6093_v10 = vpop.f32.mrf.mxu3  ;;  %v10499_v58 = vld [vmem:[%s11071_s28 + $0xa94] sm:$0xf] }
 0x3b9   : > { %v9596_v24 = vor.u32 %v10499_v58, %v9593_v16  ;;  %v3446_v16 = vld [vmem:[#allocation2 + $0x10] sm:$0xff] }
 0x3ba   : > { %6409 = vmatpush.bf16.msrb.mxu2 %v9452_v7  ;;  %v6078_v34 = vadd.f32 %v6077_v19, %v6064_v18  ;;  %v6133_v7 = vpop.f32.mrf.mxu2 }
 0x3bc   : > { %6366 = vmatpush.bf16.msra.mxu3 %v8900_v60  ;;  %v6092_v54 = vadd.f32 %v6091_v41, %v6078_v34 }
 0x3be   : > { %6410 = vmatpush.bf16.msrb.mxu2 %v9428_v22  ;;  %v6434_v47 = vadd.f32 %v6092_v54, %v3438_v35  ;;  %v6161_v18 = vpop.f32.mrf.mxu0 }
 0x3bf   : > { %v6065_v20 = vpop.f32.mrf.mxu1 }
 0x3c0   : > { %6367 = vmatpush.bf16.msra.mxu3 %v8876_v29  ;;  %v6066_v63 = vadd.f32 %v6065_v20, %v6052_v3  ;;  %6446 = vst [vmem:[#allocation2 + $0x58] sm:$0xff] %v6434_v47 }
 0x3c2   : > { %6411 = vmatpush.bf16.msrb.mxu2 %v9404_v26  ;;  %v6080_v23 = vadd.f32 %v6079_v12, %v6066_v63  ;;  %v6135_v19 = vpop.f32.mrf.mxu2  ;;  %v3439_v26 = vld [vmem:[#allocation2 + $0x18] sm:$0xff]  ;;  %v3445_v63 = vld [vmem:[#allocation2 + $0x48] sm:$0xff] }
 0x3c4   : > { %6368 = vmatpush.bf16.msra.mxu3 %v8852_v30  ;;  %v6094_v36 = vadd.f32 %v6093_v10, %v6080_v23 }
 0x3c5   : > { %6412 = vmatmul.bf16.vlgmr.msrb.gmra.mxu2 %v12337_v9  ;;  %v9713_v9 = vld [vmem:[%s11071_s28 + $0xb98] sm:$0xf0] }
 0x3c6   : > { %v6440_v51 = vadd.f32 %v6094_v36, %v3444_v45  ;;  %v9716_v28 = vor.u32 %v10529_v43, %v9713_v9  ;;  %v6163_v29 = vpop.f32.mrf.mxu0 }
 0x3c7   : > { %v6119_v61 = vpop.f32.mrf.mxu1 }
 0x3c8   : > { %6369 = vmatpush.bf16.msra.mxu3 %v8828_v8  ;;  %6452 = vst [vmem:[#allocation2 + $0x28] sm:$0xff] %v6440_v51  ;;  %v6120_v55 = vadd.f32 %v6119_v61, %v6105_v50 }
 0x3ca   : > { %v6134_v5 = vadd.f32 %v6133_v7, %v6120_v55  ;;  %v6189_v34 = vpop.f32.mrf.mxu2 }
 0x3cb   : > { %6370 = vmatmul.bf16.vlgmr.msra.gmra.mxu3 %v12157_v39  ;;  %v10505_v39 = vld [vmem:[%s11071_s28 + $0xac4] sm:$0xf] }
 0x3cc   : > { %6418 = vmatpush.bf16.msrb.mxu3 %v9764_v4  ;;  %v9620_v21 = vor.u32 %v10505_v39, %v9617_v25  ;;  %v6147_v62 = vpop.f32.mrf.mxu3 }
 0x3cd   : > { %v6148_v60 = vadd.f32 %v6147_v62, %v6134_v5 }
 0x3ce   : > { %v6217_v2 = vpop.f32.mrf.mxu0 }
 0x3cf   : > { %v6121_v1 = vpop.f32.mrf.mxu1  ;;  %v6162_v52 = vadd.f32 %v6161_v18, %v6148_v60 }
 0x3d0   : > { %6419 = vmatpush.bf16.msrb.mxu3 %v9740_v14  ;;  %v6122_v22 = vadd.f32 %v6121_v1, %v6107_v59 }
 0x3d2   : > { %v6136_v15 = vadd.f32 %v6135_v19, %v6122_v22  ;;  %v6191_v47 = vpop.f32.mrf.mxu2 }
 0x3d4   : > { %6420 = vmatpush.bf16.msrb.mxu3 %v9716_v28  ;;  %v6149_v17 = vpop.f32.mrf.mxu3 }
 0x3d5   : > { %v6150_v48 = vadd.f32 %v6149_v17, %v6136_v15 }
 0x3d6   : > { %v6219_v8 = vpop.f32.mrf.mxu0 }
 0x3d7   : > { %v6175_v33 = vpop.f32.mrf.mxu1  ;;  %v6164_v35 = vadd.f32 %v6163_v29, %v6150_v48 }
 0x3d8   : > { %6421 = vmatpush.bf16.msrb.mxu3 %v9692_v6  ;;  %v6176_v3 = vadd.f32 %v6175_v33, %v6162_v52 }
 0x3da   : > { %v6190_v41 = vadd.f32 %v6189_v34, %v6176_v3 }
 0x3dc   : > { %6422 = vmatpush.bf16.msrb.mxu3 %v9668_v57 }
 0x3df   : > { %v6177_v54 = vpop.f32.mrf.mxu1 }
 0x3e0   : > { %6423 = vmatpush.bf16.msrb.mxu3 %v9644_v37 }
 0x3e3   : > { %v6245_v23 = vpop.f32.mrf.mxu2 }
 0x3e4   : > { %6424 = vmatpush.bf16.msrb.mxu3 %v9620_v21 }
 0x3e7   : > { %v6231_v12 = vpop.f32.mrf.mxu1 }
 0x3e8   : > { %6425 = vmatpush.bf16.msrb.mxu3 %v9596_v24  ;;  %v6232_v10 = vadd.f32 %v6231_v12, %v6217_v2  ;;  %v3447_v2 = vld [vmem:[#allocation2 + $0x40] sm:$0xff] }
 0x3ea   : > { %v6246_v36 = vadd.f32 %v6245_v23, %v6232_v10 }
 0x3eb   : > { %6426 = vmatmul.bf16.vlgmr.msrb.gmra.mxu3 %v12413_v32  ;;  %v6178_v32 = vadd.f32 %v6177_v54, %v6164_v35  ;;  %v6247_v51 = vpop.f32.mrf.mxu2 }
 0x3ec   : > { %v6203_v27 = vpop.f32.mrf.mxu3  ;;  %v6273_v38 = vpop.f32.mrf.mxu0 }
 0x3ed   : > { %v6204_v49 = vadd.f32 %v6203_v27, %v6190_v41  ;;  %v6192_v30 = vadd.f32 %v6191_v47, %v6178_v32 }
 0x3ef   : > { %v6435_v20 = vadd.f32 %v6204_v49, %v3439_v26  ;;  %v6233_v4 = vpop.f32.mrf.mxu1 }
 0x3f0   : > { %v6234_v14 = vadd.f32 %v6233_v4, %v6219_v8 }
 0x3f1   : > { %6447 = vst [vmem:[#allocation2 + $0x18] sm:$0xff] %v6435_v20  ;;  %v3441_v20 = vld [vmem:[#allocation2 + $0x20] sm:$0xff] }
 0x3f2   : > { %v6248_v44 = vadd.f32 %v6247_v51, %v6234_v14 }
 0x3f4   : > { %v6205_v42 = vpop.f32.mrf.mxu3  ;;  %v6275_v53 = vpop.f32.mrf.mxu0 }
 0x3f5   : > { %v6206_v56 = vadd.f32 %v6205_v42, %v6192_v30 }
 0x3f7   : > { %v6441_v13 = vadd.f32 %v6206_v56, %v3445_v63  ;;  %v6287_v9 = vpop.f32.mrf.mxu1 }
 0x3f9   : > { %6453 = vst [vmem:[#allocation2 + $0x48] sm:$0xff] %v6441_v13 }
 0x3ff   : > { %v6289_v39 = vpop.f32.mrf.mxu1 }
 0x407   : > { %v6301_v11 = vpop.f32.mrf.mxu2 }
 0x40c   : > { %v6259_v45 = vpop.f32.mrf.mxu3  ;;  %v6329_v62 = vpop.f32.mrf.mxu0 }
 0x40d   : > { %v6260_v0 = vadd.f32 %v6259_v45, %v6246_v36 }
 0x40e   : > { %v6343_v55 = vpop.f32.mrf.mxu1 }
 0x40f   : > { %v6274_v43 = vadd.f32 %v6273_v38, %v6260_v0  ;;  %v6303_v21 = vpop.f32.mrf.mxu2  ;;  %v6344_v18 = vadd.f32 %v6343_v55, %v6329_v62 }
 0x411   : > { %v6288_v6 = vadd.f32 %v6287_v9, %v6274_v43 }
 0x413   : > { %v6302_v46 = vadd.f32 %v6301_v11, %v6288_v6 }
 0x414   : > { %v6261_v28 = vpop.f32.mrf.mxu3  ;;  %v6331_v5 = vpop.f32.mrf.mxu0 }
 0x415   : > { %v6262_v31 = vadd.f32 %v6261_v28, %v6248_v44 }
 0x416   : > { %v6345_v19 = vpop.f32.mrf.mxu1 }
 0x417   : > { %v6276_v57 = vadd.f32 %v6275_v53, %v6262_v31  ;;  %v6346_v15 = vadd.f32 %v6345_v19, %v6331_v5 }
 0x419   : > { %v6290_v61 = vadd.f32 %v6289_v39, %v6276_v57 }
 0x41b   : > { %v6304_v58 = vadd.f32 %v6303_v21, %v6290_v61 }
 0x428   : > { %v6357_v1 = vpop.f32.mrf.mxu2 }
 0x429   : > { %v6358_v22 = vadd.f32 %v6357_v1, %v6344_v18 }
 0x42c   : > { %v6385_v33 = vpop.f32.mrf.mxu0 }
 0x42e   : > { %v6399_v3 = vpop.f32.mrf.mxu1 }
 0x42f   : > { %v6315_v50 = vpop.f32.mrf.mxu3 }
 0x430   : > { %v6316_v37 = vadd.f32 %v6315_v50, %v6302_v46  ;;  %v6359_v17 = vpop.f32.mrf.mxu2 }
 0x431   : > { %v6360_v29 = vadd.f32 %v6359_v17, %v6346_v15 }
 0x432   : > { %v6436_v25 = vadd.f32 %v6316_v37, %v3440_v40 }
 0x434   : > { %6448 = vst [vmem:[#allocation2 + $0x50] sm:$0xff] %v6436_v25  ;;  %v6387_v27 = vpop.f32.mrf.mxu0 }
 0x436   : > { %v6401_v30 = vpop.f32.mrf.mxu1 }
 0x437   : > { %v6317_v7 = vpop.f32.mrf.mxu3 }
 0x438   : > { %v6318_v24 = vadd.f32 %v6317_v7, %v6304_v58 }
 0x43a   : > { %v6442_v59 = vadd.f32 %v6318_v24, %v3446_v16 }
 0x43c   : > { %6454 = vst [vmem:[#allocation2 + $0x10] sm:$0xff] %v6442_v59 }
 0x448   : > { %v6413_v26 = vpop.f32.mrf.mxu2 }
 0x44e   : > { %v6371_v60 = vpop.f32.mrf.mxu3 }
 0x44f   : > { %v6372_v52 = vadd.f32 %v6371_v60, %v6358_v22 }
 0x450   : > { %v6415_v56 = vpop.f32.mrf.mxu2 }
 0x451   : > { %v6386_v48 = vadd.f32 %v6385_v33, %v6372_v52 }
 0x453   : > { %v6400_v41 = vadd.f32 %v6399_v3, %v6386_v48 }
 0x455   : > { %v6414_v54 = vadd.f32 %v6413_v26, %v6400_v41 }
 0x456   : > { %v6373_v34 = vpop.f32.mrf.mxu3 }
 0x457   : > { %v6374_v35 = vadd.f32 %v6373_v34, %v6360_v29 }
 0x459   : > { %v6388_v49 = vadd.f32 %v6387_v27, %v6374_v35 }
 0x45b   : > { %v6402_v42 = vadd.f32 %v6401_v30, %v6388_v49 }
 0x45d   : > { %v6416_v13 = vadd.f32 %v6415_v56, %v6402_v42 }
 0x46e   : > { %v6427_v32 = vpop.f32.mrf.mxu3 }
 0x46f   : > { %v6428_v47 = vadd.f32 %v6427_v32, %v6414_v54 }
 0x471   : > { %v6437_v63 = vadd.f32 %v6428_v47, %v3441_v20 }
 0x473   : > { %6449 = vst [vmem:[#allocation2 + $0x20] sm:$0xff] %v6437_v63 }
 0x476   : > { %v6429_v12 = vpop.f32.mrf.mxu3 }
 0x477   : > { %v6430_v23 = vadd.f32 %v6429_v12, %v6416_v13  ;;  %6459 = sbr.rel (%p9765_p2) target bundleno = 1165 (0x48d), region = 68 }
 0x479   : > { %v6443_v8 = vadd.f32 %v6430_v23, %v3447_v2 }
 0x47b   : > { %6455 = vst [vmem:[#allocation2 + $0x40] sm:$0xff] %v6443_v8 }
 0x47c   : > { %v6460_v45 = vld [vmem:[#allocation2 + $0x30] sm:$0xff]  ;;  %v6472_v10 = vld [vmem:[#allocation11] sm:$0x3f]  ;;  %v6462_v38 = vld [vmem:[#allocation2 + $0x58] sm:$0xff] }
 0x47d   : > { %v6461_v4 = vld [vmem:[#allocation2] sm:$0xff]  ;;  %v6474_v36 = vperm.slane %v6472_v10, 0  ;;  %v6475_v0 = vperm.slane %v6472_v10, 1  ;;  %v6476_v51 = vperm.slane %v6472_v10, 2  ;;  %v6463_v14 = vld [vmem:[#allocation2 + $0x18] sm:$0xff]  ;;  %v6477_v43 = vperm.slane %v6472_v10, 3 }
 0x47e   : > { %v6464_v9 = vld [vmem:[#allocation2 + $0x50] sm:$0xff]  ;;  %v6478_v28 = vperm.slane %v6472_v10, 4  ;;  %v6479_v44 = vperm.slane %v6472_v10, 5  ;;  %v6465_v53 = vld [vmem:[#allocation2 + $0x20] sm:$0xff]  ;;  %v6466_v46 = vld [vmem:[#allocation2 + $0x8] sm:$0xff] }
 0x47f   : > { %v6486_v31 = vadd.f32 %v6474_v36, %v6460_v45  ;;  %v6487_v6 = vadd.f32 %v6475_v0, %v6461_v4  ;;  %v6488_v11 = vadd.f32 %v6476_v51, %v6462_v38  ;;  %v6489_v57 = vadd.f32 %v6477_v43, %v6463_v14  ;;  %v6467_v50 = vld [vmem:[#allocation2 + $0x38] sm:$0xff]  ;;  %v6468_v39 = vld [vmem:[#allocation2 + $0x28] sm:$0xff]  ;;  %v6470_v58 = vld [vmem:[#allocation2 + $0x10] sm:$0xff] }
 0x480   : > { %v6490_v40 = vadd.f32 %v6478_v28, %v6464_v9  ;;  %v6491_v37 = vadd.f32 %v6479_v44, %v6465_v53  ;;  %v6492_v25 = vadd.f32 %v6474_v36, %v6466_v46  ;;  %v6469_v61 = vld [vmem:[#allocation2 + $0x48] sm:$0xff]  ;;  %v6493_v21 = vadd.f32 %v6475_v0, %v6467_v50 }
 0x481   : > { %6498 = vst [vmem:[#allocation12] sm:$0xff] %v6486_v31  ;;  %v6494_v16 = vadd.f32 %v6476_v51, %v6468_v39  ;;  %v6495_v24 = vadd.f32 %v6477_v43, %v6469_v61  ;;  %v6496_v59 = vadd.f32 %v6478_v28, %v6470_v58 }
 0x482   : > { %6499 = vst [vmem:[#allocation12 + $0x8] sm:$0xff] %v6487_v6  ;;  %v6471_v7 = vld [vmem:[#allocation2 + $0x40] sm:$0xff] }
 0x483   : > { %6500 = vst [vmem:[#allocation12 + $0x10] sm:$0xff] %v6488_v11  ;;  %v6497_v62 = vadd.f32 %v6479_v44, %v6471_v7 }
 0x484   : > { %6501 = vst [vmem:[#allocation12 + $0x18] sm:$0xff] %v6489_v57 }
 0x485   : > { %6502 = vst [vmem:[#allocation12 + $0x20] sm:$0xff] %v6490_v40 }
 0x486   : > { %6503 = vst [vmem:[#allocation12 + $0x28] sm:$0xff] %v6491_v37 }
 0x487   : > { %6504 = vst [vmem:[#allocation12 + $0x30] sm:$0xff] %v6492_v25 }
 0x488   : > { %6505 = vst [vmem:[#allocation12 + $0x38] sm:$0xff] %v6493_v21 }
 0x489   : > { %6506 = vst [vmem:[#allocation12 + $0x40] sm:$0xff] %v6494_v16 }
 0x48a   : > { %6507 = vst [vmem:[#allocation12 + $0x48] sm:$0xff] %v6495_v24 }
 0x48b   : > { %6508 = vst [vmem:[#allocation12 + $0x50] sm:$0xff] %v6496_v59 }
 0x48c   : > { %6509 = vst [vmem:[#allocation12 + $0x58] sm:$0xff] %v6497_v62 }
 0x48d PF: > { %p10589_p3 = scmp.eq.s32.totalorder %s10968_s24, 2  ;;  %s13005_s11 = sld [smem:[#allocation28_spill]] }
 0x48e   : > { %s10906_s7 = smov [#allocation12]   ;;  %s10907_s13 = smov 768  }
 0x48f   : > { %s6519_s15 = sshll.u32 %s10906_s7, 4  ;;  %s10908_s17 = smov 48   ;;  %s6520_s15 = int_to_ptr.vmem [resolvable:$true] %s6519_s15 }
 0x493   : > { %s6521_s29 = sshll.u32 %s13005_s11, 4  ;;  %s6522_s29 = int_to_ptr.hbm [resolvable:$true] %s6521_s29 }
 0x494   : > { %10564 = dma.vmem_to_hbm [thread:$0]  (%p10589_p3), %s6520_s15, 1536, %s6522_s29, [#allocation5], %s10907_s13, %s10907_s13, %s10908_s17  }
 0x495   : > { %10871 = dma.done.wait (%p10589_p3), [#allocation5], 1536  }
 0x496   : > { %10873 = vsyncadd (%p10589_p3), [#allocation5], 4294965760 }
 0x497 PF: > { %s23_s23 = sadd.s32 1, %s10896_s23   ;;  %s13006_s24 = sld [smem:[#allocation19_spill]] }
 0x498   : > { %p20_p4 = scmp.ge.s32.totalorder %s23_s23, 5   ;;  %s13007_s25 = sld [smem:[#allocation18_spill]] }
 0x499   : > { %s13008_s18 = smov %s10880_s19  ;;  %s13009_s19 = smov %s10884_s20 }
 0x49a   : > { %s13011_s21 = smov %s10892_s22  ;;  %22 = sbr.rel (!%p20_p4) target bundleno = 12 (0xc), region = 120 }
 0x49d   : > { %s13010_s20 = smov %s13006_s24 }
 0x49e   : > { %s13012_s22 = smov %s13007_s25 }
 0x49f   :  { %6538 = vsyncpa [#allocation4], 1 }
 0x4a0   :  { %6540 = vsyncpa [#allocation4 + $0x1], 1 }
 0x4a1   :  { %6541 = vsyncpa [#allocation7], 1 }
 0x4a2   :  { %6543 = vsyncpa [#allocation7 + $0x1], 1 }
 0x4a3   :  { %6544 = vsyncpa [#allocation10], 1 }
 0x4a4   :  { %6546 = vsyncpa [#allocation10 + $0x1], 1 }
 0x4a5   :  { %6547 = vsyncpa [#allocation5], 1 }
 0x4a6   :  { %6549 = vsyncpa [#allocation5 + $0x1], 1 }

</bundles_post_ra>
